<compile_context>
chip_gen: v6e
topology: v6e:2x2x1
jax: 0.10.0
libtpu: 0.0.40
codegen_flags: <defaults>
</compile_context>

<pallas_src>
import functools
import math

import jax
import jax.numpy as jnp
from jax.experimental import pallas as pl
from jax.experimental.pallas import tpu as pltpu


_MASK_FILL = -1000000000.0      # matches masked_fill value in the PyTorch module
_LANE = 128                     # lane-dense padded logits width


def _gelu_erf(x):
    # ActivateFun('gelu'): x * 0.5 * (1 + erf(x / sqrt(2)))
    return x * 0.5 * (1.0 + jax.lax.erf(x / math.sqrt(2.0)))


def _attention_pool(x, mask, w1, b1, w2_row, b2):
    """Attention pooling for a block of Bb examples.

    x:      (Bb, T, D) bf16 encoder features
    mask:   (Bb, T, 1) f32   1.0 = valid, 0.0 = pad
    w1:     (D, H)     bf16  first attention linear (output_attention_*[0])
    b1:     (1, H)     f32
    w2_row: (1, H)     f32   second attention linear (output_attention_*[2]) row layout
    b2:     (1, 1)     f32
    returns (Bb, D) f32 pooled features
    """
    bb, t, d = x.shape
    h_dim = w1.shape[1]

    # Flattened (Bb*T, D) @ (D, H) first-layer matmul: one well-filled MXU op per block
    # instead of Bb thin per-example matmuls.  bf16 operands, f32 accumulation.
    x2 = x.reshape(bb * t, d)
    h = jnp.dot(x2, w1, preferred_element_type=jnp.float32) + b1          # (Bb*T, H) f32
    h = _gelu_erf(h)

    # Scores kept in (Bb, T, 1) layout (T on sublanes) so the masked softmax and the
    # pooling broadcast need no lane<->sublane relayout.
    h3 = h.reshape(bb, t, h_dim)
    alpha = jnp.sum(h3 * w2_row.reshape(1, 1, h_dim), axis=-1, keepdims=True)
    alpha = alpha + b2.reshape(1, 1, 1)                                    # (Bb, T, 1)
    alpha = jnp.where(mask == 0.0, _MASK_FILL, alpha)
    alpha = alpha - jnp.max(alpha, axis=1, keepdims=True)
    e = jnp.exp(alpha)
    p = e / jnp.sum(e, axis=1, keepdims=True)           # exact softmax weights, f32

    # Attention-weighted pooling: VPU broadcast-multiply + sublane reduce over T with D on
    # lanes (avoids Bb degenerate M=1 MXU matmuls after batch-blocking).
    return jnp.sum(p * x.astype(jnp.float32), axis=1)                      # (Bb, D) f32


def late_fusion_kernel(labels_ref,
                       audio_ref, amask_ref, text_ref, tmask_ref,
                       wa1_ref, ba1_ref, wa2_ref, ba2_ref,
                       wt1_ref, bt1_ref, wt2_ref, bt2_ref,
                       wca_ref, wct_ref, bc_ref,
                       logits_ref, nll_ref, *, num_labels):
    feats_audio = _attention_pool(audio_ref[...], amask_ref[...],
                                  wa1_ref[...], ba1_ref[...],
                                  wa2_ref[...], ba2_ref[...])              # (Bb, D)
    feats_text = _attention_pool(text_ref[...], tmask_ref[...],
                                 wt1_ref[...], bt1_ref[...],
                                 wt2_ref[...], bt2_ref[...])               # (Bb, D)

    # classifier on cat((audio, text), -1) == fa @ wc[:D] + ft @ wc[D:]  (no concat copy)
    logits = (jnp.dot(feats_audio, wca_ref[...], preferred_element_type=jnp.float32)
              + jnp.dot(feats_text, wct_ref[...], preferred_element_type=jnp.float32)
              + bc_ref[...])                                               # (Bb, 128)

    bb, lp = logits.shape
    col = jax.lax.broadcasted_iota(jnp.int32, (bb, lp), 1)
    logits = jnp.where(col < num_labels, logits, _MASK_FILL)  # kill padded label columns
    logits_ref[...] = logits                                  # lane-dense unmasked store

    # Per-example cross-entropy numerator; mean over the (real) batch in the wrapper.
    m = jnp.max(logits, axis=-1, keepdims=True)
    lse = m + jnp.log(jnp.sum(jnp.exp(logits - m), axis=-1, keepdims=True))
    lbl = labels_ref[...]                                     # (Bb, 1) int32
    picked = jnp.sum(jnp.where(col == lbl, logits, 0.0), axis=-1, keepdims=True)
    nll_ref[...] = lse - picked                               # (Bb, 1)


def _round_up(n, m):
    return -(-n // m) * m


def _pad_to(x, shape):
    pads = [(0, s - d) for d, s in zip(x.shape, shape)]
    if all(p == (0, 0) for p in pads):
        return x
    return jnp.pad(x, pads)


def _choose_batch_block(batch, ta, tt, d, h):
    """Pick the per-step batch block Bb and the padded batch size."""
    # Rough per-example VMEM bytes: double-buffered bf16 feature blocks, f32 hidden
    # activations, the f32 pooling product, and the lane-padded masks.
    per_ex = (2 * 2 * (ta + tt) * d * 2
              + (ta + tt) * h * 4
              + (ta + tt) * d * 4
              + (ta + tt) * _LANE * 4)
    budget = 20 * 1024 * 1024           # headroom under the 32 MiB scoped VMEM limit (v7x-safe)
    bb_vmem = max(1, budget // per_ex)
    # Fill the MXU M dimension of the flattened first-layer matmul: Bb*T >= ~256 rows.
    bb_mxu = _round_up(max(1, -(-256 // max(min(ta, tt), 1))), 8)
    bb = min(bb_vmem, max(bb_mxu, 8))
    if bb >= batch:
        return batch, batch             # single block covering the whole batch
    bb = max(8, (bb // 8) * 8)          # multi-block: Bb multiple of 8 for (8,128) tiling
    return bb, _round_up(batch, bb)


def mmi_late_fusion_forward(audio_feat, audio_mask, text_feat, text_mask,
                            params, emotion_labels):
    """Forward of MMI_Model_LateFusion (fuse_type='att', inference-mode dropout).

    Returns (loss, logits, 0.0, loss_cls, 0.0) like the PyTorch module."""
    batch, ta, d = audio_feat.shape
    tt = text_feat.shape[1]
    h = params["wa1"].shape[1]
    num_labels = params["wc"].shape[1]
    lp = _LANE

    ta_p = _round_up(ta, 16)            # bf16 packs 16 rows per sublane group
    tt_p = _round_up(tt, 16)
    bb, b_p = _choose_batch_block(batch, ta_p, tt_p, d, h)

    # bf16 activations + first-layer weights for the MXU; pad T (mask = 0 so the softmax
    # ignores it) and B (padded rows dropped after the call).
    audio = _pad_to(audio_feat, (b_p, ta_p, d)).astype(jnp.bfloat16)
    text = _pad_to(text_feat, (b_p, tt_p, d)).astype(jnp.bfloat16)
    amask = _pad_to(audio_mask.astype(jnp.float32), (b_p, ta_p)).reshape(b_p, ta_p, 1)
    tmask = _pad_to(text_mask.astype(jnp.float32), (b_p, tt_p)).reshape(b_p, tt_p, 1)
    # Clip labels like take_along_axis would (review correctness concern on OOB labels).
    labels = jnp.clip(emotion_labels.astype(jnp.int32), 0, num_labels - 1)
    labels = _pad_to(labels, (b_p,)).reshape(b_p, 1)

    f32 = jnp.float32
    wa1 = params["wa1"].astype(jnp.bfloat16)
    wt1 = params["wt1"].astype(jnp.bfloat16)
    ba1 = params["ba1"].astype(f32)
    wa2 = params["wa2"].astype(f32)
    ba2 = params["ba2"].astype(f32)
    bt1 = params["bt1"].astype(f32)
    wt2 = params["wt2"].astype(f32)
    bt2 = params["bt2"].astype(f32)
    # Split + zero-pad the classifier: no in-kernel concat, lane-dense (Bb, 128) logits slab.
    wca = _pad_to(params["wc"][:d].astype(f32), (d, lp))
    wct = _pad_to(params["wc"][d:].astype(f32), (d, lp))
    bc = _pad_to(params["bc"].astype(f32), (1, lp))

    def _blocked(shape):
        nd = len(shape)
        return pl.BlockSpec((bb,) + shape[1:], lambda b, _nd=nd: (b,) + (0,) * (_nd - 1))

    def _resident(shape):
        # Constant index map -> Pallas keeps the block resident across the batch grid.
        # (Default double-buffering of these weights costs ~1.2 MiB; within budget, so no
        #  pipeline_mode override is used to keep lowering simple.)
        nd = len(shape)
        return pl.BlockSpec(shape, lambda b, _nd=nd: (0,) * _nd)

    grid_spec = pltpu.PrefetchScalarGridSpec(
        num_scalar_prefetch=0,
        grid=(b_p // bb,),
        in_specs=[
            _blocked((b_p, 1)),            # emotion labels (int32)
            _blocked((b_p, ta_p, d)),      # audio features (bf16)
            _blocked((b_p, ta_p, 1)),      # audio mask
            _blocked((b_p, tt_p, d)),      # text features (bf16)
            _blocked((b_p, tt_p, 1)),      # text mask
            _resident((d, h)),             # wa1  output_attention_audio[0].weight
            _resident((1, h)),             # ba1
            _resident((1, h)),             # wa2  output_attention_audio[2].weight (row)
            _resident((1, 1)),             # ba2
            _resident((d, h)),             # wt1  output_attention_text[0].weight
            _resident((1, h)),             # bt1
            _resident((1, h)),             # wt2
            _resident((1, 1)),             # bt2
            _resident((d, lp)),            # classifier weight, audio half (lane padded)
            _resident((d, lp)),            # classifier weight, text half (lane padded)
            _resident((1, lp)),            # classifier bias (lane padded)
        ],
        out_specs=[
            _blocked((b_p, lp)),           # logits slab
            _blocked((b_p, 1)),            # per-example nll
        ],
    )

    logits_p, nll_p = pl.pallas_call(
        functools.partial(late_fusion_kernel, num_labels=num_labels),
        grid_spec=grid_spec,
        out_shape=(jax.ShapeDtypeStruct((b_p, lp), jnp.float32),
                   jax.ShapeDtypeStruct((b_p, 1), jnp.float32)),
        compiler_params=pltpu.CompilerParams(
            dimension_semantics=("parallel",),       # shard batch blocks across v7x TCs
            vmem_limit_bytes=32 * 1024 * 1024),
    )(labels, audio, amask, text, tmask,
      wa1, ba1, wa2, ba2, wt1, bt1, wt2, bt2, wca, wct, bc)

    logits = logits_p[:batch, :num_labels]
    loss_cls = jnp.mean(nll_p[:batch, 0])    # mean over the real batch (padded rows dropped)
    return loss_cls, logits, 0.0, loss_cls, 0.0


def reference_forward(audio_feat, audio_mask, text_feat, text_mask, params, labels):
    """Pure-JAX f32 reference mirroring the PyTorch forward (fuse_type='att')."""
    def gelu(x):
        return x * 0.5 * (1.0 + jax.scipy.special.erf(x / math.sqrt(2.0)))

    def pool(x, mask, w1, b1, w2, b2):
        h = gelu(x @ w1 + b1)
        alpha = jnp.sum(h * w2[None, :, :], axis=-1) + b2
        alpha = jnp.where(mask == 0.0, _MASK_FILL, alpha)
        p = jax.nn.softmax(alpha, axis=-1)
        return jnp.sum(p[..., None] * x, axis=1)

    fa = pool(audio_feat, audio_mask, params["wa1"], params["ba1"],
              params["wa2"], params["ba2"])
    ft = pool(text_feat, text_mask, params["wt1"], params["bt1"],
              params["wt2"], params["bt2"])
    logits = jnp.concatenate([fa, ft], axis=-1) @ params["wc"] + params["bc"]
    logp = jax.nn.log_softmax(logits, axis=-1)
    loss = -jnp.mean(jnp.take_along_axis(logp, labels[:, None], axis=-1))
    return loss, logits


def create_mask(batch, maxlen, lengths):
    del batch
    return (jnp.arange(maxlen)[None, :] < lengths[:, None]).astype(jnp.float32)


if __name__ == "__main__":
    B, Ta, Tt = 2, 16, 8          # batch, wav2vec2 frames, text tokens
    D, H, L = 768, 384, 4         # hidden, attention hidden (768//2), emotion classes

    key = jax.random.PRNGKey(0)
    ks = jax.random.split(key, 12)

    # Simulated encoder outputs (wav2vec2 / BERT) and lengths.
    audio_output_wav2vec2 = jax.random.normal(ks[0], (B, Ta, D), jnp.float32)
    text_output = jax.random.normal(ks[1], (B, Tt, D), jnp.float32)
    audio_frame_lengths = jnp.array([Ta, 10], jnp.int32)
    text_lengths = jnp.array([Tt, 5], jnp.int32)
    emotion_labels = jnp.array([1, 3], jnp.int32)

    wav2vec2_attention_mask = create_mask(B, Ta, audio_frame_lengths)   # (B, Ta)
    bert_attention_mask = create_mask(B, Tt, text_lengths)              # (B, Tt)

    # Deterministic parameters (shapes from __init__ with hidden_size=768).
    s = 0.02
    params = {
        "wa1": s * jax.random.normal(ks[2], (D, H), jnp.float32),   # output_attention_audio[0]
        "ba1": s * jax.random.normal(ks[3], (1, H), jnp.float32),
        "wa2": s * jax.random.normal(ks[4], (1, H), jnp.float32),   # output_attention_audio[2]
        "ba2": s * jax.random.normal(ks[5], (1, 1), jnp.float32),
        "wt1": s * jax.random.normal(ks[6], (D, H), jnp.float32),   # output_attention_text[0]
        "bt1": s * jax.random.normal(ks[7], (1, H), jnp.float32),
        "wt2": s * jax.random.normal(ks[8], (1, H), jnp.float32),   # output_attention_text[2]
        "bt2": s * jax.random.normal(ks[9], (1, 1), jnp.float32),
        "wc":  s * jax.random.normal(ks[10], (2 * D, L), jnp.float32),  # classifier.linear3
        "bc":  s * jax.random.normal(ks[11], (1, L), jnp.float32),
    }

    loss, logits, _, loss_cls, _ = mmi_late_fusion_forward(
        audio_output_wav2vec2, wav2vec2_attention_mask,
        text_output, bert_attention_mask, params, emotion_labels)
    jax.block_until_ready((loss, logits))

    ref_loss, ref_logits = reference_forward(
        audio_output_wav2vec2, wav2vec2_attention_mask,
        text_output, bert_attention_mask, params, emotion_labels)

    assert logits.shape == (B, L)
    assert bool(jnp.all(jnp.isfinite(logits))) and bool(jnp.isfinite(loss))
    # bf16 MXU operands (f32 accumulation, exact softmax) -> slightly looser than pure f32.
    assert bool(jnp.allclose(logits, ref_logits, atol=2e-2, rtol=2e-2)), "logits mismatch"
    assert bool(jnp.allclose(loss, ref_loss, atol=2e-2, rtol=2e-2)), "loss mismatch"

    print("KERNEL_OK")
</pallas_src>

<mosaic_0001>
module attributes {stable_mosaic.version = 11 : i64} {
  func.func @late_fusion_kernel(%arg0: i32, %arg1: memref<2x1xi32, #tpu.memory_space<vmem>>, %arg2: memref<2x16x768xbf16, #tpu.memory_space<vmem>>, %arg3: memref<2x16x1xf32, #tpu.memory_space<vmem>>, %arg4: memref<2x16x768xbf16, #tpu.memory_space<vmem>>, %arg5: memref<2x16x1xf32, #tpu.memory_space<vmem>>, %arg6: memref<768x384xbf16, #tpu.memory_space<vmem>>, %arg7: memref<1x384xf32, #tpu.memory_space<vmem>>, %arg8: memref<1x384xf32, #tpu.memory_space<vmem>>, %arg9: memref<1x1xf32, #tpu.memory_space<vmem>>, %arg10: memref<768x384xbf16, #tpu.memory_space<vmem>>, %arg11: memref<1x384xf32, #tpu.memory_space<vmem>>, %arg12: memref<1x384xf32, #tpu.memory_space<vmem>>, %arg13: memref<1x1xf32, #tpu.memory_space<vmem>>, %arg14: memref<768x128xf32, #tpu.memory_space<vmem>>, %arg15: memref<768x128xf32, #tpu.memory_space<vmem>>, %arg16: memref<1x128xf32, #tpu.memory_space<vmem>>, %arg17: memref<2x128xf32, #tpu.memory_space<vmem>>, %arg18: memref<2x1xf32, #tpu.memory_space<vmem>>) attributes {dimension_semantics = [#tpu.dimension_semantics<parallel>], iteration_bounds = array<i64: 1>, scalar_prefetch = 0 : i64, scratch_operands = 0 : i64, tpu.core_type = #tpu.core_type<tc>, window_params = [{transform_indices = @transform_0, window_bounds = array<i64: 2, 1>}, {transform_indices = @transform_1, window_bounds = array<i64: 2, 16, 768>}, {transform_indices = @transform_2, window_bounds = array<i64: 2, 16, 1>}, {transform_indices = @transform_3, window_bounds = array<i64: 2, 16, 768>}, {transform_indices = @transform_4, window_bounds = array<i64: 2, 16, 1>}, {pipeline_mode = #tpu.pipeline_mode<synchronous>, transform_indices = @transform_5, window_bounds = array<i64: 768, 384>}, {pipeline_mode = #tpu.pipeline_mode<synchronous>, transform_indices = @transform_6, window_bounds = array<i64: 1, 384>}, {pipeline_mode = #tpu.pipeline_mode<synchronous>, transform_indices = @transform_7, window_bounds = array<i64: 1, 384>}, {pipeline_mode = #tpu.pipeline_mode<synchronous>, transform_indices = @transform_8, window_bounds = array<i64: 1, 1>}, {pipeline_mode = #tpu.pipeline_mode<synchronous>, transform_indices = @transform_9, window_bounds = array<i64: 768, 384>}, {pipeline_mode = #tpu.pipeline_mode<synchronous>, transform_indices = @transform_10, window_bounds = array<i64: 1, 384>}, {pipeline_mode = #tpu.pipeline_mode<synchronous>, transform_indices = @transform_11, window_bounds = array<i64: 1, 384>}, {pipeline_mode = #tpu.pipeline_mode<synchronous>, transform_indices = @transform_12, window_bounds = array<i64: 1, 1>}, {pipeline_mode = #tpu.pipeline_mode<synchronous>, transform_indices = @transform_13, window_bounds = array<i64: 768, 128>}, {pipeline_mode = #tpu.pipeline_mode<synchronous>, transform_indices = @transform_14, window_bounds = array<i64: 768, 128>}, {pipeline_mode = #tpu.pipeline_mode<synchronous>, transform_indices = @transform_15, window_bounds = array<i64: 1, 128>}, {transform_indices = @transform_16, window_bounds = array<i64: 2, 128>}, {transform_indices = @transform_17, window_bounds = array<i64: 2, 1>}]} {
    %c0 = arith.constant 0 : index
    %c0_0 = arith.constant 0 : index
    %c0_1 = arith.constant 0 : index
    %0 = vector.load %arg2[%c0, %c0_0, %c0_1] : memref<2x16x768xbf16, #tpu.memory_space<vmem>>, vector<2x16x768xbf16>
    %c0_2 = arith.constant 0 : index
    %c0_3 = arith.constant 0 : index
    %c0_4 = arith.constant 0 : index
    %1 = vector.load %arg3[%c0_2, %c0_3, %c0_4] : memref<2x16x1xf32, #tpu.memory_space<vmem>>, vector<2x16x1xf32>
    %c0_5 = arith.constant 0 : index
    %c0_6 = arith.constant 0 : index
    %2 = vector.load %arg6[%c0_5, %c0_6] : memref<768x384xbf16, #tpu.memory_space<vmem>>, vector<768x384xbf16>
    %c0_7 = arith.constant 0 : index
    %c0_8 = arith.constant 0 : index
    %3 = vector.load %arg7[%c0_7, %c0_8] : memref<1x384xf32, #tpu.memory_space<vmem>>, vector<1x384xf32>
    %c0_9 = arith.constant 0 : index
    %c0_10 = arith.constant 0 : index
    %4 = vector.load %arg8[%c0_9, %c0_10] : memref<1x384xf32, #tpu.memory_space<vmem>>, vector<1x384xf32>
    %c0_11 = arith.constant 0 : index
    %c0_12 = arith.constant 0 : index
    %5 = vector.load %arg9[%c0_11, %c0_12] : memref<1x1xf32, #tpu.memory_space<vmem>>, vector<1x1xf32>
    %6 = vector.shape_cast %0 : vector<2x16x768xbf16> to vector<32x768xbf16>
    %cst = arith.constant dense<0.000000e+00> : vector<32x384xf32>
    %7 = tpu.matmul %6, %2, %cst {dimension_numbers = #tpu.dot_dimension_numbers<[1], [0], [0], [1], [0, 0, 1, 1], [], []>} : vector<32x768xbf16>, vector<768x384xbf16>, vector<32x384xf32> -> vector<32x384xf32>
    %8 = vector.broadcast %3 : vector<1x384xf32> to vector<32x384xf32>
    %9 = arith.addf %7, %8 : vector<32x384xf32>
    %cst_13 = arith.constant 5.000000e-01 : f32
    %10 = vector.broadcast %cst_13 : f32 to vector<32x384xf32>
    %11 = arith.mulf %9, %10 : vector<32x384xf32>
    %cst_14 = arith.constant 1.41421354 : f32
    %12 = vector.broadcast %cst_14 : f32 to vector<32x384xf32>
    %13 = arith.divf %9, %12 : vector<32x384xf32>
    %14 = math.erf %13 : vector<32x384xf32>
    %cst_15 = arith.constant 1.000000e+00 : f32
    %15 = vector.broadcast %cst_15 : f32 to vector<32x384xf32>
    %16 = arith.addf %15, %14 : vector<32x384xf32>
    %17 = arith.mulf %11, %16 : vector<32x384xf32>
    %18 = vector.shape_cast %17 : vector<32x384xf32> to vector<2x16x384xf32>
    %19 = vector.shape_cast %4 : vector<1x384xf32> to vector<1x1x384xf32>
    %20 = vector.broadcast %19 : vector<1x1x384xf32> to vector<2x16x384xf32>
    %21 = arith.mulf %18, %20 : vector<2x16x384xf32>
    %cst_16 = arith.constant dense<0.000000e+00> : vector<2x16xf32>
    %22 = vector.multi_reduction <add>, %21, %cst_16 [2] : vector<2x16x384xf32> to vector<2x16xf32>
    %23 = vector.shape_cast %22 : vector<2x16xf32> to vector<2x16x1xf32>
    %24 = vector.shape_cast %5 : vector<1x1xf32> to vector<1x1x1xf32>
    %25 = vector.broadcast %24 : vector<1x1x1xf32> to vector<2x16x1xf32>
    %26 = arith.addf %23, %25 : vector<2x16x1xf32>
    %cst_17 = arith.constant 0.000000e+00 : f32
    %27 = vector.broadcast %cst_17 : f32 to vector<2x16x1xf32>
    %28 = arith.cmpf oeq, %1, %27 : vector<2x16x1xf32>
    %cst_18 = arith.constant -1.000000e+09 : f32
    %29 = vector.broadcast %cst_18 : f32 to vector<2x16x1xf32>
    %30 = arith.select %28, %29, %26 : vector<2x16x1xi1>, vector<2x16x1xf32>
    %cst_19 = arith.constant dense<0xFF800000> : vector<2x1xf32>
    %31 = vector.multi_reduction <maximumf>, %30, %cst_19 [1] : vector<2x16x1xf32> to vector<2x1xf32>
    %32 = vector.shape_cast %31 : vector<2x1xf32> to vector<2x1x1xf32>
    %33 = vector.broadcast %32 : vector<2x1x1xf32> to vector<2x16x1xf32>
    %34 = arith.subf %30, %33 : vector<2x16x1xf32>
    %35 = math.exp %34 : vector<2x16x1xf32>
    %cst_20 = arith.constant dense<0.000000e+00> : vector<2x1xf32>
    %36 = vector.multi_reduction <add>, %35, %cst_20 [1] : vector<2x16x1xf32> to vector<2x1xf32>
    %37 = vector.shape_cast %36 : vector<2x1xf32> to vector<2x1x1xf32>
    %38 = vector.broadcast %37 : vector<2x1x1xf32> to vector<2x16x1xf32>
    %39 = arith.divf %35, %38 : vector<2x16x1xf32>
    %40 = arith.extf %0 : vector<2x16x768xbf16> to vector<2x16x768xf32>
    %41 = vector.broadcast %39 : vector<2x16x1xf32> to vector<2x16x768xf32>
    %42 = arith.mulf %41, %40 : vector<2x16x768xf32>
    %cst_21 = arith.constant dense<0.000000e+00> : vector<2x768xf32>
    %43 = vector.multi_reduction <add>, %42, %cst_21 [1] : vector<2x16x768xf32> to vector<2x768xf32>
    %c0_22 = arith.constant 0 : index
    %c0_23 = arith.constant 0 : index
    %c0_24 = arith.constant 0 : index
    %44 = vector.load %arg4[%c0_22, %c0_23, %c0_24] : memref<2x16x768xbf16, #tpu.memory_space<vmem>>, vector<2x16x768xbf16>
    %c0_25 = arith.constant 0 : index
    %c0_26 = arith.constant 0 : index
    %c0_27 = arith.constant 0 : index
    %45 = vector.load %arg5[%c0_25, %c0_26, %c0_27] : memref<2x16x1xf32, #tpu.memory_space<vmem>>, vector<2x16x1xf32>
    %c0_28 = arith.constant 0 : index
    %c0_29 = arith.constant 0 : index
    %46 = vector.load %arg10[%c0_28, %c0_29] : memref<768x384xbf16, #tpu.memory_space<vmem>>, vector<768x384xbf16>
    %c0_30 = arith.constant 0 : index
    %c0_31 = arith.constant 0 : index
    %47 = vector.load %arg11[%c0_30, %c0_31] : memref<1x384xf32, #tpu.memory_space<vmem>>, vector<1x384xf32>
    %c0_32 = arith.constant 0 : index
    %c0_33 = arith.constant 0 : index
    %48 = vector.load %arg12[%c0_32, %c0_33] : memref<1x384xf32, #tpu.memory_space<vmem>>, vector<1x384xf32>
    %c0_34 = arith.constant 0 : index
    %c0_35 = arith.constant 0 : index
    %49 = vector.load %arg13[%c0_34, %c0_35] : memref<1x1xf32, #tpu.memory_space<vmem>>, vector<1x1xf32>
    %50 = vector.shape_cast %44 : vector<2x16x768xbf16> to vector<32x768xbf16>
    %cst_36 = arith.constant dense<0.000000e+00> : vector<32x384xf32>
    %51 = tpu.matmul %50, %46, %cst_36 {dimension_numbers = #tpu.dot_dimension_numbers<[1], [0], [0], [1], [0, 0, 1, 1], [], []>} : vector<32x768xbf16>, vector<768x384xbf16>, vector<32x384xf32> -> vector<32x384xf32>
    %52 = vector.broadcast %47 : vector<1x384xf32> to vector<32x384xf32>
    %53 = arith.addf %51, %52 : vector<32x384xf32>
    %cst_37 = arith.constant 5.000000e-01 : f32
    %54 = vector.broadcast %cst_37 : f32 to vector<32x384xf32>
    %55 = arith.mulf %53, %54 : vector<32x384xf32>
    %cst_38 = arith.constant 1.41421354 : f32
    %56 = vector.broadcast %cst_38 : f32 to vector<32x384xf32>
    %57 = arith.divf %53, %56 : vector<32x384xf32>
    %58 = math.erf %57 : vector<32x384xf32>
    %cst_39 = arith.constant 1.000000e+00 : f32
    %59 = vector.broadcast %cst_39 : f32 to vector<32x384xf32>
    %60 = arith.addf %59, %58 : vector<32x384xf32>
    %61 = arith.mulf %55, %60 : vector<32x384xf32>
    %62 = vector.shape_cast %61 : vector<32x384xf32> to vector<2x16x384xf32>
    %63 = vector.shape_cast %48 : vector<1x384xf32> to vector<1x1x384xf32>
    %64 = vector.broadcast %63 : vector<1x1x384xf32> to vector<2x16x384xf32>
    %65 = arith.mulf %62, %64 : vector<2x16x384xf32>
    %cst_40 = arith.constant dense<0.000000e+00> : vector<2x16xf32>
    %66 = vector.multi_reduction <add>, %65, %cst_40 [2] : vector<2x16x384xf32> to vector<2x16xf32>
    %67 = vector.shape_cast %66 : vector<2x16xf32> to vector<2x16x1xf32>
    %68 = vector.shape_cast %49 : vector<1x1xf32> to vector<1x1x1xf32>
    %69 = vector.broadcast %68 : vector<1x1x1xf32> to vector<2x16x1xf32>
    %70 = arith.addf %67, %69 : vector<2x16x1xf32>
    %cst_41 = arith.constant 0.000000e+00 : f32
    %71 = vector.broadcast %cst_41 : f32 to vector<2x16x1xf32>
    %72 = arith.cmpf oeq, %45, %71 : vector<2x16x1xf32>
    %cst_42 = arith.constant -1.000000e+09 : f32
    %73 = vector.broadcast %cst_42 : f32 to vector<2x16x1xf32>
    %74 = arith.select %72, %73, %70 : vector<2x16x1xi1>, vector<2x16x1xf32>
    %cst_43 = arith.constant dense<0xFF800000> : vector<2x1xf32>
    %75 = vector.multi_reduction <maximumf>, %74, %cst_43 [1] : vector<2x16x1xf32> to vector<2x1xf32>
    %76 = vector.shape_cast %75 : vector<2x1xf32> to vector<2x1x1xf32>
    %77 = vector.broadcast %76 : vector<2x1x1xf32> to vector<2x16x1xf32>
    %78 = arith.subf %74, %77 : vector<2x16x1xf32>
    %79 = math.exp %78 : vector<2x16x1xf32>
    %cst_44 = arith.constant dense<0.000000e+00> : vector<2x1xf32>
    %80 = vector.multi_reduction <add>, %79, %cst_44 [1] : vector<2x16x1xf32> to vector<2x1xf32>
    %81 = vector.shape_cast %80 : vector<2x1xf32> to vector<2x1x1xf32>
    %82 = vector.broadcast %81 : vector<2x1x1xf32> to vector<2x16x1xf32>
    %83 = arith.divf %79, %82 : vector<2x16x1xf32>
    %84 = arith.extf %44 : vector<2x16x768xbf16> to vector<2x16x768xf32>
    %85 = vector.broadcast %83 : vector<2x16x1xf32> to vector<2x16x768xf32>
    %86 = arith.mulf %85, %84 : vector<2x16x768xf32>
    %cst_45 = arith.constant dense<0.000000e+00> : vector<2x768xf32>
    %87 = vector.multi_reduction <add>, %86, %cst_45 [1] : vector<2x16x768xf32> to vector<2x768xf32>
    %c0_46 = arith.constant 0 : index
    %c0_47 = arith.constant 0 : index
    %88 = vector.load %arg14[%c0_46, %c0_47] : memref<768x128xf32, #tpu.memory_space<vmem>>, vector<768x128xf32>
    %cst_48 = arith.constant dense<0.000000e+00> : vector<2x128xf32>
    %89 = tpu.matmul %43, %88, %cst_48 {dimension_numbers = #tpu.dot_dimension_numbers<[1], [0], [0], [1], [0, 0, 1, 1], [], []>} : vector<2x768xf32>, vector<768x128xf32>, vector<2x128xf32> -> vector<2x128xf32>
    %c0_49 = arith.constant 0 : index
    %c0_50 = arith.constant 0 : index
    %90 = vector.load %arg15[%c0_49, %c0_50] : memref<768x128xf32, #tpu.memory_space<vmem>>, vector<768x128xf32>
    %cst_51 = arith.constant dense<0.000000e+00> : vector<2x128xf32>
    %91 = tpu.matmul %87, %90, %cst_51 {dimension_numbers = #tpu.dot_dimension_numbers<[1], [0], [0], [1], [0, 0, 1, 1], [], []>} : vector<2x768xf32>, vector<768x128xf32>, vector<2x128xf32> -> vector<2x128xf32>
    %92 = arith.addf %89, %91 : vector<2x128xf32>
    %c0_52 = arith.constant 0 : index
    %c0_53 = arith.constant 0 : index
    %93 = vector.load %arg16[%c0_52, %c0_53] : memref<1x128xf32, #tpu.memory_space<vmem>>, vector<1x128xf32>
    %94 = vector.broadcast %93 : vector<1x128xf32> to vector<2x128xf32>
    %95 = arith.addf %92, %94 : vector<2x128xf32>
    %96 = tpu.iota {dimensions = array<i32: 1>} : vector<2x128xi32>
    %c4_i32 = arith.constant 4 : i32
    %97 = vector.broadcast %c4_i32 : i32 to vector<2x128xi32>
    %98 = arith.cmpi slt, %96, %97 : vector<2x128xi32>
    %cst_54 = arith.constant -1.000000e+09 : f32
    %99 = vector.broadcast %cst_54 : f32 to vector<2x128xf32>
    %100 = arith.select %98, %95, %99 : vector<2x128xi1>, vector<2x128xf32>
    %c0_55 = arith.constant 0 : index
    %c0_56 = arith.constant 0 : index
    %101 = vector.load %arg17[%c0_55, %c0_56] : memref<2x128xf32, #tpu.memory_space<vmem>>, vector<2x128xf32>
    tpu.vector_store %arg17[%c0_55, %c0_56], %100 {strides = array<i32>} : memref<2x128xf32, #tpu.memory_space<vmem>>, vector<2x128xf32>,
    %cst_57 = arith.constant dense<0xFF800000> : vector<2xf32>
    %102 = vector.multi_reduction <maximumf>, %100, %cst_57 [1] : vector<2x128xf32> to vector<2xf32>
    %103 = vector.shape_cast %102 : vector<2xf32> to vector<2x1xf32>
    %104 = vector.broadcast %103 : vector<2x1xf32> to vector<2x128xf32>
    %105 = arith.subf %100, %104 : vector<2x128xf32>
    %106 = math.exp %105 : vector<2x128xf32>
    %cst_58 = arith.constant dense<0.000000e+00> : vector<2xf32>
    %107 = vector.multi_reduction <add>, %106, %cst_58 [1] : vector<2x128xf32> to vector<2xf32>
    %108 = vector.shape_cast %107 : vector<2xf32> to vector<2x1xf32>
    %109 = math.log %108 : vector<2x1xf32>
    %110 = arith.addf %103, %109 : vector<2x1xf32>
    %c0_59 = arith.constant 0 : index
    %c0_60 = arith.constant 0 : index
    %111 = vector.load %arg1[%c0_59, %c0_60] : memref<2x1xi32, #tpu.memory_space<vmem>>, vector<2x1xi32>
    %112 = vector.broadcast %111 : vector<2x1xi32> to vector<2x128xi32>
    %113 = arith.cmpi eq, %96, %112 : vector<2x128xi32>
    %cst_61 = arith.constant 0.000000e+00 : f32
    %114 = vector.broadcast %cst_61 : f32 to vector<2x128xf32>
    %115 = arith.select %113, %100, %114 : vector<2x128xi1>, vector<2x128xf32>
    %cst_62 = arith.constant dense<0.000000e+00> : vector<2xf32>
    %116 = vector.multi_reduction <add>, %115, %cst_62 [1] : vector<2x128xf32> to vector<2xf32>
    %117 = vector.shape_cast %116 : vector<2xf32> to vector<2x1xf32>
    %118 = arith.subf %110, %117 : vector<2x1xf32>
    %c0_63 = arith.constant 0 : index
    %c0_64 = arith.constant 0 : index
    %119 = vector.load %arg18[%c0_63, %c0_64] : memref<2x1xf32, #tpu.memory_space<vmem>>, vector<2x1xf32>
    tpu.vector_store %arg18[%c0_63, %c0_64], %118 {strides = array<i32>} : memref<2x1xf32, #tpu.memory_space<vmem>>, vector<2x1xf32>,
    return
  }
  func.func @transform_0(%arg0: i32) -> (i32, i32) {
    %c0_i32 = arith.constant 0 : i32
    %c0_i32_0 = arith.constant 0 : i32
    return %arg0, %c0_i32 : i32, i32
  }
  func.func @transform_1(%arg0: i32) -> (i32, i32, i32) {
    %c0_i32 = arith.constant 0 : i32
    %c0_i32_0 = arith.constant 0 : i32
    %c0_i32_1 = arith.constant 0 : i32
    return %arg0, %c0_i32, %c0_i32_0 : i32, i32, i32
  }
  func.func @transform_2(%arg0: i32) -> (i32, i32, i32) {
    %c0_i32 = arith.constant 0 : i32
    %c0_i32_0 = arith.constant 0 : i32
    %c0_i32_1 = arith.constant 0 : i32
    return %arg0, %c0_i32, %c0_i32_0 : i32, i32, i32
  }
  func.func @transform_3(%arg0: i32) -> (i32, i32, i32) {
    %c0_i32 = arith.constant 0 : i32
    %c0_i32_0 = arith.constant 0 : i32
    %c0_i32_1 = arith.constant 0 : i32
    return %arg0, %c0_i32, %c0_i32_0 : i32, i32, i32
  }
  func.func @transform_4(%arg0: i32) -> (i32, i32, i32) {
    %c0_i32 = arith.constant 0 : i32
    %c0_i32_0 = arith.constant 0 : i32
    %c0_i32_1 = arith.constant 0 : i32
    return %arg0, %c0_i32, %c0_i32_0 : i32, i32, i32
  }
  func.func @transform_5(%arg0: i32) -> (i32, i32) {
    %c0_i32 = arith.constant 0 : i32
    %c0_i32_0 = arith.constant 0 : i32
    %c0_i32_1 = arith.constant 0 : i32
    return %c0_i32, %c0_i32_0 : i32, i32
  }
  func.func @transform_6(%arg0: i32) -> (i32, i32) {
    %c0_i32 = arith.constant 0 : i32
    %c0_i32_0 = arith.constant 0 : i32
    %c0_i32_1 = arith.constant 0 : i32
    return %c0_i32, %c0_i32_0 : i32, i32
  }
  func.func @transform_7(%arg0: i32) -> (i32, i32) {
    %c0_i32 = arith.constant 0 : i32
    %c0_i32_0 = arith.constant 0 : i32
    %c0_i32_1 = arith.constant 0 : i32
    return %c0_i32, %c0_i32_0 : i32, i32
  }
  func.func @transform_8(%arg0: i32) -> (i32, i32) {
    %c0_i32 = arith.constant 0 : i32
    %c0_i32_0 = arith.constant 0 : i32
    %c0_i32_1 = arith.constant 0 : i32
    return %c0_i32, %c0_i32_0 : i32, i32
  }
  func.func @transform_9(%arg0: i32) -> (i32, i32) {
    %c0_i32 = arith.constant 0 : i32
    %c0_i32_0 = arith.constant 0 : i32
    %c0_i32_1 = arith.constant 0 : i32
    return %c0_i32, %c0_i32_0 : i32, i32
  }
  func.func @transform_10(%arg0: i32) -> (i32, i32) {
    %c0_i32 = arith.constant 0 : i32
    %c0_i32_0 = arith.constant 0 : i32
    %c0_i32_1 = arith.constant 0 : i32
    return %c0_i32, %c0_i32_0 : i32, i32
  }
  func.func @transform_11(%arg0: i32) -> (i32, i32) {
    %c0_i32 = arith.constant 0 : i32
    %c0_i32_0 = arith.constant 0 : i32
    %c0_i32_1 = arith.constant 0 : i32
    return %c0_i32, %c0_i32_0 : i32, i32
  }
  func.func @transform_12(%arg0: i32) -> (i32, i32) {
    %c0_i32 = arith.constant 0 : i32
    %c0_i32_0 = arith.constant 0 : i32
    %c0_i32_1 = arith.constant 0 : i32
    return %c0_i32, %c0_i32_0 : i32, i32
  }
  func.func @transform_13(%arg0: i32) -> (i32, i32) {
    %c0_i32 = arith.constant 0 : i32
    %c0_i32_0 = arith.constant 0 : i32
    %c0_i32_1 = arith.constant 0 : i32
    return %c0_i32, %c0_i32_0 : i32, i32
  }
  func.func @transform_14(%arg0: i32) -> (i32, i32) {
    %c0_i32 = arith.constant 0 : i32
    %c0_i32_0 = arith.constant 0 : i32
    %c0_i32_1 = arith.constant 0 : i32
    return %c0_i32, %c0_i32_0 : i32, i32
  }
  func.func @transform_15(%arg0: i32) -> (i32, i32) {
    %c0_i32 = arith.constant 0 : i32
    %c0_i32_0 = arith.constant 0 : i32
    %c0_i32_1 = arith.constant 0 : i32
    return %c0_i32, %c0_i32_0 : i32, i32
  }
  func.func @transform_16(%arg0: i32) -> (i32, i32) {
    %c0_i32 = arith.constant 0 : i32
    %c0_i32_0 = arith.constant 0 : i32
    return %arg0, %c0_i32 : i32, i32
  }
  func.func @transform_17(%arg0: i32) -> (i32, i32) {
    %c0_i32 = arith.constant 0 : i32
    %c0_i32_0 = arith.constant 0 : i32
    return %arg0, %c0_i32 : i32, i32
  }
}

</mosaic_0001>

<bundles_post_ra>
// kernel: tpu_custom_call.1
= control target key start
LH: loop header
LB: loop body
LE: loop exit
PB: predicated region body
PF: predicated region fallthrough
CT: control target
= control target key end

     0   :  { %s6278_s0 = inlined_call_operand.vmem [shape: s32[2,1], index: 0, kind: input, shape index: {}]   ;;  %s6279_s1 = inlined_call_operand.hbm [shape: bf16[2,16,768], index: 1, kind: input, shape index: {}]   ;;  %s6280_s2 = inlined_call_operand.vmem [shape: f32[2,16,1], index: 2, kind: input, shape index: {}]   ;;  %s6281_s3 = inlined_call_operand.hbm [shape: bf16[2,16,768], index: 3, kind: input, shape index: {}]   ;;  %s6282_s4 = inlined_call_operand.vmem [shape: f32[2,16,1], index: 4, kind: input, shape index: {}]   ;;  %s6283_s5 = inlined_call_operand.hbm [shape: bf16[768,384], index: 5, kind: input, shape index: {}]   ;;  %s6284_s6 = inlined_call_operand.vmem [shape: f32[1,384], index: 6, kind: input, shape index: {}]   ;;  %s6285_s7 = inlined_call_operand.vmem [shape: f32[1,384], index: 7, kind: input, shape index: {}]   ;;  %s6286_s8 = inlined_call_operand.<no memory space> [shape: f32[1,1], index: 8, kind: input, shape index: {}]   ;;  %s6287_s9 = inlined_call_operand.hbm [shape: bf16[768,384], index: 9, kind: input, shape index: {}]   ;;  %s6288_s10 = inlined_call_operand.vmem [shape: f32[1,384], index: 10, kind: input, shape index: {}]   ;;  %s6289_s11 = inlined_call_operand.vmem [shape: f32[1,384], index: 11, kind: input, shape index: {}]   ;;  %s6290_s13 = inlined_call_operand.hbm [shape: f32[768,128], index: 13, kind: input, shape index: {}]   ;;  %s6291_s14 = inlined_call_operand.hbm [shape: f32[768,128], index: 14, kind: input, shape index: {}]   ;;  %s6292_s15 = inlined_call_operand.vmem [shape: f32[1,128], index: 15, kind: input, shape index: {}]   ;;  %s6293_s16 = inlined_call_operand.hbm [shape: f32[2,128], index: 16, kind: output, shape index: {0}]   ;;  %s6294_s17 = inlined_call_operand.vmem [shape: f32[2,1], index: 17, kind: output, shape index: {1}]   ;;  %s6295_s12 = inlined_call_operand.<no memory space> [shape: f32[1,1], index: 12, kind: input, shape index: {}]  }
   0x1   :  { %6297 = sst [smem:[#allocation21_spill]] %s6278_s0  ;;  %v23_v0 = vstv %s6286_s8  ;;  %v25_v1 = vstv %s6295_s12 }
   0x2   :  { %6298 = sst [smem:[#allocation22_spill]] %s6279_s1  ;;  %24 = vst [vmem:[#allocation2] sm:$0x1] %v23_v0  ;;  %26 = vst [vmem:[#allocation3] sm:$0x1] %v25_v1 }
   0x3   :  { %27 = vsyncpa [#allocation5], 0 }
   0x4   :  { %28 = vsyncpa [#allocation8], 0 }
   0x5   :  { %29 = vsyncpa [#allocation11], 0 }
   0x6   :  { %30 = vsyncpa [#allocation14], 0 }
   0x7   :  { %31 = vsyncpa [#allocation6], 0  ;;  %s5611_s28 = smov [#allocation7]  }
   0x8   :  { %s53_s29 = sshll.u32 %s5611_s28, 4  ;;  %s54_s29 = int_to_ptr.vmem [resolvable:$true] %s53_s29 }
   0x9   :  { %s5469_s0 = scalar_lea.vmem %s54_s29, 1536  ;;  %p5474_p1 = scmp.lt.s32.totalorder %s54_s29, %s54_s29 }
   0xa   :  { %p5470_p0 = scmp.ne.s32.totalorder %s54_s29, %s5469_s0  ;;  %p5475_p2 = scmp.lt.s32.totalorder %s5469_s0, %s5469_s0 }
   0xc   :  { %p5476_p3 = por %p5475_p2, %p5474_p1 }
   0xe   :  { %p5477_p4 = pnand %p5476_p3, %p5470_p0 }
  0x10   :  { %5480 = shalt.err (!%p5477_p4)
}
  0x11   :  { %s5612_s8 = smov 384   ;;  %s5613_s30 = smov 24  }
  0x12   :  { %59 = dma.hbm_to_vmem [thread:$0]  %s6281_s3, 1536, %s54_s29, [#allocation8], %s5612_s8, %s5612_s8, %s5613_s30  }
  0x13   :  { %s5614_s19 = smov [#allocation10]   ;;  %s5615_s20 = smov [#allocation4]  }
  0x14   :  { %s85_s1 = sshll.u32 %s5614_s19, 4  ;;  %s39_s21 = sshll.u32 %s5615_s20, 4  ;;  %s86_s1 = int_to_ptr.vmem [resolvable:$true] %s85_s1  ;;  %s40_s21 = int_to_ptr.vmem [resolvable:$true] %s39_s21 }
  0x15   :  { %s5489_s22 = scalar_lea.vmem %s86_s1, 18432  ;;  %p5494_p6 = scmp.lt.s32.totalorder %s86_s1, %s86_s1 }
  0x16   :  { %p5490_p5 = scmp.ne.s32.totalorder %s86_s1, %s5489_s22  ;;  %p5495_p7 = scmp.lt.s32.totalorder %s5489_s22, %s5489_s22 }
  0x18   :  { %p5496_p8 = por %p5495_p7, %p5494_p6 }
  0x1a   :  { %p5497_p9 = pnand %p5496_p8, %p5490_p5 }
  0x1c   :  { %5500 = shalt.err (!%p5497_p9)
}
  0x1d   :  { %s5616_s23 = smov 192   ;;  %s5617_s24 = smov 12  }
  0x1e   :  { %91 = dma.hbm_to_vmem [thread:$0]  %s6287_s9, 18432, %s86_s1, [#allocation11], %s5616_s23, %s5616_s23, %s5617_s24  }
  0x1f   :  { %s5509_s3 = scalar_lea.vmem %s40_s21, 1536  ;;  %p5514_p11 = scmp.lt.s32.totalorder %s40_s21, %s40_s21 }
  0x20   :  { %p5510_p10 = scmp.ne.s32.totalorder %s40_s21, %s5509_s3  ;;  %p5515_p12 = scmp.lt.s32.totalorder %s5509_s3, %s5509_s3 }
  0x22   :  { %p5516_p13 = por %p5515_p12, %p5514_p11 }
  0x24   :  { %p5517_p0 = pnand %p5516_p13, %p5510_p10 }
  0x26   :  { %5520 = shalt.err (!%p5517_p0)
}
  0x27   :  { %s6299_s29 = sld [smem:[#allocation22_spill]]  ;;  %s5618_s0 = smov [#allocation9]  }
  0x28   :  { %s67_s12 = sshll.u32 %s5618_s0, 4  ;;  %s5619_s18 = smov [#allocation12]   ;;  %s68_s12 = int_to_ptr.vmem [resolvable:$true] %s67_s12 }
  0x29   :  { %s103_s19 = sshll.u32 %s5619_s18, 4  ;;  %s5529_s20 = scalar_lea.vmem %s68_s12, 18432  ;;  %s104_s19 = int_to_ptr.vmem [resolvable:$true] %s103_s19 }
  0x2a   :  { %p5530_p1 = scmp.ne.s32.totalorder %s68_s12, %s5529_s20  ;;  %p5534_p2 = scmp.lt.s32.totalorder %s68_s12, %s68_s12 }
  0x2b   :  { %p5535_p3 = scmp.lt.s32.totalorder %s5529_s20, %s5529_s20 }
  0x2d   :  { %45 = dma.hbm_to_vmem [thread:$0]  %s6299_s29, 1536, %s40_s21, [#allocation5], %s5612_s8, %s5612_s8, %s5613_s30  }
  0x2e   :  { %p5536_p4 = por %p5535_p3, %p5534_p2 }
  0x30   :  { %p5537_p5 = pnand %p5536_p4, %p5530_p1 }
  0x32   :  { %5540 = shalt.err (!%p5537_p5)
}
  0x33   :  { %73 = dma.hbm_to_vmem [thread:$0]  %s6283_s5, 18432, %s68_s12, [#allocation8], %s5616_s23, %s5616_s23, %s5617_s24  }
  0x34   :  { %s5549_s22 = scalar_lea.vmem %s104_s19, 12288  ;;  %p5554_p7 = scmp.lt.s32.totalorder %s104_s19, %s104_s19 }
  0x35   :  { %p5550_p6 = scmp.ne.s32.totalorder %s104_s19, %s5549_s22  ;;  %p5555_p8 = scmp.lt.s32.totalorder %s5549_s22, %s5549_s22 }
  0x37   :  { %p5556_p9 = por %p5555_p8, %p5554_p7 }
  0x39   :  { %p5557_p10 = pnand %p5556_p9, %p5550_p6 }
  0x3b   :  { %5560 = shalt.err (!%p5557_p10)
}
  0x3c   :  { %s5620_s8 = smov 128   ;;  %s5621_s30 = smov 8  }
  0x3d   :  { %109 = dma.hbm_to_vmem [thread:$0]  %s6290_s13, 12288, %s104_s19, [#allocation11], %s5620_s8, %s5620_s8, %s5621_s30  }
  0x3e   :  { %s5622_s26 = smov [#allocation13]  }
  0x3f   :  { %s115_s3 = sshll.u32 %s5622_s26, 4  ;;  %s116_s3 = int_to_ptr.vmem [resolvable:$true] %s115_s3 }
  0x40   :  { %s5569_s27 = scalar_lea.vmem %s116_s3, 12288  ;;  %p5574_p12 = scmp.lt.s32.totalorder %s116_s3, %s116_s3 }
  0x41   :  { %p5570_p11 = scmp.ne.s32.totalorder %s116_s3, %s5569_s27  ;;  %p5575_p13 = scmp.lt.s32.totalorder %s5569_s27, %s5569_s27 }
  0x43   :  { %p5576_p0 = por %p5575_p13, %p5574_p12 }
  0x45   :  { %p5577_p1 = pnand %p5576_p0, %p5570_p11 }
  0x47   :  { %5580 = shalt.err (!%p5577_p1)
}
  0x48   :  { %121 = dma.hbm_to_vmem [thread:$0]  %s6291_s14, 12288, %s116_s3, [#allocation14], %s5620_s8, %s5620_s8, %s5621_s30  }
  0x49   :  { %5601 = dma.done.wait [#allocation5], 1536  }
  0x4a   :  { %5602 = vsyncadd [#allocation5], 4294965760 }
  0x4b   :  { %5603 = dma.done.wait [#allocation8], 19968  }
  0x4c   :  { %5604 = vsyncadd [#allocation8], 4294947328 }
  0x4d   :  { %5605 = dma.done.wait [#allocation11], 30720  }
  0x4e   :  { %5606 = vsyncadd [#allocation11], 4294936576 }
  0x4f   :  { %5607 = dma.done.wait [#allocation14], 12288  }
  0x50   :  { %5608 = vsyncadd [#allocation14], 4294955008  ;;  %v4953_v2 = vld [vmem:[#allocation9 + $0xac] ss:$12 sps:$4 sm:$0xff]   ;;  %v4957_v4 = vld [vmem:[#allocation9 + $0xa8] ss:$12 sps:$4 sm:$0xff]  }
  0x51   :  { %v4955_v3 = vld [vmem:[#allocation9 + $0x22c] ss:$12 sps:$4 sm:$0xff]   ;;  %1198 = vmatprep.subr.bf16.mxu0 %v4953_v2  ;;  %v4958_v5 = vld [vmem:[#allocation9 + $0x228] ss:$12 sps:$4 sm:$0xff]   ;;  %v4963_v8 = vld [vmem:[#allocation9 + $0x90] ss:$12 sps:$4 sm:$0xff]  }
  0x52   :  { %1251 = vmatprep.subr.bf16.mxu1 %v4955_v3  ;;  %v4959_v6 = vld [vmem:[#allocation9 + $0x94] ss:$12 sps:$4 sm:$0xff]   ;;  %1199 = vmatpush1.bf16.msra.mxu0 %v4957_v4  ;;  %v4964_v9 = vld [vmem:[#allocation9 + $0x210] ss:$12 sps:$4 sm:$0xff]   ;;  %v4969_v12 = vld [vmem:[#allocation9 + $0x78] ss:$12 sps:$4 sm:$0xff]  }
  0x53   :  { %1252 = vmatpush1.bf16.msra.mxu1 %v4958_v5  ;;  %v4961_v7 = vld [vmem:[#allocation9 + $0x214] ss:$12 sps:$4 sm:$0xff]   ;;  %1200 = vmatprep.subr.bf16.mxu0 %v4959_v6  ;;  %v4965_v10 = vld [vmem:[#allocation9 + $0x7c] ss:$12 sps:$4 sm:$0xff]   ;;  %v4970_v13 = vld [vmem:[#allocation9 + $0x1f8] ss:$12 sps:$4 sm:$0xff]  }
  0x54   :  { %1253 = vmatprep.subr.bf16.mxu1 %v4961_v7  ;;  %v4967_v11 = vld [vmem:[#allocation9 + $0x1fc] ss:$12 sps:$4 sm:$0xff]   ;;  %v4971_v14 = vld [vmem:[#allocation9 + $0x64] ss:$12 sps:$4 sm:$0xff]   ;;  %v4975_v16 = vld [vmem:[#allocation9 + $0x60] ss:$12 sps:$4 sm:$0xff]  }
  0x55   :  { %v4973_v15 = vld [vmem:[#allocation9 + $0x1e4] ss:$12 sps:$4 sm:$0xff]   ;;  %v4976_v17 = vld [vmem:[#allocation9 + $0x1e0] ss:$12 sps:$4 sm:$0xff]   ;;  %v4981_v20 = vld [vmem:[#allocation9 + $0x48] ss:$12 sps:$4 sm:$0xff]  }
  0x56   :  { %1201 = vmatpush1.bf16.msra.mxu0 %v4963_v8  ;;  %v4977_v18 = vld [vmem:[#allocation9 + $0x4c] ss:$12 sps:$4 sm:$0xff]   ;;  %v4982_v21 = vld [vmem:[#allocation9 + $0x1c8] ss:$12 sps:$4 sm:$0xff]   ;;  %v4987_v24 = vld [vmem:[#allocation9 + $0x30] ss:$12 sps:$4 sm:$0xff]  }
  0x57   :  { %1254 = vmatpush1.bf16.msra.mxu1 %v4964_v9  ;;  %1202 = vmatprep.subr.bf16.mxu0 %v4965_v10  ;;  %v4979_v19 = vld [vmem:[#allocation9 + $0x1cc] ss:$12 sps:$4 sm:$0xff]   ;;  %v4983_v22 = vld [vmem:[#allocation9 + $0x34] ss:$12 sps:$4 sm:$0xff]   ;;  %v4988_v25 = vld [vmem:[#allocation9 + $0x1b0] ss:$12 sps:$4 sm:$0xff]  }
  0x58   :  { %1255 = vmatprep.subr.bf16.mxu1 %v4967_v11  ;;  %v4985_v23 = vld [vmem:[#allocation9 + $0x1b4] ss:$12 sps:$4 sm:$0xff]   ;;  %v4989_v26 = vld [vmem:[#allocation9 + $0x1c] ss:$12 sps:$4 sm:$0xff]   ;;  %v4993_v28 = vld [vmem:[#allocation9 + $0x18] ss:$12 sps:$4 sm:$0xff]  }
  0x59   :  { %v4991_v27 = vld [vmem:[#allocation9 + $0x19c] ss:$12 sps:$4 sm:$0xff]   ;;  %v4994_v29 = vld [vmem:[#allocation9 + $0x198] ss:$12 sps:$4 sm:$0xff]   ;;  %v4999_v32 = vld [vmem:[#allocation9] ss:$12 sps:$4 sm:$0xff]  }
  0x5a   :  { %1203 = vmatpush1.bf16.msra.mxu0 %v4969_v12  ;;  %v4995_v30 = vld [vmem:[#allocation9 + $0x4] ss:$12 sps:$4 sm:$0xff]   ;;  %v5000_v33 = vld [vmem:[#allocation9 + $0x180] ss:$12 sps:$4 sm:$0xff]   ;;  %v5005_v36 = vld [vmem:[#allocation9 + $0x168] ss:$12 sps:$4 sm:$0xff]  }
  0x5b   :  { %1256 = vmatpush1.bf16.msra.mxu1 %v4970_v13  ;;  %1204 = vmatprep.subr.bf16.mxu0 %v4971_v14  ;;  %v4997_v31 = vld [vmem:[#allocation9 + $0x184] ss:$12 sps:$4 sm:$0xff]   ;;  %v5001_v34 = vld [vmem:[#allocation9 + $0x16c] ss:$12 sps:$4 sm:$0xff]   ;;  %v5006_v37 = vld [vmem:[#allocation9 + $0x2e8] ss:$12 sps:$4 sm:$0xff]  }
  0x5c   :  { %1257 = vmatprep.subr.bf16.mxu1 %v4973_v15  ;;  %v5003_v35 = vld [vmem:[#allocation9 + $0x2ec] ss:$12 sps:$4 sm:$0xff]   ;;  %v5007_v38 = vld [vmem:[#allocation9 + $0x154] ss:$12 sps:$4 sm:$0xff]   ;;  %v5011_v40 = vld [vmem:[#allocation9 + $0x150] ss:$12 sps:$4 sm:$0xff]  }
  0x5d   :  { %v5009_v39 = vld [vmem:[#allocation9 + $0x2d4] ss:$12 sps:$4 sm:$0xff]   ;;  %v5012_v41 = vld [vmem:[#allocation9 + $0x2d0] ss:$12 sps:$4 sm:$0xff]   ;;  %v5017_v44 = vld [vmem:[#allocation9 + $0x138] ss:$12 sps:$4 sm:$0xff]  }
  0x5e   :  { %1205 = vmatpush1.bf16.msra.mxu0 %v4975_v16  ;;  %v5013_v42 = vld [vmem:[#allocation9 + $0x13c] ss:$12 sps:$4 sm:$0xff]   ;;  %v5018_v45 = vld [vmem:[#allocation9 + $0x2b8] ss:$12 sps:$4 sm:$0xff]   ;;  %v5023_v48 = vld [vmem:[#allocation9 + $0x120] ss:$12 sps:$4 sm:$0xff]  }
  0x5f   :  { %1258 = vmatpush1.bf16.msra.mxu1 %v4976_v17  ;;  %1206 = vmatprep.subr.bf16.mxu0 %v4977_v18  ;;  %v5015_v43 = vld [vmem:[#allocation9 + $0x2bc] ss:$12 sps:$4 sm:$0xff]   ;;  %v5019_v46 = vld [vmem:[#allocation9 + $0x124] ss:$12 sps:$4 sm:$0xff]   ;;  %v5024_v49 = vld [vmem:[#allocation9 + $0x2a0] ss:$12 sps:$4 sm:$0xff]  }
  0x60   :  { %1259 = vmatprep.subr.bf16.mxu1 %v4979_v19  ;;  %v5021_v47 = vld [vmem:[#allocation9 + $0x2a4] ss:$12 sps:$4 sm:$0xff]   ;;  %v146_v51 = vld [vmem:[#allocation4 + $0x18] sm:$0xff]  ;;  %v144_v52 = vld [vmem:[#allocation4 + $0x8] sm:$0xff]  ;;  %vm1627_vm2 = vcmask 7168   ;;  %s6300_s5 = sld [smem:[#allocation21_spill]] }
  0x61   :  { %v143_v50 = vld [vmem:[#allocation4] sm:$0xff]  ;;  %v5025_v54 = vld [vmem:[#allocation9 + $0x10c] ss:$12 sps:$4 sm:$0xff]   ;;  %v5029_v58 = vld [vmem:[#allocation9 + $0x108] ss:$12 sps:$4 sm:$0xff]   ;;  %vm3727_vm9 = vcmask 1041409  }
  0x62   :  { %1207 = vmatpush1.bf16.msra.mxu0 %v4981_v20  ;;  %v147_v53 = vld [vmem:[#allocation4 + $0x20] sm:$0xff]  ;;  %v5739_v55 = vcombine.high %v143_v50, %v146_v51  ;;  %v5027_v57 = vld [vmem:[#allocation9 + $0x28c] ss:$12 sps:$4 sm:$0xff]   ;;  %v5030_v59 = vld [vmem:[#allocation9 + $0x288] ss:$12 sps:$4 sm:$0xff]   ;;  %v5745_v15 = vcombine.low %v143_v50, %v146_v51  ;;  %vm4197_vm11 = vcmask 1041408  }
  0x63   :  { %1260 = vmatpush1.bf16.msra.mxu1 %v4982_v21  ;;  %1208 = vmatprep.subr.bf16.mxu0 %v4983_v22  ;;  %v5741_v56 = vcombine.high %v144_v52, %v147_v53  ;;  %v5031_v60 = vld [vmem:[#allocation9 + $0xf4] ss:$12 sps:$4 sm:$0xff]   ;;  %v5035_v62 = vld [vmem:[#allocation9 + $0xf0] ss:$12 sps:$4 sm:$0xff]   ;;  %v5041_v2 = vld [vmem:[#allocation9 + $0xd8] ss:$12 sps:$4 sm:$0xff]   ;;  %v5747_v16 = vcombine.low %v144_v52, %v147_v53 }
  0x64   :  { %1261 = vmatprep.subr.bf16.mxu1 %v4985_v23  ;;  %1230 = vmatprep.mubr.bf16.mxu0 %v5739_v55  ;;  %v5033_v61 = vld [vmem:[#allocation9 + $0x274] ss:$12 sps:$4 sm:$0xff]   ;;  %v5036_v63 = vld [vmem:[#allocation9 + $0x270] ss:$12 sps:$4 sm:$0xff]   ;;  %v5042_v3 = vld [vmem:[#allocation9 + $0x258] ss:$12 sps:$4 sm:$0xff]  }
  0x65   :  { %1283 = vmatprep.mubr.bf16.mxu1 %v5741_v56  ;;  %v5037_v0 = vld [vmem:[#allocation9 + $0xdc] ss:$12 sps:$4 sm:$0xff]   ;;  %v5043_v4 = vld [vmem:[#allocation9 + $0xc4] ss:$12 sps:$4 sm:$0xff]   ;;  %v5047_v6 = vld [vmem:[#allocation9 + $0xc0] ss:$12 sps:$4 sm:$0xff]  }
  0x66   :  { %1209 = vmatpush1.bf16.msra.mxu0 %v4987_v24  ;;  %v5039_v1 = vld [vmem:[#allocation9 + $0x25c] ss:$12 sps:$4 sm:$0xff]   ;;  %v5045_v5 = vld [vmem:[#allocation9 + $0x244] ss:$12 sps:$4 sm:$0xff]   ;;  %v5048_v7 = vld [vmem:[#allocation9 + $0x240] ss:$12 sps:$4 sm:$0xff]  }
  0x67   :  { %1262 = vmatpush1.bf16.msra.mxu1 %v4988_v25  ;;  %1210 = vmatprep.subr.bf16.mxu0 %v4989_v26  ;;  %v5055_v8 = vld [vmem:[#allocation9 + $0x3ac] ss:$12 sps:$4 sm:$0xff]   ;;  %v5056_v9 = vld [vmem:[#allocation9 + $0x170] ss:$12 sps:$4 sm:$0xff]   ;;  %v5053_v12 = vld [vmem:[#allocation9 + $0x3a8] ss:$12 sps:$4 sm:$0xff]  }
  0x68   :  { %1263 = vmatprep.subr.bf16.mxu1 %v4991_v27  ;;  %v149_v10 = vld [vmem:[#allocation4 + $0x30] sm:$0xff]  ;;  %v152_v11 = vld [vmem:[#allocation4 + $0x48] sm:$0xff]  ;;  %v150_v14 = vld [vmem:[#allocation4 + $0x38] sm:$0xff] }
  0x69   :  { %v5057_v13 = vld [vmem:[#allocation9 + $0xb0] ss:$12 sps:$4 sm:$0xff]   ;;  %v5060_v18 = vld [vmem:[#allocation9 + $0x394] ss:$12 sps:$4 sm:$0xff]   ;;  %v5061_v19 = vld [vmem:[#allocation9 + $0x158] ss:$12 sps:$4 sm:$0xff]   ;;  %v5749_v20 = vcombine.high %v149_v10, %v152_v11 }
  0x6a   :  { %1211 = vmatpush1.bf16.msra.mxu0 %v4993_v28  ;;  %v153_v17 = vld [vmem:[#allocation4 + $0x50] sm:$0xff]  ;;  %v5062_v23 = vld [vmem:[#allocation9 + $0x98] ss:$12 sps:$4 sm:$0xff]   ;;  %v5065_v24 = vld [vmem:[#allocation9 + $0x37c] ss:$12 sps:$4 sm:$0xff]   ;;  %v5757_v28 = vcombine.low %v149_v10, %v152_v11 }
  0x6b   :  { %1264 = vmatpush1.bf16.msra.mxu1 %v4994_v29  ;;  %1212 = vmatprep.subr.bf16.mxu0 %v4995_v30  ;;  %v5751_v21 = vcombine.high %v150_v14, %v153_v17  ;;  %v5058_v22 = vld [vmem:[#allocation9 + $0x390] ss:$12 sps:$4 sm:$0xff]   ;;  %v5066_v25 = vld [vmem:[#allocation9 + $0x140] ss:$12 sps:$4 sm:$0xff]   ;;  %v5063_v26 = vld [vmem:[#allocation9 + $0x378] ss:$12 sps:$4 sm:$0xff]   ;;  %v5759_v29 = vcombine.low %v150_v14, %v153_v17 }
  0x6c   :  { %1265 = vmatprep.subr.bf16.mxu1 %v4997_v31  ;;  %v5067_v27 = vld [vmem:[#allocation9 + $0x80] ss:$12 sps:$4 sm:$0xff]   ;;  %v5070_v30 = vld [vmem:[#allocation9 + $0x364] ss:$12 sps:$4 sm:$0xff]   ;;  %v5071_v31 = vld [vmem:[#allocation9 + $0x128] ss:$12 sps:$4 sm:$0xff]  }
  0x6d   :  { %v5099_v50 = vld [vmem:[#allocation9 + $0x46c] ss:$12 sps:$4 sm:$0xff]   ;;  %v5100_v51 = vld [vmem:[#allocation9 + $0x2f0] ss:$12 sps:$4 sm:$0xff]   ;;  %v5097_v52 = vld [vmem:[#allocation9 + $0x468] ss:$12 sps:$4 sm:$0xff]  }
  0x6e   :  { %1213 = vmatpush1.bf16.msra.mxu0 %v4999_v32  ;;  %v5068_v32 = vld [vmem:[#allocation9 + $0x360] ss:$12 sps:$4 sm:$0xff]   ;;  %v5101_v53 = vld [vmem:[#allocation9 + $0x230] ss:$12 sps:$4 sm:$0xff]   ;;  %v5125_v11 = vld [vmem:[#allocation9 + $0x278] ss:$12 sps:$4 sm:$0xff]  }
  0x6f   :  { %1266 = vmatpush1.bf16.msra.mxu1 %v5000_v33  ;;  %1214 = vmatprep.subr.bf16.mxu0 %v5001_v34  ;;  %v5072_v33 = vld [vmem:[#allocation9 + $0x68] ss:$12 sps:$4 sm:$0xff]   ;;  %v5075_v34 = vld [vmem:[#allocation9 + $0x34c] ss:$12 sps:$4 sm:$0xff]  }
  0x70   :  { %1267 = vmatprep.subr.bf16.mxu1 %v5003_v35  ;;  %v5076_v35 = vld [vmem:[#allocation9 + $0x110] ss:$12 sps:$4 sm:$0xff]   ;;  %v5124_v10 = vld [vmem:[#allocation9 + $0x3f4] ss:$12 sps:$4 sm:$0xff]   ;;  %v5127_v17 = vld [vmem:[#allocation9 + $0x3d8] ss:$12 sps:$4 sm:$0xff]  }
  0x71   :  { %v5129_v14 = vld [vmem:[#allocation9 + $0x3dc] ss:$12 sps:$4 sm:$0xff]  }
  0x72   :  { %1215 = vmatpush2.bf16.msra.mxu0 %v5005_v36  ;;  %v5073_v36 = vld [vmem:[#allocation9 + $0x348] ss:$12 sps:$4 sm:$0xff]  }
  0x73   :  { %1268 = vmatpush2.bf16.msra.mxu1 %v5006_v37  ;;  %1216 = vmatprep.subr.bf16.mxu0 %v5007_v38  ;;  %v5077_v37 = vld [vmem:[#allocation9 + $0x50] ss:$12 sps:$4 sm:$0xff]   ;;  %v5083_v38 = vld [vmem:[#allocation9 + $0x334] ss:$12 sps:$4 sm:$0xff]  }
  0x74   :  { %1269 = vmatprep.subr.bf16.mxu1 %v5009_v39  ;;  %v5084_v39 = vld [vmem:[#allocation9 + $0xf8] ss:$12 sps:$4 sm:$0xff]  }
  0x76   :  { %1217 = vmatpush2.bf16.msra.mxu0 %v5011_v40  ;;  %v5081_v40 = vld [vmem:[#allocation9 + $0x330] ss:$12 sps:$4 sm:$0xff]  }
  0x77   :  { %1270 = vmatpush2.bf16.msra.mxu1 %v5012_v41  ;;  %1218 = vmatprep.subr.bf16.mxu0 %v5013_v42  ;;  %v5086_v41 = vld [vmem:[#allocation9 + $0x38] ss:$12 sps:$4 sm:$0xff]   ;;  %v5089_v42 = vld [vmem:[#allocation9 + $0x31c] ss:$12 sps:$4 sm:$0xff]  }
  0x78   :  { %1271 = vmatprep.subr.bf16.mxu1 %v5015_v43  ;;  %v5090_v43 = vld [vmem:[#allocation9 + $0xe0] ss:$12 sps:$4 sm:$0xff]  }
  0x7a   :  { %1219 = vmatpush2.bf16.msra.mxu0 %v5017_v44  ;;  %v5087_v44 = vld [vmem:[#allocation9 + $0x318] ss:$12 sps:$4 sm:$0xff]  }
  0x7b   :  { %1272 = vmatpush2.bf16.msra.mxu1 %v5018_v45  ;;  %1220 = vmatprep.subr.bf16.mxu0 %v5019_v46  ;;  %v5091_v45 = vld [vmem:[#allocation9 + $0x20] ss:$12 sps:$4 sm:$0xff]   ;;  %v5094_v46 = vld [vmem:[#allocation9 + $0x304] ss:$12 sps:$4 sm:$0xff]  }
  0x7c   :  { %1273 = vmatprep.subr.bf16.mxu1 %v5021_v47  ;;  %v5095_v47 = vld [vmem:[#allocation9 + $0xc8] ss:$12 sps:$4 sm:$0xff]  }
  0x7e   :  { %1221 = vmatpush2.bf16.msra.mxu0 %v5023_v48  ;;  %v5092_v48 = vld [vmem:[#allocation9 + $0x300] ss:$12 sps:$4 sm:$0xff]  }
  0x7f   :  { %1274 = vmatpush2.bf16.msra.mxu1 %v5024_v49  ;;  %1222 = vmatprep.subr.bf16.mxu0 %v5025_v54  ;;  %v5096_v49 = vld [vmem:[#allocation9 + $0x8] ss:$12 sps:$4 sm:$0xff]  }
  0x80   :  { %1275 = vmatprep.subr.bf16.mxu1 %v5027_v57  ;;  %v5104_v54 = vld [vmem:[#allocation9 + $0x454] ss:$12 sps:$4 sm:$0xff]   ;;  %v5102_v57 = vld [vmem:[#allocation9 + $0x450] ss:$12 sps:$4 sm:$0xff]  }
  0x82   :  { %1223 = vmatpush2.bf16.msra.mxu0 %v5029_v58  ;;  %v5764_v58 = vld [vmem:[#allocation4 + $0x10] sm:$0xff] }
  0x83   :  { %1276 = vmatpush2.bf16.msra.mxu1 %v5030_v59  ;;  %1224 = vmatprep.subr.bf16.mxu0 %v5031_v60  ;;  %v5767_v59 = vld [vmem:[#allocation4 + $0x28] sm:$0xff]  ;;  %v5106_v60 = vld [vmem:[#allocation9 + $0x218] ss:$12 sps:$4 sm:$0xff]  }
  0x84   :  { %1277 = vmatprep.subr.bf16.mxu1 %v5033_v61  ;;  %v5771_v61 = vcombine.high %v5764_v58, %v5767_v59 }
  0x86   :  { %1225 = vmatpush2.bf16.msra.mxu0 %v5035_v62  ;;  %v5109_v62 = vld [vmem:[#allocation9 + $0x43c] ss:$12 sps:$4 sm:$0xff]  }
  0x87   :  { %1278 = vmatpush2.bf16.msra.mxu1 %v5036_v63  ;;  %1226 = vmatprep.subr.bf16.mxu0 %v5037_v0  ;;  %v5110_v63 = vld [vmem:[#allocation9 + $0x2c0] ss:$12 sps:$4 sm:$0xff]   ;;  %v5107_v0 = vld [vmem:[#allocation9 + $0x438] ss:$12 sps:$4 sm:$0xff]  }
  0x88   :  { %1279 = vmatprep.subr.bf16.mxu1 %v5039_v1  ;;  %v5111_v1 = vld [vmem:[#allocation9 + $0x200] ss:$12 sps:$4 sm:$0xff]  }
  0x8a   :  { %1227 = vmatpush2.bf16.msra.mxu0 %v5041_v2  ;;  %v5114_v2 = vld [vmem:[#allocation9 + $0x424] ss:$12 sps:$4 sm:$0xff]  }
  0x8b   :  { %1280 = vmatpush2.bf16.msra.mxu1 %v5042_v3  ;;  %1228 = vmatprep.subr.bf16.mxu0 %v5043_v4  ;;  %v5115_v3 = vld [vmem:[#allocation9 + $0x2a8] ss:$12 sps:$4 sm:$0xff]   ;;  %v5112_v4 = vld [vmem:[#allocation9 + $0x420] ss:$12 sps:$4 sm:$0xff]  }
  0x8c   :  { %1281 = vmatprep.subr.bf16.mxu1 %v5045_v5  ;;  %v5116_v5 = vld [vmem:[#allocation9 + $0x1e8] ss:$12 sps:$4 sm:$0xff]  }
  0x8e   :  { %1229 = vmatpush2.bf16.msra.mxu0 %v5047_v6  ;;  %v5119_v6 = vld [vmem:[#allocation9 + $0x40c] ss:$12 sps:$4 sm:$0xff]  }
  0x8f   :  { %1282 = vmatpush2.bf16.msra.mxu1 %v5048_v7  ;;  %1304 = vmatprep.subr.bf16.mxu0 %v5055_v8  ;;  %v5120_v7 = vld [vmem:[#allocation9 + $0x290] ss:$12 sps:$4 sm:$0xff]   ;;  %v5117_v8 = vld [vmem:[#allocation9 + $0x408] ss:$12 sps:$4 sm:$0xff]  }
  0x90   :  { %4559 = vmatprep.subr.bf16.mxu1 %v5056_v9  ;;  %v5121_v9 = vld [vmem:[#allocation9 + $0x1d0] ss:$12 sps:$4 sm:$0xff]  }
  0x91   :  { %1231 = vmatmul.mubr.bf16.vlgmr.msra.gmra.mxu0 %v5745_v15 }
  0x92   :  { %1284 = vmatmul.mubr.bf16.vlgmr.msra.gmra.mxu1 %v5747_v16  ;;  %1305 = vmatpush1.bf16.msra.mxu0 %v5053_v12  ;;  %v5122_v12 = vld [vmem:[#allocation9 + $0x3f0] ss:$12 sps:$4 sm:$0xff]  }
  0x93   :  { %4560 = vmatpush3.bf16.msra.mxu1 %v5057_v13  ;;  %1306 = vmatprep.subr.bf16.mxu0 %v5060_v18  ;;  %v5126_v13 = vld [vmem:[#allocation9 + $0x1b8] ss:$12 sps:$4 sm:$0xff]   ;;  %v5131_v18 = vld [vmem:[#allocation9 + $0x1a0] ss:$12 sps:$4 sm:$0xff]  }
  0x94   :  { %4561 = vmatprep.subr.bf16.mxu1 %v5061_v19  ;;  %1240 = vmatprep.mubr.bf16.mxu0 %v5749_v20  ;;  %v5135_v19 = vld [vmem:[#allocation9 + $0x248] ss:$12 sps:$4 sm:$0xff]  }
  0x95   :  { %1293 = vmatprep.mubr.bf16.mxu1 %v5751_v21 }
  0x96   :  { %1307 = vmatpush1.bf16.msra.mxu0 %v5058_v22  ;;  %v5136_v22 = vld [vmem:[#allocation9 + $0x188] ss:$12 sps:$4 sm:$0xff]  }
  0x97   :  { %4562 = vmatpush3.bf16.msra.mxu1 %v5062_v23  ;;  %1308 = vmatprep.subr.bf16.mxu0 %v5065_v24  ;;  %v5139_v23 = vld [vmem:[#allocation9 + $0x470] ss:$12 sps:$4 sm:$0xff]   ;;  %v5142_v24 = vld [vmem:[#allocation10 + $0xac] ss:$12 sps:$4 sm:$0xff]  }
  0x98   :  { %4563 = vmatprep.subr.bf16.mxu1 %v5066_v25  ;;  %v5140_v25 = vld [vmem:[#allocation10 + $0xa8] ss:$12 sps:$4 sm:$0xff]  }
  0x99   :  { %1241 = vmatmul.mubr.bf16.gmra.mxu0 %v5757_v28 }
  0x9a   :  { %1294 = vmatmul.mubr.bf16.gmra.mxu1 %v5759_v29  ;;  %1309 = vmatpush1.bf16.msra.mxu0 %v5063_v26  ;;  %v5143_v26 = vld [vmem:[#allocation9 + $0x3b0] ss:$12 sps:$4 sm:$0xff]  }
  0x9b   :  { %4564 = vmatpush3.bf16.msra.mxu1 %v5067_v27  ;;  %1310 = vmatprep.subr.bf16.mxu0 %v5070_v30  ;;  %v5779_v27 = vcombine.low %v5764_v58, %v5767_v59  ;;  %v154_v30 = vld [vmem:[#allocation4 + $0x58] sm:$0xff]  ;;  %v5176_v58 = vld [vmem:[#allocation9 + $0x3c8] ss:$12 sps:$4 sm:$0xff]   ;;  %v5179_v59 = vld [vmem:[#allocation10 + $0x4] ss:$12 sps:$4 sm:$0xff]  }
  0x9c   :  { %4565 = vmatprep.subr.bf16.mxu1 %v5071_v31  ;;  %1389 = vmatprep.mubr.bf16.mxu1 %v5739_v55  ;;  %v5105_v55 = vld [vmem:[#allocation9 + $0x2d8] ss:$12 sps:$4 sm:$0xff]  }
  0x9d   :  { %1336 = vmatprep.mubr.bf16.mxu0 %v5771_v61  ;;  %v5144_v31 = vld [vmem:[#allocation9 + $0x458] ss:$12 sps:$4 sm:$0xff]  }
  0x9e   :  { %1311 = vmatpush1.bf16.msra.mxu0 %v5068_v32  ;;  %v5147_v32 = vld [vmem:[#allocation10 + $0x94] ss:$12 sps:$4 sm:$0xff]  }
  0x9f   :  { %4566 = vmatpush3.bf16.msra.mxu1 %v5072_v33  ;;  %1312 = vmatprep.subr.bf16.mxu0 %v5075_v34  ;;  %v5145_v34 = vld [vmem:[#allocation10 + $0x90] ss:$12 sps:$4 sm:$0xff]  }
  0xa0   :  { %4567 = vmatprep.subr.bf16.mxu1 %v5076_v35  ;;  %v5148_v35 = vld [vmem:[#allocation9 + $0x398] ss:$12 sps:$4 sm:$0xff]  }
  0xa2   :  { %1313 = vmatpush1.bf16.msra.mxu0 %v5073_v36  ;;  %v5151_v36 = vld [vmem:[#allocation9 + $0x440] ss:$12 sps:$4 sm:$0xff]  }
  0xa3   :  { %4568 = vmatpush3.bf16.msra.mxu1 %v5077_v37  ;;  %1314 = vmatprep.subr.bf16.mxu0 %v5083_v38  ;;  %v5154_v37 = vld [vmem:[#allocation10 + $0x7c] ss:$12 sps:$4 sm:$0xff]  }
  0xa4   :  { %4569 = vmatprep.subr.bf16.mxu1 %v5084_v39  ;;  %v5152_v39 = vld [vmem:[#allocation10 + $0x78] ss:$12 sps:$4 sm:$0xff]  }
  0xa6   :  { %1315 = vmatpush1.bf16.msra.mxu0 %v5081_v40  ;;  %v5155_v40 = vld [vmem:[#allocation9 + $0x380] ss:$12 sps:$4 sm:$0xff]  }
  0xa7   :  { %4570 = vmatpush3.bf16.msra.mxu1 %v5086_v41  ;;  %1316 = vmatprep.subr.bf16.mxu0 %v5089_v42  ;;  %v5156_v41 = vld [vmem:[#allocation9 + $0x428] ss:$12 sps:$4 sm:$0xff]   ;;  %v5157_v42 = vld [vmem:[#allocation10 + $0x60] ss:$12 sps:$4 sm:$0xff]  }
  0xa8   :  { %4571 = vmatprep.subr.bf16.mxu1 %v5090_v43  ;;  %v5160_v43 = vld [vmem:[#allocation9 + $0x368] ss:$12 sps:$4 sm:$0xff]  }
  0xaa   :  { %1317 = vmatpush1.bf16.msra.mxu0 %v5087_v44  ;;  %v5161_v44 = vld [vmem:[#allocation9 + $0x410] ss:$12 sps:$4 sm:$0xff]  }
  0xab   :  { %4572 = vmatpush3.bf16.msra.mxu1 %v5091_v45  ;;  %1318 = vmatprep.subr.bf16.mxu0 %v5094_v46  ;;  %v5162_v45 = vld [vmem:[#allocation10 + $0x48] ss:$12 sps:$4 sm:$0xff]   ;;  %v5165_v46 = vld [vmem:[#allocation9 + $0x350] ss:$12 sps:$4 sm:$0xff]  }
  0xac   :  { %4573 = vmatprep.subr.bf16.mxu1 %v5095_v47  ;;  %v5166_v47 = vld [vmem:[#allocation9 + $0x3f8] ss:$12 sps:$4 sm:$0xff]  }
  0xae   :  { %1319 = vmatpush1.bf16.msra.mxu0 %v5092_v48  ;;  %v5169_v48 = vld [vmem:[#allocation10 + $0x34] ss:$12 sps:$4 sm:$0xff]  }
  0xaf   :  { %4574 = vmatpush3.bf16.msra.mxu1 %v5096_v49  ;;  %1320 = vmatprep.subr.bf16.mxu0 %v5099_v50  ;;  %v5167_v49 = vld [vmem:[#allocation10 + $0x30] ss:$12 sps:$4 sm:$0xff]   ;;  %v5792_v50 = vld [vmem:[#allocation7] sm:$0xff] }
  0xb0   :  { %4587 = vmatprep.subr.bf16.mxu1 %v5100_v51  ;;  %v5794_v51 = vld [vmem:[#allocation7 + $0x18] sm:$0xff] }
  0xb2   :  { %1390 = vmatmul.mubr.bf16.vlgmr.msra.gmra.mxu1 %v5745_v15  ;;  %1321 = vmatpush2.bf16.msra.mxu0 %v5097_v52  ;;  %v5130_v15 = vld [vmem:[#allocation9 + $0x260] ss:$12 sps:$4 sm:$0xff]  }
  0xb3   :  { %4588 = vmatpush3.bf16.msra.mxu1 %v5101_v53  ;;  %1322 = vmatprep.subr.bf16.mxu0 %v5104_v54  ;;  %v5171_v52 = vld [vmem:[#allocation9 + $0x3e0] ss:$12 sps:$4 sm:$0xff]   ;;  %v5174_v53 = vld [vmem:[#allocation10 + $0x1c] ss:$12 sps:$4 sm:$0xff]   ;;  %v5798_v54 = vcombine.high %v5792_v50, %v5794_v51 }
  0xb4   :  { %4589 = vmatprep.subr.bf16.mxu1 %v5105_v55  ;;  %1397 = vmatprep.mubr.bf16.mxu1 %v5749_v20  ;;  %v5132_v20 = vld [vmem:[#allocation9 + $0x3c0] ss:$12 sps:$4 sm:$0xff]   ;;  %v5172_v55 = vld [vmem:[#allocation10 + $0x18] ss:$12 sps:$4 sm:$0xff]  }
  0xb6   :  { %1323 = vmatpush2.bf16.msra.mxu0 %v5102_v57  ;;  %v5175_v57 = vld [vmem:[#allocation9 + $0x320] ss:$12 sps:$4 sm:$0xff]  }
  0xb7   :  { %4590 = vmatpush3.bf16.msra.mxu1 %v5106_v60  ;;  %1324 = vmatprep.subr.bf16.mxu0 %v5109_v62  ;;  %v5177_v60 = vld [vmem:[#allocation10] ss:$12 sps:$4 sm:$0xff]  }
  0xb8   :  { %4591 = vmatprep.subr.bf16.mxu1 %v5110_v63  ;;  %v5183_v62 = vld [vmem:[#allocation10 + $0x16c] ss:$12 sps:$4 sm:$0xff]  }
  0xb9   :  { %v5186_v63 = vld [vmem:[#allocation10 + $0x22c] ss:$12 sps:$4 sm:$0xff]  }
  0xba   :  { %1398 = vmatmul.mubr.bf16.gmra.mxu1 %v5757_v28  ;;  %1325 = vmatpush2.bf16.msra.mxu0 %v5107_v0  ;;  %v151_v28 = vld [vmem:[#allocation4 + $0x40] sm:$0xff]  ;;  %v5181_v0 = vld [vmem:[#allocation10 + $0x168] ss:$12 sps:$4 sm:$0xff]  }
  0xbb   :  { %4592 = vmatpush3.bf16.msra.mxu1 %v5111_v1  ;;  %1326 = vmatprep.subr.bf16.mxu0 %v5114_v2  ;;  %v5781_v33 = vcombine.high %v151_v28, %v154_v30  ;;  %v5787_v38 = vcombine.low %v151_v28, %v154_v30  ;;  %v5184_v1 = vld [vmem:[#allocation10 + $0x228] ss:$12 sps:$4 sm:$0xff]   ;;  %v5217_v28 = vld [vmem:[#allocation10 + $0xd8] ss:$12 sps:$4 sm:$0xff]  }
  0xbc   :  { %4593 = vmatprep.subr.bf16.mxu1 %v5115_v3  ;;  %1438 = vmatprep.mubr.bf16.mxu1 %v5741_v56  ;;  %v5134_v56 = vld [vmem:[#allocation9 + $0x3c4] ss:$12 sps:$4 sm:$0xff]   ;;  %v5189_v2 = vld [vmem:[#allocation10 + $0x154] ss:$12 sps:$4 sm:$0xff]  }
  0xbd   :  { %v5192_v3 = vld [vmem:[#allocation10 + $0x214] ss:$12 sps:$4 sm:$0xff]   ;;  %v5220_v30 = vld [vmem:[#allocation10 + $0x198] ss:$12 sps:$4 sm:$0xff]  }
  0xbe   :  { %1327 = vmatpush2.bf16.msra.mxu0 %v5112_v4  ;;  %v5187_v4 = vld [vmem:[#allocation10 + $0x150] ss:$12 sps:$4 sm:$0xff]  }
  0xbf   :  { %4594 = vmatpush3.bf16.msra.mxu1 %v5116_v5  ;;  %1328 = vmatprep.subr.bf16.mxu0 %v5119_v6  ;;  %v5190_v5 = vld [vmem:[#allocation10 + $0x210] ss:$12 sps:$4 sm:$0xff]  }
  0xc0   :  { %4595 = vmatprep.subr.bf16.mxu1 %v5120_v7  ;;  %v5195_v6 = vld [vmem:[#allocation10 + $0x13c] ss:$12 sps:$4 sm:$0xff]  }
  0xc1   :  { %v5198_v7 = vld [vmem:[#allocation10 + $0x1fc] ss:$12 sps:$4 sm:$0xff]  }
  0xc2   :  { %1329 = vmatpush2.bf16.msra.mxu0 %v5117_v8  ;;  %v5193_v8 = vld [vmem:[#allocation10 + $0x138] ss:$12 sps:$4 sm:$0xff]  }
  0xc3   :  { %4596 = vmatpush3.bf16.msra.mxu1 %v5121_v9  ;;  %1330 = vmatprep.subr.bf16.mxu0 %v5124_v10  ;;  %v5196_v9 = vld [vmem:[#allocation10 + $0x1f8] ss:$12 sps:$4 sm:$0xff]  }
  0xc4   :  { %4597 = vmatprep.subr.bf16.mxu1 %v5125_v11  ;;  %v5201_v10 = vld [vmem:[#allocation10 + $0x124] ss:$12 sps:$4 sm:$0xff]  }
  0xc5   :  { %v5204_v11 = vld [vmem:[#allocation10 + $0x1e4] ss:$12 sps:$4 sm:$0xff]  }
  0xc6   :  { %1331 = vmatpush2.bf16.msra.mxu0 %v5122_v12  ;;  %v5803_v12 = vld [vmem:[#allocation7 + $0x8] sm:$0xff] }
  0xc7   :  { %4598 = vmatpush3.bf16.msra.mxu1 %v5126_v13  ;;  %1332 = vmatprep.subr.bf16.mxu0 %v5129_v14  ;;  %v5805_v13 = vld [vmem:[#allocation7 + $0x20] sm:$0xff] }
  0xc8   :  { %4599 = vmatprep.subr.bf16.mxu1 %v5130_v15  ;;  %v5199_v14 = vld [vmem:[#allocation10 + $0x120] ss:$12 sps:$4 sm:$0xff]  }
  0xc9   :  { %v5202_v15 = vld [vmem:[#allocation10 + $0x1e0] ss:$12 sps:$4 sm:$0xff]  }
  0xca   :  { %1333 = vmatpush2.bf16.msra.mxu0 %v5127_v17  ;;  %v5810_v17 = vcombine.high %v5803_v12, %v5805_v13 }
  0xcb   :  { %4600 = vmatpush3.bf16.msra.mxu1 %v5131_v18  ;;  %1334 = vmatprep.subr.bf16.mxu0 %v5134_v56  ;;  %v5207_v18 = vld [vmem:[#allocation10 + $0x10c] ss:$12 sps:$4 sm:$0xff]  }
  0xcc   :  { %4601 = vmatprep.subr.bf16.mxu1 %v5135_v19  ;;  %v5210_v56 = vld [vmem:[#allocation10 + $0x1cc] ss:$12 sps:$4 sm:$0xff]   ;;  %v5205_v19 = vld [vmem:[#allocation10 + $0x108] ss:$12 sps:$4 sm:$0xff]  }
  0xce   :  { %1335 = vmatpush2.bf16.msra.mxu0 %v5132_v20  ;;  %v5208_v20 = vld [vmem:[#allocation10 + $0x1c8] ss:$12 sps:$4 sm:$0xff]  }
  0xcf   :  { %4602 = vmatpush3.bf16.msra.mxu1 %v5136_v22  ;;  %4615 = vmatprep.subr.bf16.mxu0 %v5139_v23  ;;  %v5213_v22 = vld [vmem:[#allocation10 + $0xf4] ss:$12 sps:$4 sm:$0xff]  }
  0xd0   :  { %2889 = vmatprep.subr.bf16.mxu1 %v5142_v24  ;;  %v5216_v23 = vld [vmem:[#allocation10 + $0x1b4] ss:$12 sps:$4 sm:$0xff]   ;;  %v5211_v24 = vld [vmem:[#allocation10 + $0xf0] ss:$12 sps:$4 sm:$0xff]  }
  0xd1   :  { %1337 = vmatmul.mubr.bf16.vlgmr.msra.gmra.mxu0 %v5779_v27 }
  0xd2   :  { %1439 = vmatmul.mubr.bf16.vlgmr.msra.gmra.mxu1 %v5747_v16  ;;  %4616 = vmatpush3.bf16.msra.mxu0 %v5143_v26  ;;  %v5159_v16 = vld [vmem:[#allocation10 + $0x64] ss:$12 sps:$4 sm:$0xff]   ;;  %v5219_v26 = vld [vmem:[#allocation10 + $0xdc] ss:$12 sps:$4 sm:$0xff]  }
  0xd3   :  { %2890 = vmatpush1.bf16.msra.mxu1 %v5140_v25  ;;  %4617 = vmatprep.subr.bf16.mxu0 %v5144_v31  ;;  %v5214_v25 = vld [vmem:[#allocation10 + $0x1b0] ss:$12 sps:$4 sm:$0xff]  }
  0xd4   :  { %2891 = vmatprep.subr.bf16.mxu1 %v5147_v32  ;;  %1346 = vmatprep.mubr.bf16.mxu0 %v5781_v33  ;;  %v5225_v31 = vld [vmem:[#allocation10 + $0xc4] ss:$12 sps:$4 sm:$0xff]  }
  0xd5   :  { %1446 = vmatprep.mubr.bf16.mxu1 %v5751_v21  ;;  %v5164_v21 = vld [vmem:[#allocation10 + $0x4c] ss:$12 sps:$4 sm:$0xff]   ;;  %v5228_v32 = vld [vmem:[#allocation10 + $0x184] ss:$12 sps:$4 sm:$0xff]  }
  0xd6   :  { %4618 = vmatpush3.bf16.msra.mxu0 %v5148_v35  ;;  %v5233_v35 = vld [vmem:[#allocation10 + $0x2ec] ss:$12 sps:$4 sm:$0xff]  }
  0xd7   :  { %2892 = vmatpush1.bf16.msra.mxu1 %v5145_v34  ;;  %4619 = vmatprep.subr.bf16.mxu0 %v5151_v36  ;;  %v5226_v34 = vld [vmem:[#allocation10 + $0x180] ss:$12 sps:$4 sm:$0xff]  }
  0xd8   :  { %2893 = vmatprep.subr.bf16.mxu1 %v5154_v37  ;;  %v5236_v36 = vld [vmem:[#allocation10 + $0x3ac] ss:$12 sps:$4 sm:$0xff]   ;;  %v5231_v37 = vld [vmem:[#allocation10 + $0x2e8] ss:$12 sps:$4 sm:$0xff]  }
  0xd9   :  { %1347 = vmatmul.mubr.bf16.gmra.mxu0 %v5787_v38 }
  0xda   :  { %1447 = vmatmul.mubr.bf16.gmra.mxu1 %v5759_v29  ;;  %4620 = vmatpush3.bf16.msra.mxu0 %v5155_v40  ;;  %v5170_v29 = vld [vmem:[#allocation9 + $0x338] ss:$12 sps:$4 sm:$0xff]   ;;  %v5815_v40 = vcombine.low %v5792_v50, %v5794_v51  ;;  %v5825_v50 = vld [vmem:[#allocation7 + $0x28] sm:$0xff] }
  0xdb   :  { %2894 = vmatpush1.bf16.msra.mxu1 %v5152_v39  ;;  %4621 = vmatprep.subr.bf16.mxu0 %v5156_v41  ;;  %v1840_v39 = vld [vmem:[#allocation7 + $0x30] sm:$0xff]  ;;  %v1843_v41 = vld [vmem:[#allocation7 + $0x48] sm:$0xff] }
  0xdc   :  { %2895 = vmatprep.subr.bf16.mxu1 %v5159_v16  ;;  %1487 = vmatprep.mubr.bf16.mxu0 %v5771_v61  ;;  %v5180_v61 = vld [vmem:[#allocation9 + $0x308] ss:$12 sps:$4 sm:$0xff]   ;;  %v5251_v51 = vld [vmem:[#allocation10 + $0x2a4] ss:$12 sps:$4 sm:$0xff]  }
  0xdd   :  { %2921 = vmatprep.mubr.bf16.mxu1 %v5798_v54  ;;  %v5239_v16 = vld [vmem:[#allocation10 + $0x2d4] ss:$12 sps:$4 sm:$0xff]  }
  0xde   :  { %4622 = vmatpush3.bf16.msra.mxu0 %v5160_v43  ;;  %v5817_v43 = vcombine.high %v1840_v39, %v1843_v41 }
  0xdf   :  { %2896 = vmatpush1.bf16.msra.mxu1 %v5157_v42  ;;  %4623 = vmatprep.subr.bf16.mxu0 %v5161_v44  ;;  %v5242_v42 = vld [vmem:[#allocation10 + $0x394] ss:$12 sps:$4 sm:$0xff]   ;;  %v5237_v44 = vld [vmem:[#allocation10 + $0x2d0] ss:$12 sps:$4 sm:$0xff]  }
  0xe0   :  { %2897 = vmatprep.subr.bf16.mxu1 %v5164_v21  ;;  %v5240_v21 = vld [vmem:[#allocation10 + $0x390] ss:$12 sps:$4 sm:$0xff]  }
  0xe2   :  { %4624 = vmatpush3.bf16.msra.mxu0 %v5165_v46  ;;  %v5248_v46 = vld [vmem:[#allocation10 + $0x37c] ss:$12 sps:$4 sm:$0xff]  }
  0xe3   :  { %2898 = vmatpush1.bf16.msra.mxu1 %v5162_v45  ;;  %4625 = vmatprep.subr.bf16.mxu0 %v5166_v47  ;;  %v5245_v45 = vld [vmem:[#allocation10 + $0x2bc] ss:$12 sps:$4 sm:$0xff]   ;;  %v5243_v47 = vld [vmem:[#allocation10 + $0x2b8] ss:$12 sps:$4 sm:$0xff]  }
  0xe4   :  { %2899 = vmatprep.subr.bf16.mxu1 %v5169_v48  ;;  %v5246_v48 = vld [vmem:[#allocation10 + $0x378] ss:$12 sps:$4 sm:$0xff]  }
  0xe6   :  { %4626 = vmatpush3.bf16.msra.mxu0 %v5170_v29  ;;  %v5823_v29 = vld [vmem:[#allocation7 + $0x10] sm:$0xff] }
  0xe7   :  { %2900 = vmatpush1.bf16.msra.mxu1 %v5167_v49  ;;  %4627 = vmatprep.subr.bf16.mxu0 %v5171_v52  ;;  %v5821_v49 = vcombine.low %v1840_v39, %v1843_v41  ;;  %v5254_v52 = vld [vmem:[#allocation10 + $0x364] ss:$12 sps:$4 sm:$0xff]  }
  0xe8   :  { %2901 = vmatprep.subr.bf16.mxu1 %v5174_v53  ;;  %v5249_v53 = vld [vmem:[#allocation10 + $0x2a0] ss:$12 sps:$4 sm:$0xff]   ;;  %v5313_v39 = vld [vmem:[#allocation10 + $0xf8] ss:$12 sps:$4 sm:$0xff]   ;;  %v5310_v41 = vld [vmem:[#allocation10 + $0x3f0] ss:$12 sps:$4 sm:$0xff]  }
  0xea   :  { %4628 = vmatpush3.bf16.msra.mxu0 %v5175_v57  ;;  %v5252_v57 = vld [vmem:[#allocation10 + $0x360] ss:$12 sps:$4 sm:$0xff]  }
  0xeb   :  { %2902 = vmatpush1.bf16.msra.mxu1 %v5172_v55  ;;  %4629 = vmatprep.subr.bf16.mxu0 %v5176_v58  ;;  %v5829_v55 = vcombine.high %v5823_v29, %v5825_v50  ;;  %v5257_v58 = vld [vmem:[#allocation10 + $0x28c] ss:$12 sps:$4 sm:$0xff]  }
  0xec   :  { %2903 = vmatprep.subr.bf16.mxu1 %v5179_v59  ;;  %v5260_v59 = vld [vmem:[#allocation10 + $0x34c] ss:$12 sps:$4 sm:$0xff]  }
  0xee   :  { %4630 = vmatpush3.bf16.msra.mxu0 %v5180_v61  ;;  %v5258_v61 = vld [vmem:[#allocation10 + $0x348] ss:$12 sps:$4 sm:$0xff]  }
  0xef   :  { %2904 = vmatpush1.bf16.msra.mxu1 %v5177_v60  ;;  %2942 = vmatprep.subr.bf16.mxu0 %v5186_v63  ;;  %v5255_v60 = vld [vmem:[#allocation10 + $0x288] ss:$12 sps:$4 sm:$0xff]  }
  0xf0   :  { %2905 = vmatprep.subr.bf16.mxu1 %v5183_v62  ;;  %v5263_v62 = vld [vmem:[#allocation10 + $0x274] ss:$12 sps:$4 sm:$0xff]  }
  0xf1   :  { %1488 = vmatmul.mubr.bf16.vlgmr.msra.gmra.mxu0 %v5779_v27  ;;  %v5222_v27 = vld [vmem:[#allocation10 + $0x19c] ss:$12 sps:$4 sm:$0xff]   ;;  %v5266_v63 = vld [vmem:[#allocation10 + $0x334] ss:$12 sps:$4 sm:$0xff]  }
  0xf2   :  { %2943 = vmatpush1.bf16.msra.mxu0 %v5184_v1  ;;  %1495 = vmatprep.mubr.bf16.mxu0 %v5781_v33  ;;  %v5223_v33 = vld [vmem:[#allocation10 + $0xc0] ss:$12 sps:$4 sm:$0xff]   ;;  %v5264_v1 = vld [vmem:[#allocation10 + $0x330] ss:$12 sps:$4 sm:$0xff]  }
  0xf3   :  { %2906 = vmatpush2.bf16.msra.mxu1 %v5181_v0  ;;  %2944 = vmatprep.subr.bf16.mxu0 %v5192_v3  ;;  %v5261_v0 = vld [vmem:[#allocation10 + $0x270] ss:$12 sps:$4 sm:$0xff]  }
  0xf4   :  { %2907 = vmatprep.subr.bf16.mxu1 %v5189_v2  ;;  %v5269_v2 = vld [vmem:[#allocation10 + $0x25c] ss:$12 sps:$4 sm:$0xff]  }
  0xf5   :  { %v5272_v3 = vld [vmem:[#allocation10 + $0x31c] ss:$12 sps:$4 sm:$0xff]  }
  0xf6   :  { %2945 = vmatpush1.bf16.msra.mxu0 %v5190_v5  ;;  %v5270_v5 = vld [vmem:[#allocation10 + $0x318] ss:$12 sps:$4 sm:$0xff]  }
  0xf7   :  { %2908 = vmatpush2.bf16.msra.mxu1 %v5187_v4  ;;  %2946 = vmatprep.subr.bf16.mxu0 %v5198_v7  ;;  %v5267_v4 = vld [vmem:[#allocation10 + $0x258] ss:$12 sps:$4 sm:$0xff]  }
  0xf8   :  { %2909 = vmatprep.subr.bf16.mxu1 %v5195_v6  ;;  %v5275_v6 = vld [vmem:[#allocation10 + $0x244] ss:$12 sps:$4 sm:$0xff]  }
  0xf9   :  { %1496 = vmatmul.mubr.bf16.gmra.mxu0 %v5787_v38  ;;  %v5234_v38 = vld [vmem:[#allocation10 + $0x3a8] ss:$12 sps:$4 sm:$0xff]   ;;  %v5278_v7 = vld [vmem:[#allocation10 + $0x304] ss:$12 sps:$4 sm:$0xff]  }
  0xfa   :  { %2947 = vmatpush1.bf16.msra.mxu0 %v5196_v9  ;;  %2974 = vmatprep.mubr.bf16.mxu0 %v5810_v17  ;;  %v5276_v9 = vld [vmem:[#allocation10 + $0x300] ss:$12 sps:$4 sm:$0xff]  }
  0xfb   :  { %2910 = vmatpush2.bf16.msra.mxu1 %v5193_v8  ;;  %2948 = vmatprep.subr.bf16.mxu0 %v5204_v11  ;;  %v5273_v8 = vld [vmem:[#allocation10 + $0x240] ss:$12 sps:$4 sm:$0xff]   ;;  %v5284_v11 = vld [vmem:[#allocation10 + $0x170] ss:$12 sps:$4 sm:$0xff]  }
  0xfc   :  { %2911 = vmatprep.subr.bf16.mxu1 %v5201_v10  ;;  %v5283_v10 = vld [vmem:[#allocation10 + $0x46c] ss:$12 sps:$4 sm:$0xff]  }
  0xfe   :  { %2949 = vmatpush1.bf16.msra.mxu0 %v5202_v15  ;;  %v5285_v15 = vld [vmem:[#allocation10 + $0xb0] ss:$12 sps:$4 sm:$0xff]  }
  0xff   :  { %2912 = vmatpush2.bf16.msra.mxu1 %v5199_v14  ;;  %2950 = vmatprep.subr.bf16.mxu0 %v5210_v56  ;;  %v5281_v14 = vld [vmem:[#allocation10 + $0x468] ss:$12 sps:$4 sm:$0xff]   ;;  %v5835_v56 = vcombine.low %v5803_v12, %v5805_v13  ;;  %v5294_v12 = vld [vmem:[#allocation10 + $0x140] ss:$12 sps:$4 sm:$0xff]  }
 0x100   :  { %2913 = vmatprep.subr.bf16.mxu1 %v5207_v18  ;;  %v1841_v18 = vld [vmem:[#allocation7 + $0x38] sm:$0xff] }
 0x102   :  { %2951 = vmatpush1.bf16.msra.mxu0 %v5208_v20  ;;  %v5288_v20 = vld [vmem:[#allocation10 + $0x454] ss:$12 sps:$4 sm:$0xff]  }
 0x103   :  { %2914 = vmatpush2.bf16.msra.mxu1 %v5205_v19  ;;  %2952 = vmatprep.subr.bf16.mxu0 %v5216_v23  ;;  %v1844_v19 = vld [vmem:[#allocation7 + $0x50] sm:$0xff] }
 0x104   :  { %2915 = vmatprep.subr.bf16.mxu1 %v5213_v22  ;;  %v5289_v22 = vld [vmem:[#allocation10 + $0x158] ss:$12 sps:$4 sm:$0xff]   ;;  %v5286_v23 = vld [vmem:[#allocation10 + $0x450] ss:$12 sps:$4 sm:$0xff]   ;;  %v5841_v13 = vcombine.low %v1841_v18, %v1844_v19 }
 0x106   :  { %2953 = vmatpush1.bf16.msra.mxu0 %v5214_v25  ;;  %v5290_v25 = vld [vmem:[#allocation10 + $0x98] ss:$12 sps:$4 sm:$0xff]  }
 0x107   :  { %2916 = vmatpush2.bf16.msra.mxu1 %v5211_v24  ;;  %2954 = vmatprep.subr.bf16.mxu0 %v5222_v27  ;;  %v5837_v24 = vcombine.high %v1841_v18, %v1844_v19  ;;  %v5291_v27 = vld [vmem:[#allocation10 + $0x438] ss:$12 sps:$4 sm:$0xff]  }
 0x108   :  { %2917 = vmatprep.subr.bf16.mxu1 %v5219_v26  ;;  %v5293_v26 = vld [vmem:[#allocation10 + $0x43c] ss:$12 sps:$4 sm:$0xff]  }
 0x10a   :  { %2955 = vmatpush1.bf16.msra.mxu0 %v5220_v30  ;;  %v5298_v30 = vld [vmem:[#allocation10 + $0x424] ss:$12 sps:$4 sm:$0xff]  }
 0x10b   :  { %2918 = vmatpush2.bf16.msra.mxu1 %v5217_v28  ;;  %2956 = vmatprep.subr.bf16.mxu0 %v5228_v32  ;;  %v5295_v28 = vld [vmem:[#allocation10 + $0x80] ss:$12 sps:$4 sm:$0xff]  }
 0x10c   :  { %2919 = vmatprep.subr.bf16.mxu1 %v5225_v31  ;;  %v5299_v31 = vld [vmem:[#allocation10 + $0x128] ss:$12 sps:$4 sm:$0xff]   ;;  %v5296_v32 = vld [vmem:[#allocation10 + $0x420] ss:$12 sps:$4 sm:$0xff]  }
 0x10e   :  { %2957 = vmatpush1.bf16.msra.mxu0 %v5226_v34  ;;  %v5304_v34 = vld [vmem:[#allocation10 + $0x40c] ss:$12 sps:$4 sm:$0xff]  }
 0x10f   :  { %2920 = vmatpush2.bf16.msra.mxu1 %v5223_v33  ;;  %2958 = vmatprep.subr.bf16.mxu0 %v5233_v35  ;;  %v5300_v33 = vld [vmem:[#allocation10 + $0x68] ss:$12 sps:$4 sm:$0xff]   ;;  %v5305_v35 = vld [vmem:[#allocation10 + $0x110] ss:$12 sps:$4 sm:$0xff]  }
 0x110   :  { %2995 = vmatprep.subr.bf16.mxu1 %v5236_v36  ;;  %v5302_v36 = vld [vmem:[#allocation10 + $0x408] ss:$12 sps:$4 sm:$0xff]  }
 0x112   :  { %2922 = vmatmul.mubr.bf16.vlgmr.msra.gmra.mxu1 %v5815_v40  ;;  %2959 = vmatpush2.bf16.msra.mxu0 %v5231_v37  ;;  %v5307_v37 = vld [vmem:[#allocation10 + $0x50] ss:$12 sps:$4 sm:$0xff]  }
 0x113   :  { %2996 = vmatpush1.bf16.msra.mxu1 %v5234_v38  ;;  %2960 = vmatprep.subr.bf16.mxu0 %v5239_v16  ;;  %v5312_v38 = vld [vmem:[#allocation10 + $0x3f4] ss:$12 sps:$4 sm:$0xff]   ;;  %v5314_v16 = vld [vmem:[#allocation10 + $0x38] ss:$12 sps:$4 sm:$0xff]  }
 0x114   :  { %2997 = vmatprep.subr.bf16.mxu1 %v5242_v42  ;;  %2931 = vmatprep.mubr.bf16.mxu1 %v5817_v43  ;;  %v6296_v42 = vlaneseq }
 0x116   :  { %2961 = vmatpush2.bf16.msra.mxu0 %v5237_v44  ;;  %v5317_v44 = vld [vmem:[#allocation10 + $0x3dc] ss:$12 sps:$4 sm:$0xff]  }
 0x117   :  { %2998 = vmatpush1.bf16.msra.mxu1 %v5240_v21  ;;  %2962 = vmatprep.subr.bf16.mxu0 %v5245_v45  ;;  %v5318_v21 = vld [vmem:[#allocation10 + $0xe0] ss:$12 sps:$4 sm:$0xff]  }
 0x118   :  { %2999 = vmatprep.subr.bf16.mxu1 %v5248_v46  ;;  %v5319_v45 = vld [vmem:[#allocation10 + $0x20] ss:$12 sps:$4 sm:$0xff]   ;;  %v5846_v46 = vshrl.u32 %v6296_v42, 7 }
 0x11a   :  { %2932 = vmatmul.mubr.bf16.gmra.mxu1 %v5821_v49  ;;  %2963 = vmatpush2.bf16.msra.mxu0 %v5243_v47  ;;  %v5322_v47 = vld [vmem:[#allocation10 + $0x3c4] ss:$12 sps:$4 sm:$0xff]  }
 0x11b   :  { %3000 = vmatpush1.bf16.msra.mxu1 %v5246_v48  ;;  %2964 = vmatprep.subr.bf16.mxu0 %v5251_v51  ;;  %v5323_v48 = vld [vmem:[#allocation10 + $0xc8] ss:$12 sps:$4 sm:$0xff]   ;;  %v5320_v51 = vld [vmem:[#allocation10 + $0x3c0] ss:$12 sps:$4 sm:$0xff]  }
 0x11c   :  { %3001 = vmatprep.subr.bf16.mxu1 %v5254_v52  ;;  %3027 = vmatprep.mubr.bf16.mxu1 %v5829_v55  ;;  %v5324_v52 = vld [vmem:[#allocation10 + $0x8] ss:$12 sps:$4 sm:$0xff]  }
 0x11e   :  { %2965 = vmatpush2.bf16.msra.mxu0 %v5249_v53  ;;  %v5849_v53 = vsub.s32 0, %v5846_v46 }
 0x11f   :  { %3002 = vmatpush1.bf16.msra.mxu1 %v5252_v57  ;;  %2966 = vmatprep.subr.bf16.mxu0 %v5257_v58  ;;  %v5854_v57 = vld [vmem:[%s6284_s6] sm:$0x7] }
 0x120   :  { %3003 = vmatprep.subr.bf16.mxu1 %v5260_v59  ;;  %v5327_v58 = vld [vmem:[#allocation10 + $0x2f0] ss:$12 sps:$4 sm:$0xff]  }
 0x121   :  { %v5328_v59 = vld [vmem:[#allocation10 + $0x470] ss:$12 sps:$4 sm:$0xff]  }
 0x122   :  { %2967 = vmatpush2.bf16.msra.mxu0 %v5255_v60  ;;  %v5857_v60 = vsub.s32 1, %v5846_v46 }
 0x123   :  { %3004 = vmatpush1.bf16.msra.mxu1 %v5258_v61  ;;  %2968 = vmatprep.subr.bf16.mxu0 %v5263_v62  ;;  %v5861_v61 = vcombine.low %v5823_v29, %v5825_v50  ;;  %v1842_v62 = vld [vmem:[#allocation7 + $0x40] sm:$0xff] }
 0x124   :  { %3005 = vmatprep.subr.bf16.mxu1 %v5266_v63  ;;  %v1845_v63 = vld [vmem:[#allocation7 + $0x58] sm:$0xff] }
 0x125   :  { %v5871_v29 = vcombine.high %v1842_v62, %v1845_v63 }
 0x126   :  { %2969 = vmatpush2.bf16.msra.mxu0 %v5261_v0  ;;  %v5865_v0 = vrot.slane %v5854_v57, %v5849_v53 }
 0x127   :  { %3006 = vmatpush1.bf16.msra.mxu1 %v5264_v1  ;;  %2970 = vmatprep.subr.bf16.mxu0 %v5269_v2  ;;  %v5329_v1 = vld [vmem:[#allocation10 + $0x230] ss:$12 sps:$4 sm:$0xff]  }
 0x128   :  { %3007 = vmatprep.subr.bf16.mxu1 %v5272_v3  ;;  %v5330_v2 = vld [vmem:[#allocation10 + $0x3b0] ss:$12 sps:$4 sm:$0xff]   ;;  %v5331_v3 = vld [vmem:[#allocation10 + $0x2d8] ss:$12 sps:$4 sm:$0xff]  }
 0x12a   :  { %2971 = vmatpush2.bf16.msra.mxu0 %v5267_v4  ;;  %v5332_v4 = vld [vmem:[#allocation10 + $0x458] ss:$12 sps:$4 sm:$0xff]  }
 0x12b   :  { %3008 = vmatpush1.bf16.msra.mxu1 %v5270_v5  ;;  %2972 = vmatprep.subr.bf16.mxu0 %v5275_v6  ;;  %v5869_v5 = vrot.slane %v5854_v57, %v5857_v60 }
 0x12c   :  { %3009 = vmatprep.subr.bf16.mxu1 %v5278_v7 }
 0x12e   :  { %2973 = vmatpush2.bf16.msra.mxu0 %v5273_v8  ;;  %v5333_v8 = vld [vmem:[#allocation10 + $0x218] ss:$12 sps:$4 sm:$0xff]  }
 0x12f   :  { %3010 = vmatpush1.bf16.msra.mxu1 %v5276_v9  ;;  %4643 = vmatprep.subr.bf16.mxu0 %v5284_v11  ;;  %v5334_v9 = vld [vmem:[#allocation10 + $0x398] ss:$12 sps:$4 sm:$0xff]  }
 0x130   :  { %3011 = vmatprep.subr.bf16.mxu1 %v5283_v10 }
 0x131   :  { %2975 = vmatmul.mubr.bf16.vlgmr.msra.gmra.mxu0 %v5835_v56 }
 0x132   :  { %4644 = vmatpush3.bf16.msra.mxu0 %v5285_v15  ;;  %2984 = vmatprep.mubr.bf16.mxu0 %v5837_v24  ;;  %v5338_v15 = vld [vmem:[#allocation10 + $0x440] ss:$12 sps:$4 sm:$0xff]  }
 0x133   :  { %3012 = vmatpush2.bf16.msra.mxu1 %v5281_v14  ;;  %4645 = vmatprep.subr.bf16.mxu0 %v5289_v22  ;;  %v5337_v14 = vld [vmem:[#allocation10 + $0x2c0] ss:$12 sps:$4 sm:$0xff]   ;;  %v5881_v22 = vcombine.low %v1842_v62, %v1845_v63 }
 0x134   :  { %3013 = vmatprep.subr.bf16.mxu1 %v5288_v20 }
 0x136   :  { %4646 = vmatpush3.bf16.msra.mxu0 %v5290_v25 }
 0x137   :  { %3014 = vmatpush2.bf16.msra.mxu1 %v5286_v23  ;;  %4647 = vmatprep.subr.bf16.mxu0 %v5294_v12  ;;  %v5340_v12 = vld [vmem:[#allocation10 + $0x380] ss:$12 sps:$4 sm:$0xff]  }
 0x138   :  { %3015 = vmatprep.subr.bf16.mxu1 %v5293_v26  ;;  %v5339_v26 = vld [vmem:[#allocation10 + $0x200] ss:$12 sps:$4 sm:$0xff]  }
 0x139   :  { %2985 = vmatmul.mubr.bf16.gmra.mxu0 %v5841_v13 }
 0x13a   :  { %4648 = vmatpush3.bf16.msra.mxu0 %v5295_v28  ;;  %3080 = vmatprep.mubr.bf16.mxu0 %v5798_v54  ;;  %v5315_v54 = vld [vmem:[#allocation10 + $0x3d8] ss:$12 sps:$4 sm:$0xff]  }
 0x13b   :  { %3016 = vmatpush2.bf16.msra.mxu1 %v5291_v27  ;;  %4649 = vmatprep.subr.bf16.mxu0 %v5299_v31  ;;  %v5342_v31 = vld [vmem:[#allocation10 + $0x428] ss:$12 sps:$4 sm:$0xff]  }
 0x13c   :  { %3017 = vmatprep.subr.bf16.mxu1 %v5298_v30  ;;  %v5341_v30 = vld [vmem:[#allocation10 + $0x2a8] ss:$12 sps:$4 sm:$0xff]  }
 0x13e   :  { %4650 = vmatpush3.bf16.msra.mxu0 %v5300_v33 }
 0x13f   :  { %3018 = vmatpush2.bf16.msra.mxu1 %v5296_v32  ;;  %4651 = vmatprep.subr.bf16.mxu0 %v5305_v35 }
 0x140   :  { %3019 = vmatprep.subr.bf16.mxu1 %v5304_v34 }
 0x142   :  { %4652 = vmatpush3.bf16.msra.mxu0 %v5307_v37  ;;  %v5344_v37 = vld [vmem:[#allocation10 + $0x368] ss:$12 sps:$4 sm:$0xff]  }
 0x143   :  { %3020 = vmatpush2.bf16.msra.mxu1 %v5302_v36  ;;  %4653 = vmatprep.subr.bf16.mxu0 %v5313_v39  ;;  %v5343_v36 = vld [vmem:[#allocation10 + $0x1e8] ss:$12 sps:$4 sm:$0xff]   ;;  %v5345_v39 = vld [vmem:[#allocation10 + $0x290] ss:$12 sps:$4 sm:$0xff]  }
 0x144   :  { %3021 = vmatprep.subr.bf16.mxu1 %v5312_v38 }
 0x146   :  { %4654 = vmatpush3.bf16.msra.mxu0 %v5314_v16 }
 0x147   :  { %3022 = vmatpush2.bf16.msra.mxu1 %v5310_v41  ;;  %4655 = vmatprep.subr.bf16.mxu0 %v5318_v21  ;;  %v5346_v41 = vld [vmem:[#allocation10 + $0x410] ss:$12 sps:$4 sm:$0xff]  }
 0x148   :  { %3023 = vmatprep.subr.bf16.mxu1 %v5317_v44 }
 0x14a   :  { %4656 = vmatpush3.bf16.msra.mxu0 %v5319_v45 }
 0x14b   :  { %3024 = vmatpush2.bf16.msra.mxu1 %v5315_v54  ;;  %4657 = vmatprep.subr.bf16.mxu0 %v5323_v48  ;;  %v5348_v48 = vld [vmem:[#allocation10 + $0x350] ss:$12 sps:$4 sm:$0xff]  }
 0x14c   :  { %3025 = vmatprep.subr.bf16.mxu1 %v5322_v47  ;;  %v5347_v47 = vld [vmem:[#allocation10 + $0x1d0] ss:$12 sps:$4 sm:$0xff]  }
 0x14e   :  { %4658 = vmatpush3.bf16.msra.mxu0 %v5324_v52 }
 0x14f   :  { %3026 = vmatpush2.bf16.msra.mxu1 %v5320_v51  ;;  %4671 = vmatprep.subr.bf16.mxu0 %v5327_v58  ;;  %v5349_v58 = vld [vmem:[#allocation10 + $0x278] ss:$12 sps:$4 sm:$0xff]  }
 0x150   :  { %4699 = vmatprep.subr.bf16.mxu1 %v5328_v59  ;;  %v5350_v59 = vld [vmem:[#allocation10 + $0x3f8] ss:$12 sps:$4 sm:$0xff]  }
 0x151   :  { %v1232_v50 = vpop.f32.mrf.mxu0  ;;  %3081 = vmatmul.mubr.bf16.vlgmr.msra.gmra.mxu0 %v5815_v40 }
 0x152   :  { %v1285_v6 = vpop.f32.mrf.mxu1  ;;  %3028 = vmatmul.mubr.bf16.vlgmr.msra.gmra.mxu1 %v5861_v61  ;;  %v1233_v7 = vadd.f32 %v1232_v50, %v5865_v0  ;;  %4672 = vmatpush3.bf16.msra.mxu0 %v5329_v1  ;;  %v5355_v50 = vld [vmem:[#allocation10 + $0x1a0] ss:$12 sps:$4 sm:$0xff]  }
 0x153   :  { %4700 = vmatpush3.bf16.msra.mxu1 %v5330_v2  ;;  %v1234_v10 = vpop.f32.mrf.mxu0  ;;  %4673 = vmatprep.subr.bf16.mxu0 %v5331_v3  ;;  %v5352_v2 = vld [vmem:[#allocation10 + $0x338] ss:$12 sps:$4 sm:$0xff]  }
 0x154   :  { %v1287_v11 = vpop.f32.mrf.mxu1  ;;  %4701 = vmatprep.subr.bf16.mxu1 %v5332_v4  ;;  %v5876_v18 = vadd.f32 %v1285_v6, %v1233_v7  ;;  %v1235_v19 = vadd.f32 %v1234_v10, %v5869_v5  ;;  %3037 = vmatprep.mubr.bf16.mxu1 %v5871_v29  ;;  %v5354_v4 = vld [vmem:[#allocation10 + $0x3e0] ss:$12 sps:$4 sm:$0xff]   ;;  %v5357_v7 = vld [vmem:[#allocation10 + $0x248] ss:$12 sps:$4 sm:$0xff]  }
 0x155   :  { %3088 = vmatprep.mubr.bf16.mxu0 %v5817_v43  ;;  %v1236_v40 = vpop.f32.mrf.mxu0  ;;  %v5356_v6 = vld [vmem:[#allocation10 + $0x320] ss:$12 sps:$4 sm:$0xff]  }
 0x156   :  { %v1289_v20 = vpop.f32.mrf.mxu1  ;;  %v5883_v23 = vadd.f32 %v1287_v11, %v1235_v19  ;;  %v1237_v25 = vadd.f32 %v1236_v40, %v5865_v0  ;;  %4674 = vmatpush3.bf16.msra.mxu0 %v5333_v8  ;;  %v5359_v8 = vld [vmem:[#allocation10 + $0x188] ss:$12 sps:$4 sm:$0xff]  }
 0x157   :  { %4702 = vmatpush3.bf16.msra.mxu1 %v5334_v9  ;;  %v1238_v27 = vpop.f32.mrf.mxu0  ;;  %4675 = vmatprep.subr.bf16.mxu0 %v5337_v14  ;;  %v5360_v9 = vld [vmem:[#allocation10 + $0x308] ss:$12 sps:$4 sm:$0xff]  }
 0x158   :  { %v1291_v28 = vpop.f32.mrf.mxu1  ;;  %4703 = vmatprep.subr.bf16.mxu1 %v5338_v15  ;;  %v5886_v32 = vadd.f32 %v1289_v20, %v1237_v25  ;;  %v1239_v43 = vadd.f32 %v1238_v27, %v5869_v5 }
 0x159   :  { %3089 = vmatmul.mubr.bf16.gmra.mxu0 %v5821_v49  ;;  %v1242_v33 = vpop.f32.mrf.mxu0 }
 0x15a   :  { %3038 = vmatmul.mubr.bf16.gmra.mxu1 %v5881_v22  ;;  %v1295_v34 = vpop.f32.mrf.mxu1  ;;  %v5891_v35 = vadd.f32 %v1291_v28, %v1239_v43  ;;  %4676 = vmatpush3.bf16.msra.mxu0 %v5339_v26  ;;  %v1243_v38 = vadd.f32 %v1242_v33, %v5865_v0 }
 0x15b   :  { %4704 = vmatpush3.bf16.msra.mxu1 %v5340_v12  ;;  %4677 = vmatprep.subr.bf16.mxu0 %v5341_v30  ;;  %v1244_v16 = vpop.f32.mrf.mxu0 }
 0x15c   :  { %4705 = vmatprep.subr.bf16.mxu1 %v5342_v31  ;;  %v1297_v44 = vpop.f32.mrf.mxu1  ;;  %v1245_v21 = vadd.f32 %v1244_v16, %v5869_v5  ;;  %v5895_v54 = vadd.f32 %v1295_v34, %v1243_v38  ;;  %3129 = vmatprep.mubr.bf16.mxu0 %v5810_v17 }
 0x15d   :  { %3178 = vmatprep.mubr.bf16.mxu1 %v5829_v55  ;;  %v1246_v49 = vpop.f32.mrf.mxu0  ;;  %v5351_v55 = vld [vmem:[#allocation10 + $0x1b8] ss:$12 sps:$4 sm:$0xff]  }
 0x15e   :  { %v1299_v45 = vpop.f32.mrf.mxu1  ;;  %4678 = vmatpush3.bf16.msra.mxu0 %v5343_v36  ;;  %v1247_v51 = vadd.f32 %v1246_v49, %v5865_v0  ;;  %v5900_v52 = vadd.f32 %v1297_v44, %v1245_v21  ;;  %v5353_v0 = vld [vmem:[#allocation10 + $0x260] ss:$12 sps:$4 sm:$0xff]  }
 0x15f   :  { %4706 = vmatpush3.bf16.msra.mxu1 %v5344_v37  ;;  %4679 = vmatprep.subr.bf16.mxu0 %v5345_v39  ;;  %v1248_v62 = vpop.f32.mrf.mxu0 }
 0x160   :  { %4707 = vmatprep.subr.bf16.mxu1 %v5346_v41  ;;  %v1301_v63 = vpop.f32.mrf.mxu1  ;;  %v1249_v17 = vadd.f32 %v1248_v62, %v5869_v5  ;;  %v5903_v1 = vadd.f32 %v1299_v45, %v1247_v51  ;;  %v5358_v5 = vld [vmem:[#allocation10 + $0x3c8] ss:$12 sps:$4 sm:$0xff]  }
 0x162   :  { %4680 = vmatpush3.bf16.msra.mxu0 %v5347_v47  ;;  %v5905_v3 = vadd.f32 %v1301_v63, %v1249_v17  ;;  %v5932_v47 = vld [vmem:[%s6285_s7] sm:$0x7] }
 0x163   :  { %4708 = vmatpush3.bf16.msra.mxu1 %v5348_v48  ;;  %4681 = vmatprep.subr.bf16.mxu0 %v5349_v58  ;;  %v1569_v62 = vrot.slane %v5932_v47, %v5849_v53 }
 0x164   :  { %4709 = vmatprep.subr.bf16.mxu1 %v5350_v59 }
 0x166   :  { %4682 = vmatpush3.bf16.msra.mxu0 %v5351_v55  ;;  %v1573_v55 = vrot.slane %v5932_v47, %v5857_v60 }
 0x167   :  { %4710 = vmatpush3.bf16.msra.mxu1 %v5352_v2  ;;  %4683 = vmatprep.subr.bf16.mxu0 %v5353_v0 }
 0x168   :  { %4711 = vmatprep.subr.bf16.mxu1 %v5354_v4  ;;  %v5939_v4 = vsub.s32 2, %v5846_v46 }
 0x16a   :  { %4684 = vmatpush3.bf16.msra.mxu0 %v5355_v50 }
 0x16b   :  { %4712 = vmatpush3.bf16.msra.mxu1 %v5356_v6  ;;  %4685 = vmatprep.subr.bf16.mxu0 %v5357_v7 }
 0x16c   :  { %4713 = vmatprep.subr.bf16.mxu1 %v5358_v5 }
 0x16e   :  { %4686 = vmatpush3.bf16.msra.mxu0 %v5359_v8 }
 0x16f   :  { %4714 = vmatpush3.bf16.msra.mxu1 %v5360_v9 }
 0x171   :  { %3130 = vmatmul.mubr.bf16.vlgmr.msra.gmra.mxu0 %v5835_v56 }
 0x172   :  { %v4575_v10 = vpop.f32.mrf.mxu1  ;;  %3179 = vmatmul.mubr.bf16.vlgmr.msra.gmra.mxu1 %v5861_v61  ;;  %3137 = vmatprep.mubr.bf16.mxu0 %v5837_v24 }
 0x173   :  { %3186 = vmatprep.mubr.bf16.mxu1 %v5871_v29 }
 0x174   :  { %v4576_v11 = vpop.f32.mrf.mxu1 }
 0x175   :  { %v5911_v14 = vadd.f32 %v4576_v11, %v4575_v10 }
 0x176   :  { %v4578_v15 = vpop.f32.mrf.mxu1 }
 0x178   :  { %v4579_v19 = vpop.f32.mrf.mxu1 }
 0x179   :  { %v5913_v40 = vadd.f32 %v4579_v19, %v4578_v15  ;;  %3138 = vmatmul.mubr.bf16.gmra.mxu0 %v5841_v13 }
 0x17a   :  { %3187 = vmatmul.mubr.bf16.gmra.mxu1 %v5881_v22  ;;  %v4581_v20 = vpop.f32.mrf.mxu1 }
 0x17c   :  { %v4582_v25 = vpop.f32.mrf.mxu1 }
 0x17d   :  { %v5917_v56 = vadd.f32 %v4582_v25, %v4581_v20 }
 0x17e   :  { %v4584_v61 = vpop.f32.mrf.mxu1 }
 0x180   :  { %v4585_v26 = vpop.f32.mrf.mxu1 }
 0x181   :  { %v5919_v24 = vadd.f32 %v4585_v26, %v4584_v61 }
 0x191   :  { %v1338_v29 = vpop.f32.mrf.mxu0 }
 0x192   :  { %v1339_v12 = vadd.f32 %v1338_v29, %v5876_v18  ;;  %v4603_v41 = vpop.f32.mrf.mxu1  ;;  %v366_v29 = vrot.slane %v5854_v57, %v5939_v4 }
 0x193   :  { %v1340_v27 = vpop.f32.mrf.mxu0 }
 0x194   :  { %v1517_v28 = vmul.f32 0.70710677, %v1339_v12  ;;  %v1341_v30 = vadd.f32 %v1340_v27, %v5883_v23  ;;  %v4604_v45 = vpop.f32.mrf.mxu1  ;;  %v1504_v51 = vmul.f32 0.5, %v1339_v12 }
 0x195   :  { %v1342_v31 = vpop.f32.mrf.mxu0 }
 0x196   :  { %5361 = verf.f32 %v1517_v28  ;;  %v1518_v13 = vmul.f32 0.70710677, %v1341_v30  ;;  %v1343_v22 = vadd.f32 %v1342_v31, %v5886_v32  ;;  %v4606_v59 = vpop.f32.mrf.mxu1  ;;  %v1505_v17 = vmul.f32 0.5, %v1341_v30 }
 0x197   :  { %v1344_v43 = vpop.f32.mrf.mxu0 }
 0x198   :  { %5363 = verf.f32 %v1518_v13  ;;  %v1345_v33 = vadd.f32 %v1344_v43, %v5891_v35  ;;  %v1520_v34 = vmul.f32 0.70710677, %v1343_v22  ;;  %v1507_v50 = vmul.f32 0.5, %v1343_v22  ;;  %v4607_v7 = vpop.f32.mrf.mxu1 }
 0x199   :  { %v1348_v36 = vpop.f32.mrf.mxu0  ;;  %v4605_v22 = vadd.f32 %v4604_v45, %v4603_v41 }
 0x19a   :  { %v1521_v37 = vmul.f32 0.70710677, %v1345_v33  ;;  %v1349_v38 = vadd.f32 %v1348_v36, %v5895_v54  ;;  %5365 = verf.f32 %v1520_v34  ;;  %v1508_v5 = vmul.f32 0.5, %v1345_v33  ;;  %v4609_v46 = vpop.f32.mrf.mxu1 }
 0x19b   :  { %v1350_v18 = vpop.f32.mrf.mxu0 }
 0x19c   :  { %5367 = verf.f32 %v1521_v37  ;;  %v1523_v39 = vmul.f32 0.70710677, %v1349_v38  ;;  %v1351_v23 = vadd.f32 %v1350_v18, %v5900_v52  ;;  %v1510_v20 = vmul.f32 0.5, %v1349_v38  ;;  %v4610_v18 = vpop.f32.mrf.mxu1 }
 0x19d   :  { %v1352_v16 = vpop.f32.mrf.mxu0  ;;  %v1392_v38 = vadd.f32 %v5911_v14, %v366_v29 }
 0x19e   :  { %5369 = verf.f32 %v1523_v39  ;;  %v1524_v44 = vmul.f32 0.70710677, %v1351_v23  ;;  %v1353_v32 = vadd.f32 %v1352_v16, %v5903_v1  ;;  %v1511_v12 = vmul.f32 0.5, %v1351_v23 }
 0x19f   :  { %v1354_v21 = vpop.f32.mrf.mxu0 }
 0x1a0   :  { %5371 = verf.f32 %v1524_v44  ;;  %v1526_v35 = vmul.f32 0.70710677, %v1353_v32  ;;  %v1355_v49 = vadd.f32 %v1354_v21, %v5905_v3  ;;  %v1513_v33 = vmul.f32 0.5, %v1353_v32 }
 0x1a1   :  { %v1395_v32 = vadd.f32 %v5913_v40, %v366_v29 }
 0x1a2   :  { %5373 = verf.f32 %v1526_v35  ;;  %v1527_v54 = vmul.f32 0.70710677, %v1355_v49  ;;  %v1514_v39 = vmul.f32 0.5, %v1355_v49  ;;  %v4608_v35 = vadd.f32 %v4607_v7, %v4606_v59 }
 0x1a3   :  { %v5362_v48 = vpop.eup %5361  ;;  %v1400_v7 = vadd.f32 %v5917_v56, %v366_v29 }
 0x1a4   :  { %v1541_v52 = vadd.f32 1.0, %v5362_v48  ;;  %5375 = verf.f32 %v1527_v54  ;;  %v1441_v48 = vadd.f32 %v4605_v22, %v1392_v38 }
 0x1a5   :  { %v5364_v58 = vpop.eup %5363 }
 0x1a6   :  { %v1553_v63 = vmul.f32 %v1541_v52, %v1504_v51  ;;  %v1542_v1 = vadd.f32 1.0, %v5364_v58  ;;  %v4612_v52 = vpop.f32.mrf.mxu1 }
 0x1a7   :  { %v5366_v2 = vpop.eup %5365 }
 0x1a8   :  { %v1554_v3 = vmul.f32 %v1542_v1, %v1505_v17  ;;  %v1544_v6 = vadd.f32 1.0, %v5366_v2  ;;  %v1581_v9 = vmul.f32 %v1569_v62, %v1553_v63  ;;  %v1444_v1 = vadd.f32 %v4608_v35, %v1395_v32 }
 0x1a9   :  { %v5368_v0 = vpop.eup %5367  ;;  %v4611_v2 = vadd.f32 %v4610_v18, %v4609_v46 }
 0x1aa   :  { %v1545_v8 = vadd.f32 1.0, %v5368_v0  ;;  %v1582_v10 = vmul.f32 %v1573_v55, %v1554_v3  ;;  %v1556_v15 = vmul.f32 %v1544_v6, %v1507_v50  ;;  %v4613_v6 = vpop.f32.mrf.mxu1 }
 0x1ab   :  { %v5370_v11 = vpop.eup %5369  ;;  %v4614_v40 = vadd.f32 %v4613_v6, %v4612_v52 }
 0x1ac   :  { %v1557_v19 = vmul.f32 %v1545_v8, %v1508_v5  ;;  %v1547_v25 = vadd.f32 1.0, %v5370_v11  ;;  %v5941_v61 = vadd.f32 %v1582_v10, %v1581_v9  ;;  %v1584_v30 = vmul.f32 %v1569_v62, %v1556_v15 }
 0x1ad   :  { %v5372_v26 = vpop.eup %5371  ;;  %v1449_v9 = vadd.f32 %v4611_v2, %v1400_v7 }
 0x1ae   :  { %v1559_v27 = vmul.f32 %v1547_v25, %v1510_v20  ;;  %v1548_v28 = vadd.f32 1.0, %v5372_v26  ;;  %v1585_v31 = vmul.f32 %v1573_v55, %v1557_v19 }
 0x1af   :  { %v5374_v13 = vpop.eup %5373 }
 0x1b0   :  { %v1560_v43 = vmul.f32 %v1548_v28, %v1511_v12  ;;  %v1550_v34 = vadd.f32 1.0, %v5374_v13  ;;  %v5945_v36 = vadd.f32 %v1585_v31, %v1584_v30  ;;  %v1587_v23 = vmul.f32 %v1569_v62, %v1559_v27 }
 0x1b1   :  { %v5376_v37 = vpop.eup %5375  ;;  %v4631_v16 = vpop.f32.mrf.mxu0  ;;  %v1577_v30 = vrot.slane %v5932_v47, %v5939_v4 }
 0x1b2   :  { %v1562_v57 = vmul.f32 %v1550_v34, %v1513_v33  ;;  %v1551_v44 = vadd.f32 1.0, %v5376_v37  ;;  %v1588_v21 = vmul.f32 %v1573_v55, %v1560_v43 }
 0x1b3   :  { %v4632_v54 = vpop.f32.mrf.mxu0 }
 0x1b4   :  { %v1563_v51 = vmul.f32 %v1551_v44, %v1514_v39  ;;  %v4633_v41 = vadd.f32 %v4632_v54, %v4631_v16  ;;  %v1601_v45 = vadd.f32 %v1588_v21, %v1587_v23  ;;  %v1590_v17 = vmul.f32 %v1569_v62, %v1562_v57 }
 0x1b5   :  { %v4634_v58 = vpop.f32.mrf.mxu0  ;;  %v1403_v62 = vadd.f32 %v5919_v24, %v366_v29 }
 0x1b6   :  { %v1490_v63 = vadd.f32 %v4633_v41, %v1441_v48  ;;  %v1591_v14 = vmul.f32 %v1573_v55, %v1563_v51 }
 0x1b7   :  { %v4635_v49 = vpop.f32.mrf.mxu0  ;;  %v1452_v20 = vadd.f32 %v4614_v40, %v1403_v62 }
 0x1b8   :  { %v1519_v3 = vmul.f32 0.70710677, %v1490_v63  ;;  %v4636_v0 = vadd.f32 %v4635_v49, %v4634_v58  ;;  %v1605_v50 = vadd.f32 %v1591_v14, %v1590_v17  ;;  %v1506_v27 = vmul.f32 0.5, %v1490_v63 }
 0x1b9   :  { %v4637_v59 = vpop.f32.mrf.mxu0 }
 0x1ba   :  { %5377 = verf.f32 %v1519_v3  ;;  %v1493_v5 = vadd.f32 %v4636_v0, %v1444_v1 }
 0x1bb   :  { %v4638_v8 = vpop.f32.mrf.mxu0 }
 0x1bc   :  { %v1522_v10 = vmul.f32 0.70710677, %v1493_v5  ;;  %v4639_v11 = vadd.f32 %v4638_v8, %v4637_v59  ;;  %v1509_v22 = vmul.f32 0.5, %v1493_v5 }
 0x1bd   :  { %v4640_v15 = vpop.f32.mrf.mxu0 }
 0x1be   :  { %5379 = verf.f32 %v1522_v10  ;;  %v1498_v55 = vadd.f32 %v4639_v11, %v1449_v9  ;;  %v2042_v9 = vld [vmem:[%s6288_s10] sm:$0x7] }
 0x1bf   :  { %v4641_v19 = vpop.f32.mrf.mxu0  ;;  %v2053_v10 = vrot.slane %v2042_v9, %v5857_v60 }
 0x1c0   :  { %v1525_v25 = vmul.f32 0.70710677, %v1498_v55  ;;  %v4642_v26 = vadd.f32 %v4641_v19, %v4640_v15  ;;  %v1512_v37 = vmul.f32 0.5, %v1498_v55  ;;  %v2049_v15 = vrot.slane %v2042_v9, %v5849_v53 }
 0x1c2   :  { %5381 = verf.f32 %v1525_v25  ;;  %v1501_v46 = vadd.f32 %v4642_v26, %v1452_v20 }
 0x1c4   :  { %v1528_v12 = vmul.f32 0.70710677, %v1501_v46  ;;  %v1515_v44 = vmul.f32 0.5, %v1501_v46 }
 0x1c6   :  { %5383 = verf.f32 %v1528_v12 }
 0x1c7   :  { %v5378_v56 = vpop.eup %5377 }
 0x1c8   :  { %v1543_v28 = vadd.f32 1.0, %v5378_v56 }
 0x1ca   :  { %v1555_v31 = vmul.f32 %v1543_v28, %v1506_v27 }
 0x1cb   :  { %v5380_v13 = vpop.eup %5379 }
 0x1cc   :  { %v1583_v24 = vmul.f32 %v1577_v30, %v1555_v31  ;;  %v1546_v29 = vadd.f32 1.0, %v5380_v13 }
 0x1ce   :  { %v5954_v43 = vadd.f32 %v5941_v61, %v1583_v24  ;;  %v1558_v33 = vmul.f32 %v1546_v29, %v1509_v22 }
 0x1cf   :  { %v5382_v34 = vpop.eup %5381 }
 0x1d0   :  { %v1549_v38 = vadd.f32 1.0, %v5382_v34  ;;  %v1586_v18 = vmul.f32 %v1577_v30, %v1558_v33 }
 0x1d2   :  { %v1561_v39 = vmul.f32 %v1549_v38, %v1512_v37  ;;  %v5957_v16 = vadd.f32 %v5945_v36, %v1586_v18  ;;  %v2923_v61 = vpop.f32.mrf.mxu1 }
 0x1d3   :  { %v5384_v57 = vpop.eup %5383  ;;  %v2924_v20 = vadd.f32 %v2923_v61, %v2049_v15 }
 0x1d4   :  { %v1589_v47 = vmul.f32 %v1577_v30, %v1561_v39  ;;  %v1552_v23 = vadd.f32 1.0, %v5384_v57  ;;  %v2925_v41 = vpop.f32.mrf.mxu1 }
 0x1d5   :  { %v2926_v19 = vadd.f32 %v2925_v41, %v2053_v10 }
 0x1d6   :  { %v5959_v21 = vadd.f32 %v1601_v45, %v1589_v47  ;;  %v1564_v35 = vmul.f32 %v1552_v23, %v1515_v44  ;;  %v2927_v52 = vpop.f32.mrf.mxu1 }
 0x1d7   :  { %v2928_v28 = vadd.f32 %v2927_v52, %v2049_v15 }
 0x1d8   :  { %v1592_v54 = vmul.f32 %v1577_v30, %v1564_v35  ;;  %v2929_v63 = vpop.f32.mrf.mxu1  ;;  %v2057_v35 = vrot.slane %v2042_v9, %v5939_v4 }
 0x1d9   :  { %v2930_v12 = vadd.f32 %v2929_v63, %v2053_v10 }
 0x1da   :  { %v5961_v48 = vadd.f32 %v1605_v50, %v1592_v54  ;;  %v2933_v36 = vpop.f32.mrf.mxu1 }
 0x1db   :  { %v2934_v33 = vadd.f32 %v2933_v36, %v2049_v15 }
 0x1dc   :  { %v2935_v1 = vpop.f32.mrf.mxu1 }
 0x1dd   :  { %v2936_v31 = vadd.f32 %v2935_v1, %v2053_v10 }
 0x1de   :  { %v2937_v2 = vpop.f32.mrf.mxu1 }
 0x1df   :  { %v2938_v47 = vadd.f32 %v2937_v2, %v2049_v15 }
 0x1e0   :  { %v2939_v45 = vpop.f32.mrf.mxu1 }
 0x1e1   :  { %v2940_v23 = vadd.f32 %v2939_v45, %v2053_v10 }
 0x1f1   :  { %v2976_v51 = vpop.f32.mrf.mxu0 }
 0x1f2   :  { %v2977_v56 = vadd.f32 %v2976_v51, %v2924_v20 }
 0x1f3   :  { %v2978_v32 = vpop.f32.mrf.mxu0 }
 0x1f4   :  { %v2979_v25 = vadd.f32 %v2978_v32, %v2926_v19 }
 0x1f5   :  { %v2980_v58 = vpop.f32.mrf.mxu0 }
 0x1f6   :  { %v2981_v29 = vadd.f32 %v2980_v58, %v2928_v28 }
 0x1f7   :  { %v2982_v17 = vpop.f32.mrf.mxu0 }
 0x1f8   :  { %v2983_v30 = vadd.f32 %v2982_v17, %v2930_v12 }
 0x1f9   :  { %v2986_v14 = vpop.f32.mrf.mxu0 }
 0x1fa   :  { %v2987_v61 = vadd.f32 %v2986_v14, %v2934_v33 }
 0x1fb   :  { %v2988_v49 = vpop.f32.mrf.mxu0 }
 0x1fc   :  { %v2989_v38 = vadd.f32 %v2988_v49, %v2936_v31 }
 0x1fd   :  { %v2990_v3 = vpop.f32.mrf.mxu0 }
 0x1ff   :  { %v2992_v0 = vpop.f32.mrf.mxu0 }
 0x200   :  { %v2993_v1 = vadd.f32 %v2992_v0, %v2940_v23 }
 0x211   :  { %v4659_v59 = vpop.f32.mrf.mxu0 }
 0x212   :  { %v3029_v6 = vpop.f32.mrf.mxu1 }
 0x213   :  { %v4660_v7 = vpop.f32.mrf.mxu0  ;;  %v5970_v13 = vadd.f32 %v3029_v6, %v2977_v56  ;;  %v2991_v6 = vadd.f32 %v2990_v3, %v2938_v47 }
 0x214   :  { %v3031_v50 = vpop.f32.mrf.mxu1  ;;  %v4661_v54 = vadd.f32 %v4660_v7, %v4659_v59 }
 0x215   :  { %v4662_v8 = vpop.f32.mrf.mxu0  ;;  %v5968_v27 = vadd.f32 %v3031_v50, %v2979_v25  ;;  %v3207_v18 = vmul.f32 0.70710677, %v5970_v13 }
 0x216   :  { %v3033_v5 = vpop.f32.mrf.mxu1  ;;  %v3083_v49 = vadd.f32 %v4661_v54, %v2057_v35 }
 0x217   :  { %v4663_v11 = vpop.f32.mrf.mxu0  ;;  %v3208_v34 = vmul.f32 0.70710677, %v5968_v27  ;;  %v5976_v39 = vadd.f32 %v3033_v5, %v2981_v29 }
 0x218   :  { %v3035_v40 = vpop.f32.mrf.mxu1  ;;  %v4664_v2 = vadd.f32 %v4663_v11, %v4662_v8 }
 0x219   :  { %v4665_v55 = vpop.f32.mrf.mxu0  ;;  %v5973_v37 = vadd.f32 %v3035_v40, %v2983_v30  ;;  %5385 = verf.f32 %v3208_v34  ;;  %v3210_v58 = vmul.f32 0.70710677, %v5976_v39 }
 0x21a   :  { %v3039_v62 = vpop.f32.mrf.mxu1  ;;  %5387 = verf.f32 %v3207_v18  ;;  %v3086_v8 = vadd.f32 %v4664_v2, %v2057_v35 }
 0x21b   :  { %v4666_v46 = vpop.f32.mrf.mxu0  ;;  %v3211_v51 = vmul.f32 0.70710677, %v5973_v37  ;;  %v5983_v63 = vadd.f32 %v3039_v62, %v2987_v61 }
 0x21c   :  { %v3041_v26 = vpop.f32.mrf.mxu1  ;;  %v4667_v15 = vadd.f32 %v4666_v46, %v4665_v55 }
 0x21d   :  { %v4668_v24 = vpop.f32.mrf.mxu0  ;;  %v5980_v41 = vadd.f32 %v3041_v26, %v2989_v38  ;;  %5389 = verf.f32 %v3211_v51  ;;  %v3213_v40 = vmul.f32 0.70710677, %v5983_v63 }
 0x21e   :  { %v3043_v22 = vpop.f32.mrf.mxu1  ;;  %5391 = verf.f32 %v3210_v58  ;;  %v3091_v30 = vadd.f32 %v4667_v15, %v2057_v35 }
 0x21f   :  { %v4669_v44 = vpop.f32.mrf.mxu0  ;;  %v3214_v14 = vmul.f32 0.70710677, %v5980_v41  ;;  %v5989_v10 = vadd.f32 %v3043_v22, %v2991_v6  ;;  %v2043_v6 = vld [vmem:[%s6289_s11] sm:$0x7] }
 0x220   :  { %v3045_v57 = vpop.f32.mrf.mxu1  ;;  %v4670_v55 = vadd.f32 %v4669_v44, %v4668_v24 }
 0x221   :  { %v5986_v7 = vadd.f32 %v3045_v57, %v2993_v1  ;;  %5393 = verf.f32 %v3214_v14  ;;  %v3216_v28 = vmul.f32 0.70710677, %v5989_v10 }
 0x222   :  { %5395 = verf.f32 %v3213_v40  ;;  %v3094_v51 = vadd.f32 %v4670_v55, %v2057_v35  ;;  %v3195_v35 = vmul.f32 0.5, %v5970_v13  ;;  %v3201_v55 = vmul.f32 0.5, %v5983_v63 }
 0x223   :  { %v3217_v25 = vmul.f32 0.70710677, %v5986_v7 }
 0x226   :  { %v5386_v38 = vpop.eup %5385 }
 0x227   :  { %v5388_v61 = vpop.eup %5387  ;;  %v3232_v58 = vadd.f32 1.0, %v5386_v38 }
 0x228   :  { %v3231_v1 = vadd.f32 1.0, %v5388_v61 }
 0x22a   :  { %v5390_v24 = vpop.eup %5389  ;;  %v3243_v40 = vmul.f32 %v3231_v1, %v3195_v35 }
 0x22b   :  { %v5392_v2 = vpop.eup %5391 }
 0x22c   :  { %v3234_v15 = vadd.f32 1.0, %v5392_v2 }
 0x231   :  { %v4687_v32 = vpop.f32.mrf.mxu0 }
 0x232   :  { %v4715_v52 = vpop.f32.mrf.mxu1 }
 0x233   :  { %v4688_v17 = vpop.f32.mrf.mxu0 }
 0x234   :  { %v4716_v36 = vpop.f32.mrf.mxu1  ;;  %v4689_v45 = vadd.f32 %v4688_v17, %v4687_v32 }
 0x235   :  { %v4690_v59 = vpop.f32.mrf.mxu0  ;;  %v4717_v9 = vadd.f32 %v4716_v36, %v4715_v52 }
 0x236   :  { %v4718_v50 = vpop.f32.mrf.mxu1  ;;  %v3132_v5 = vadd.f32 %v4689_v45, %v3083_v49  ;;  %v3196_v49 = vmul.f32 0.5, %v5968_v27  ;;  %v3259_v27 = vrot.slane %v2043_v6, %v5849_v53 }
 0x237   :  { %v4691_v0 = vpop.f32.mrf.mxu0 }
 0x238   :  { %v4719_v62 = vpop.f32.mrf.mxu1  ;;  %v3181_v11 = vadd.f32 %v4717_v9, %v3132_v5  ;;  %v4692_v3 = vadd.f32 %v4691_v0, %v4690_v59  ;;  %v3244_v14 = vmul.f32 %v3232_v58, %v3196_v49  ;;  %v3235_v59 = vadd.f32 1.0, %v5390_v24  ;;  %v5394_v5 = vpop.eup %5393 }
 0x239   :  { %v4693_v19 = vpop.f32.mrf.mxu0  ;;  %v4720_v56 = vadd.f32 %v4719_v62, %v4718_v50  ;;  %v3263_v50 = vrot.slane %v2043_v6, %v5857_v60  ;;  %v3199_v0 = vmul.f32 0.5, %v5973_v37  ;;  %v5396_v62 = vpop.eup %5395  ;;  %v3267_v60 = vrot.slane %v2043_v6, %v5939_v4 }
 0x23a   :  { %v4721_v20 = vpop.f32.mrf.mxu1  ;;  %v3209_v26 = vmul.f32 0.70710677, %v3181_v11  ;;  %v3135_v12 = vadd.f32 %v4692_v3, %v3086_v8  ;;  %v3198_v3 = vmul.f32 0.5, %v5976_v39  ;;  %v3271_v37 = vmul.f32 %v3259_v27, %v3243_v40 }
 0x23b   :  { %v4694_v31 = vpop.f32.mrf.mxu0  ;;  %v3272_v13 = vmul.f32 %v3263_v50, %v3244_v14 }
 0x23c   :  { %v4722_v22 = vpop.f32.mrf.mxu1  ;;  %5397 = verf.f32 %v3209_v26  ;;  %v3184_v46 = vadd.f32 %v4720_v56, %v3135_v12  ;;  %v4695_v29 = vadd.f32 %v4694_v31, %v4693_v19  ;;  %v3247_v19 = vmul.f32 %v3235_v59, %v3199_v0  ;;  %v3682_v0 = vld [vmem:[#allocation13 + $0x1f8] sm:$0xff] }
 0x23d   :  { %v4696_v33 = vpop.f32.mrf.mxu0  ;;  %5399 = verf.f32 %v3217_v25  ;;  %v4723_v47 = vadd.f32 %v4722_v22, %v4721_v20  ;;  %v3238_v20 = vadd.f32 1.0, %v5394_v5  ;;  %v3197_v25 = vmul.f32 0.5, %v3181_v11  ;;  %4762 = vmatprep.subr.mxu1 %v3682_v0 }
 0x23e   :  { %v4724_v34 = vpop.f32.mrf.mxu1  ;;  %v3212_v18 = vmul.f32 0.70710677, %v3184_v46  ;;  %v3140_v57 = vadd.f32 %v4695_v29, %v3091_v30  ;;  %5401 = verf.f32 %v3216_v28  ;;  %v3246_v56 = vmul.f32 %v3234_v15, %v3198_v3 }
 0x23f   :  { %v4697_v23 = vpop.f32.mrf.mxu0  ;;  %v3237_v28 = vadd.f32 1.0, %v5396_v62  ;;  %v3202_v30 = vmul.f32 0.5, %v5980_v41  ;;  %v3283_v39 = vadd.f32 %v3272_v13, %v3271_v37  ;;  %v3200_v38 = vmul.f32 0.5, %v3184_v46  ;;  %v3634_v62 = vld [vmem:[#allocation13 + $0x78] sm:$0xff] }
 0x240   :  { %v4725_v54 = vpop.f32.mrf.mxu1  ;;  %5403 = verf.f32 %v3212_v18  ;;  %v3189_v32 = vadd.f32 %v4723_v47, %v3140_v57  ;;  %v4698_v52 = vadd.f32 %v4697_v23, %v4696_v33  ;;  %v3275_v33 = vmul.f32 %v3263_v50, %v3247_v19  ;;  %v1847_v19 = vld [vmem:[%s6282_s4 + $0x8] sm:$0xff] }
 0x241   :  { %v4726_v36 = vadd.f32 %v4725_v54, %v4724_v34  ;;  %v3250_v29 = vmul.f32 %v3238_v20, %v3202_v30  ;;  %v3249_v57 = vmul.f32 %v3237_v28, %v3201_v55  ;;  %v3274_v4 = vmul.f32 %v3259_v27, %v3246_v56 }
 0x242   :  { %v3215_v44 = vmul.f32 0.70710677, %v3189_v32  ;;  %v3143_v17 = vadd.f32 %v4698_v52, %v3094_v51  ;;  %v3205_v23 = vmul.f32 0.5, %v5986_v7  ;;  %v3204_v51 = vmul.f32 0.5, %v5989_v10 }
 0x243   :  { %v3287_v52 = vadd.f32 %v3275_v33, %v3274_v4  ;;  %v3278_v58 = vmul.f32 %v3263_v50, %v3250_v29  ;;  %v3203_v24 = vmul.f32 0.5, %v3189_v32  ;;  %v3277_v46 = vmul.f32 %v3259_v27, %v3249_v57  ;;  %v155_v29 = vld [vmem:[%s6280_s2] sm:$0xff] }
 0x244   :  { %5405 = verf.f32 %v3215_v44  ;;  %v3192_v45 = vadd.f32 %v4726_v36, %v3143_v17  ;;  %vm3310_vm1 = vcmp.eq.f32.partialorder %v1847_v19, 0.0  ;;  %vm1619_vm5 = vcmp.eq.f32.partialorder %v155_v29, 0.0 }
 0x245   :  { %v3291_v6 = vadd.f32 %v3278_v58, %v3277_v46 }
 0x246   :  { %v3218_v9 = vmul.f32 0.70710677, %v3192_v45  ;;  %v3206_v35 = vmul.f32 0.5, %v3192_v45  ;;  %v5623_v45 = vmov 0  }
 0x247   :  { %4952 = vset.pattern.permute.xlu1 %v5623_v45  ;;  %4951 = vset.pattern.permute.xlu0 %v5623_v45 }
 0x248   :  { %5407 = verf.f32 %v3218_v9 }
 0x249   :  { %v5398_v8 = vpop.eup %5397 }
 0x24a   :  { %v3233_v26 = vadd.f32 1.0, %v5398_v8  ;;  %v5400_v12 = vpop.eup %5399  ;;  %v3681_v8 = vld [vmem:[#allocation13 + $0x1f0] sm:$0xff] }
 0x24b   :  { %v5402_v31 = vpop.eup %5401  ;;  %v3241_v34 = vadd.f32 1.0, %v5400_v12 }
 0x24c   :  { %v3245_v53 = vmul.f32 %v3233_v26, %v3197_v25  ;;  %v3240_v47 = vadd.f32 1.0, %v5402_v31 }
 0x24d   :  { %v5404_v22 = vpop.eup %5403  ;;  %v3253_v63 = vmul.f32 %v3241_v34, %v3205_v23 }
 0x24e   :  { %v3273_v11 = vmul.f32 %v3267_v60, %v3245_v53  ;;  %v3236_v18 = vadd.f32 1.0, %v5404_v22  ;;  %v3252_v36 = vmul.f32 %v3240_v47, %v3204_v51  ;;  %v1849_v53 = vld [vmem:[%s6282_s4 + $0x18] sm:$0xff]  ;;  %v4400_v22 = vld [vmem:[#allocation2] ss:$0 sm:$0xff] }
 0x24f   :  { %v3281_v59 = vmul.f32 %v3263_v50, %v3253_v63  ;;  %v3650_v50 = vld [vmem:[#allocation13 + $0xf8] sm:$0xff]  ;;  %vm3312_vm4 = vcmp.eq.f32.partialorder %v1849_v53, 0.0 }
 0x250   :  { %v3284_v54 = vadd.f32 %v3283_v39, %v3273_v11  ;;  %v3248_v41 = vmul.f32 %v3236_v18, %v3200_v38  ;;  %v3280_v9 = vmul.f32 %v3259_v27, %v3252_v36  ;;  %4727 = vmatprep.subr.mxu0 %v3650_v50  ;;  %v3666_v27 = vld [vmem:[#allocation13 + $0x178] sm:$0xff]  ;;  %v156_v18 = vld [vmem:[%s6280_s2 + $0x8] sm:$0xff] }
 0x251   :  { %v5406_v61 = vpop.eup %5405  ;;  %4728 = vmatpush3.msra.mxu0 %v3634_v62  ;;  %4763 = vmatpush3.msra.mxu1 %v3666_v27  ;;  %vm1620_vm6 = vcmp.eq.f32.partialorder %v156_v18, 0.0 }
 0x252   :  { %3285 = vadd.xlane.f32.xlu0 %v3284_v54  ;;  %v3276_v44 = vmul.f32 %v3267_v60, %v3248_v41  ;;  %v3239_v17 = vadd.f32 1.0, %v5406_v61  ;;  %v3295_v40 = vadd.f32 %v3281_v59, %v3280_v9  ;;  %4764 = vmatprep.subr.mxu1 %v3681_v8  ;;  %v157_v41 = vld [vmem:[%s6280_s2 + $0x10] sm:$0xff] }
 0x253   :  { %vm1621_vm7 = vcmp.eq.f32.partialorder %v157_v41, 0.0 }
 0x254   :  { %v3288_v1 = vadd.f32 %v3287_v52, %v3276_v44  ;;  %v3251_v49 = vmul.f32 %v3239_v17, %v3203_v24  ;;  %v158_v24 = vld [vmem:[%s6280_s2 + $0x18] sm:$0xff] }
 0x255   :  { %v5408_v2 = vpop.eup %5407  ;;  %vm1622_vm8 = vcmp.eq.f32.partialorder %v158_v24, 0.0 }
 0x256   :  { %3289 = vadd.xlane.f32.xlu0 %v3288_v1  ;;  %v3279_v7 = vmul.f32 %v3267_v60, %v3251_v49  ;;  %v3242_v14 = vadd.f32 1.0, %v5408_v2 }
 0x258   :  { %v3292_v5 = vadd.f32 %v3291_v6, %v3279_v7  ;;  %v3254_v10 = vmul.f32 %v3242_v14, %v3206_v35 }
 0x25a   :  { %3293 = vadd.xlane.f32.xlu1 %v3292_v5  ;;  %1595 = vadd.xlane.f32.xlu0 %v5954_v43  ;;  %v3282_v32 = vmul.f32 %v3267_v60, %v3254_v10  ;;  %v3649_v43 = vld [vmem:[#allocation13 + $0xf0] sm:$0xff] }
 0x25b   :  { %4729 = vmatprep.subr.mxu0 %v3649_v43  ;;  %v1848_v60 = vld [vmem:[%s6282_s4 + $0x10] sm:$0xff] }
 0x25c   :  { %v3296_v15 = vadd.f32 %v3295_v40, %v3282_v32  ;;  %vm3311_vm3 = vcmp.eq.f32.partialorder %v1848_v60, 0.0 }
 0x25e   :  { %3297 = vadd.xlane.f32.xlu1 %v3296_v15  ;;  %1603 = vadd.xlane.f32.xlu0 %v5959_v21  ;;  %v4557_v21 = vld [vmem:[#allocation3] ss:$0 sm:$0xff] }
 0x262   :  { %1599 = vadd.xlane.f32.xlu1 %v5957_v16  ;;  %v1846_v16 = vld [vmem:[%s6282_s4] sm:$0xff] }
 0x263   :  { %vm3309_vm0 = vcmp.eq.f32.partialorder %v1846_v16, 0.0 }
 0x266   :  { %1607 = vadd.xlane.f32.xlu1 %v5961_v48 }
 0x2db   :  { %v3286_v48 = vpop.xlane.xlu0 %3285 }
 0x2dc   :  { %v3305_v3 = vadd.f32 %v4557_v21, %v3286_v48 }
 0x2de   :  { %v3313_v13 = vsel %vm3309_vm0, -1e+09, %v3305_v3 }
 0x2df   :  { %v3290_v20 = vpop.xlane.xlu0 %3289  ;;  %v3317_v12 = vsel %vm1627_vm2, %v3313_v13, -inf }
 0x2e0   :  { %v3306_v25 = vadd.f32 %v4557_v21, %v3290_v20 }
 0x2e2   :  { %v3314_v26 = vsel %vm3310_vm1, -1e+09, %v3306_v25 }
 0x2e3   :  { %v3318_v56 = vsel %vm1627_vm2, %v3314_v26, -inf  ;;  %v3294_v28 = vpop.xlane.xlu1 %3293  ;;  %v1596_v31 = vpop.xlane.xlu0 %1595 }
 0x2e4   :  { %v3319_v30 = vmax.f32 %v3317_v12, %v3318_v56  ;;  %v3307_v37 = vadd.f32 %v4557_v21, %v3294_v28  ;;  %v1615_v38 = vadd.f32 %v4400_v22, %v1596_v31 }
 0x2e6   :  { %v3320_v55 = vrot.slane %v3319_v30, 4  ;;  %v3315_v34 = vsel %vm3311_vm3, -1e+09, %v3307_v37  ;;  %v1623_v52 = vsel %vm1619_vm5, -1e+09, %v1615_v38 }
 0x2e7   :  { %v3298_v39 = vpop.xlane.xlu1 %3297  ;;  %v1604_v47 = vpop.xlane.xlu0 %1603  ;;  %v3326_v23 = vsel %vm1627_vm2, %v3315_v34, -inf  ;;  %v1628_v1 = vsel %vm1627_vm2, %v1623_v52, -inf }
 0x2e8   :  { %v3321_v33 = vmax.f32 %v3319_v30, %v3320_v55  ;;  %v3308_v11 = vadd.f32 %v4557_v21, %v3298_v39  ;;  %v1617_v44 = vadd.f32 %v4400_v22, %v1604_v47 }
 0x2ea   :  { %v3322_v57 = vrot.slane %v3321_v33, 2  ;;  %v3316_v4 = vsel %vm3312_vm4, -1e+09, %v3308_v11  ;;  %v1625_v59 = vsel %vm1621_vm7, -1e+09, %v1617_v44 }
 0x2eb   :  { %v3327_v54 = vsel %vm1627_vm2, %v3316_v4, -inf  ;;  %v1600_v61 = vpop.xlane.xlu1 %1599  ;;  %v1637_v62 = vsel %vm1627_vm2, %v1625_v59, -inf }
 0x2ec   :  { %v3323_v51 = vmax.f32 %v3321_v33, %v3322_v57  ;;  %v3328_v58 = vmax.f32 %v3326_v23, %v3327_v54  ;;  %v1616_v63 = vadd.f32 %v4400_v22, %v1600_v61 }
 0x2ee   :  { %v3324_v17 = vrot.slane %v3323_v51, 1  ;;  %v3329_v46 = vrot.slane %v3328_v58, 4  ;;  %v1624_v36 = vsel %vm1620_vm6, -1e+09, %v1616_v63 }
 0x2ef   :  { %v1629_v49 = vsel %vm1627_vm2, %v1624_v36, -inf  ;;  %v1608_v2 = vpop.xlane.xlu1 %1607 }
 0x2f0   :  { %v3325_v6 = vmax.f32 %v3323_v51, %v3324_v17  ;;  %v3330_v35 = vmax.f32 %v3328_v58, %v3329_v46  ;;  %v1630_v7 = vmax.f32 %v1628_v1, %v1629_v49  ;;  %v1618_v14 = vadd.f32 %v4400_v22, %v1608_v2 }
 0x2f2   :  { %v3335_v5 = vsub.f32 %v3313_v13, %v3325_v6  ;;  %v3336_v10 = vsub.f32 %v3314_v26, %v3325_v6  ;;  %v3331_v9 = vrot.slane %v3330_v35, 2  ;;  %v1631_v32 = vrot.slane %v1630_v7, 4 }
 0x2f3   :  { %v1626_v40 = vsel %vm1622_vm8, -1e+09, %v1618_v14 }
 0x2f4   :  { %v3339_v15 = vmul.f32 1.442695, %v3335_v5  ;;  %v3341_v45 = vmul.f32 1.442695, %v3336_v10  ;;  %v3332_v50 = vmax.f32 %v3330_v35, %v3331_v9  ;;  %v1632_v0 = vmax.f32 %v1630_v7, %v1631_v32 }
 0x2f5   :  { %v1638_v27 = vsel %vm1627_vm2, %v1626_v40, -inf }
 0x2f6   :  { %5409 = vpow2.f32 %v3339_v15  ;;  %v3333_v43 = vrot.slane %v3332_v50, 1  ;;  %v1633_v8 = vrot.slane %v1632_v0, 2  ;;  %v1639_v21 = vmax.f32 %v1637_v62, %v1638_v27 }
 0x2f7   :  { %5411 = vpow2.f32 %v3341_v45 }
 0x2f8   :  { %v3334_v16 = vmax.f32 %v3332_v50, %v3333_v43  ;;  %v1634_v48 = vmax.f32 %v1632_v0, %v1633_v8  ;;  %v1640_v3 = vrot.slane %v1639_v21, 4 }
 0x2fa   :  { %v3337_v19 = vsub.f32 %v3315_v34, %v3334_v16  ;;  %v3338_v20 = vsub.f32 %v3316_v4, %v3334_v16  ;;  %v1635_v13 = vrot.slane %v1634_v48, 1  ;;  %v1641_v25 = vmax.f32 %v1639_v21, %v1640_v3  ;;  %v3633_v3 = vld [vmem:[#allocation13 + $0x70] sm:$0xff] }
 0x2fb   :  { %4730 = vmatpush3.msra.mxu0 %v3633_v3  ;;  %v3621_v3 = vld [vmem:[#allocation13 + $0x10] sm:$0xff] }
 0x2fc   :  { %v3343_v26 = vmul.f32 1.442695, %v3337_v19  ;;  %v3345_v60 = vmul.f32 1.442695, %v3338_v20  ;;  %v1636_v12 = vmax.f32 %v1634_v48, %v1635_v13  ;;  %v1642_v56 = vrot.slane %v1641_v25, 2  ;;  %v3665_v19 = vld [vmem:[#allocation13 + $0x170] sm:$0xff] }
 0x2fd   :  { %4765 = vmatpush3.msra.mxu1 %v3665_v19  ;;  %v3653_v19 = vld [vmem:[#allocation13 + $0x110] sm:$0xff] }
 0x2fe   :  { %5413 = vpow2.f32 %v3343_v26  ;;  %v1646_v28 = vsub.f32 %v1623_v52, %v1636_v12  ;;  %v1647_v30 = vsub.f32 %v1624_v36, %v1636_v12  ;;  %v1643_v37 = vmax.f32 %v1641_v25, %v1642_v56  ;;  %v3648_v26 = vld [vmem:[#allocation13 + $0xe8] sm:$0xff] }
 0x2ff   :  { %5415 = vpow2.f32 %v3345_v60  ;;  %v3680_v60 = vld [vmem:[#allocation13 + $0x1e8] sm:$0xff]  ;;  %4731 = vmatprep.subr.mxu0 %v3648_v26 }
 0x300   :  { %v1650_v31 = vmul.f32 1.442695, %v1646_v28  ;;  %v1652_v53 = vmul.f32 1.442695, %v1647_v30  ;;  %v1644_v22 = vrot.slane %v1643_v37, 1  ;;  %4766 = vmatprep.subr.mxu1 %v3680_v60  ;;  %v3632_v12 = vld [vmem:[#allocation13 + $0x68] sm:$0xff] }
 0x301   :  { %v3664_v56 = vld [vmem:[#allocation13 + $0x168] sm:$0xff]  ;;  %v3647_v28 = vld [vmem:[#allocation13 + $0xe0] sm:$0xff]  ;;  %4732 = vmatpush3.msra.mxu0 %v3632_v12 }
 0x302   :  { %5417 = vpow2.f32 %v1650_v31  ;;  %v1645_v55 = vmax.f32 %v1643_v37, %v1644_v22  ;;  %v3679_v30 = vld [vmem:[#allocation13 + $0x1e0] sm:$0xff]  ;;  %v4210_v37 = vld [vmem:[%s6300_s5] sm:$0x3]  ;;  %4767 = vmatpush3.msra.mxu1 %v3664_v56  ;;  %4733 = vmatprep.subr.mxu0 %v3647_v28 }
 0x303   :  { %v5410_v29 = vpop.eup %5409  ;;  %5419 = vpow2.f32 %v1652_v53  ;;  %v3631_v31 = vld [vmem:[#allocation13 + $0x60] sm:$0xff]  ;;  %4768 = vmatprep.subr.mxu1 %v3679_v30  ;;  %v3714_v30 = vld [vmem:[#allocation13 + $0x2f8] sm:$0xff] }
 0x304   :  { %v5412_v39 = vpop.eup %5411  ;;  %v3347_v33 = vsel %vm1627_vm2, %v5410_v29, 0.0  ;;  %v1648_v34 = vsub.f32 %v1625_v59, %v1645_v55  ;;  %v1649_v38 = vsub.f32 %v1626_v40, %v1645_v55  ;;  %v3663_v53 = vld [vmem:[#allocation13 + $0x160] sm:$0xff]  ;;  %v3646_v55 = vld [vmem:[#allocation13 + $0xd8] sm:$0xff]  ;;  %4734 = vmatpush3.msra.mxu0 %v3631_v31 }
 0x305   :  { %v3348_v11 = vsel %vm1627_vm2, %v5412_v39, 0.0  ;;  %4769 = vmatpush3.msra.mxu1 %v3663_v53  ;;  %4735 = vmatprep.subr.mxu0 %v3646_v55  ;;  %v3635_v60 = vld [vmem:[#allocation13 + $0x80] sm:$0xff] }
 0x306   :  { %v3349_v18 = vadd.f32 %v3348_v11, %v3347_v33  ;;  %v1654_v57 = vmul.f32 1.442695, %v1648_v34  ;;  %v1656_v4 = vmul.f32 1.442695, %v1649_v38  ;;  %v3662_v33 = vld [vmem:[#allocation13 + $0x158] sm:$0xff]  ;;  %v3645_v34 = vld [vmem:[#allocation13 + $0xd0] sm:$0xff] }
 0x307   :  { %v3677_v38 = vld [vmem:[#allocation13 + $0x1d0] sm:$0xff]  ;;  %v3667_v12 = vld [vmem:[#allocation13 + $0x180] sm:$0xff] }
 0x308   :  { %v3350_v47 = vrot.slane %v3349_v18, 4  ;;  %5421 = vpow2.f32 %v1654_v57  ;;  %v3661_v57 = vld [vmem:[#allocation13 + $0x150] sm:$0xff]  ;;  %v3619_v56 = vld [vmem:[#allocation13] sm:$0xff] }
 0x309   :  { %5423 = vpow2.f32 %v1656_v4  ;;  %v3651_v28 = vld [vmem:[#allocation13 + $0x100] sm:$0xff] }
 0x30a   :  { %v3351_v23 = vadd.f32 %v3350_v47, %v3349_v18  ;;  %v3629_v18 = vld [vmem:[#allocation13 + $0x50] sm:$0xff]  ;;  %v3644_v47 = vld [vmem:[#allocation13 + $0xc8] sm:$0xff] }
 0x30b   :  { %v6045_v54 = vpop.eup %5413 }
 0x30c   :  { %v6047_v41 = vpop.eup %5415  ;;  %v3356_v61 = vsel %vm1627_vm2, %v6045_v54, 0.0  ;;  %v3352_v51 = vrot.slane %v3351_v23, 2 }
 0x30d   :  { %v3357_v52 = vsel %vm1627_vm2, %v6047_v41, 0.0 }
 0x30e   :  { %v3358_v58 = vadd.f32 %v3357_v52, %v3356_v61  ;;  %v3353_v63 = vadd.f32 %v3352_v51, %v3351_v23  ;;  %v3676_v23 = vld [vmem:[#allocation13 + $0x1c8] sm:$0xff]  ;;  %v3643_v52 = vld [vmem:[#allocation13 + $0xc0] sm:$0xff] }
 0x30f   :  { %v6053_v24 = vpop.eup %5417  ;;  %v3628_v61 = vld [vmem:[#allocation13 + $0x48] sm:$0xff] }
 0x310   :  { %v6055_v44 = vpop.eup %5419  ;;  %v3359_v17 = vrot.slane %v3358_v58, 4  ;;  %v1658_v46 = vsel %vm1627_vm2, %v6053_v24, 0.0  ;;  %v3354_v36 = vrot.slane %v3353_v63, 1  ;;  %v3660_v51 = vld [vmem:[#allocation13 + $0x148] sm:$0xff] }
 0x311   :  { %v1659_v1 = vsel %vm1627_vm2, %v6055_v44, 0.0 }
 0x312   :  { %v3360_v49 = vadd.f32 %v3359_v17, %v3358_v58  ;;  %v1660_v2 = vadd.f32 %v1659_v1, %v1658_v46  ;;  %v3355_v6 = vadd.f32 %v3354_v36, %v3353_v63  ;;  %v3675_v58 = vld [vmem:[#allocation13 + $0x1c0] sm:$0xff]  ;;  %v3642_v46 = vld [vmem:[#allocation13 + $0xb8] sm:$0xff] }
 0x313   :  { %v3627_v63 = vld [vmem:[#allocation13 + $0x40] sm:$0xff]  ;;  %v3674_v1 = vld [vmem:[#allocation13 + $0x1b8] sm:$0xff] }
 0x314   :  { %v1661_v35 = vrot.slane %v1660_v2, 4  ;;  %5425 = vrcp.f32 %v3355_v6  ;;  %v3361_v7 = vrot.slane %v3360_v49, 2  ;;  %v3641_v6 = vld [vmem:[#allocation13 + $0xb0] sm:$0xff] }
 0x315   :  { %v6061_v14 = vpop.eup %5421 }
 0x316   :  { %v6063_v59 = vpop.eup %5423  ;;  %v1662_v5 = vadd.f32 %v1661_v35, %v1660_v2  ;;  %v1667_v10 = vsel %vm1627_vm2, %v6061_v14, 0.0  ;;  %v3362_v9 = vadd.f32 %v3361_v7, %v3360_v49  ;;  %v3626_v49 = vld [vmem:[#allocation13 + $0x38] sm:$0xff]  ;;  %v3673_v35 = vld [vmem:[#allocation13 + $0x1b0] sm:$0xff] }
 0x317   :  { %v1668_v32 = vsel %vm1627_vm2, %v6063_v59, 0.0  ;;  %v3658_v2 = vld [vmem:[#allocation13 + $0x138] sm:$0xff] }
 0x318   :  { %v1669_v40 = vadd.f32 %v1668_v32, %v1667_v10  ;;  %v3363_v15 = vrot.slane %v3362_v9, 1  ;;  %v1663_v45 = vrot.slane %v1662_v5, 2  ;;  %v3640_v10 = vld [vmem:[#allocation13 + $0xa8] sm:$0xff] }
 0x319   :  { %v3624_v32 = vld [vmem:[#allocation13 + $0x28] sm:$0xff] }
 0x31a   :  { %v1670_v50 = vrot.slane %v1669_v40, 4  ;;  %v3364_v0 = vadd.f32 %v3363_v15, %v3362_v9  ;;  %v1664_v62 = vadd.f32 %v1663_v45, %v1662_v5  ;;  %v3657_v5 = vld [vmem:[#allocation13 + $0x130] sm:$0xff]  ;;  %v3672_v9 = vld [vmem:[#allocation13 + $0x1a8] sm:$0xff]  ;;  %v3639_v15 = vld [vmem:[#allocation13 + $0xa0] sm:$0xff] }
 0x31c   :  { %v1671_v27 = vadd.f32 %v1670_v50, %v1669_v40  ;;  %5427 = vrcp.f32 %v3364_v0  ;;  %v1665_v43 = vrot.slane %v1664_v62, 1  ;;  %v3656_v40 = vld [vmem:[#allocation13 + $0x128] sm:$0xff]  ;;  %v3623_v50 = vld [vmem:[#allocation13 + $0x20] sm:$0xff] }
 0x31e   :  { %v1666_v8 = vadd.f32 %v1665_v43, %v1664_v62  ;;  %v1672_v21 = vrot.slane %v1671_v27, 2  ;;  %v3655_v62 = vld [vmem:[#allocation13 + $0x120] sm:$0xff]  ;;  %v3670_v43 = vld [vmem:[#allocation13 + $0x198] sm:$0xff] }
 0x320   :  { %v1673_v16 = vadd.f32 %v1672_v21, %v1671_v27  ;;  %5429 = vrcp.f32 %v1666_v8  ;;  %v3638_v27 = vld [vmem:[#allocation13 + $0x98] sm:$0xff] }
 0x321   :  { %v5426_v48 = vpop.eup %5425  ;;  %v3622_v8 = vld [vmem:[#allocation13 + $0x18] sm:$0xff] }
 0x322   :  { %v3367_v20 = vmul.f32 %v5426_v48, %v5412_v39  ;;  %v3366_v13 = vmul.f32 %v5426_v48, %v5410_v29  ;;  %v1674_v25 = vrot.slane %v1673_v16, 1  ;;  %v3678_v29 = vld [vmem:[#allocation13 + $0x1d8] sm:$0xff]  ;;  %v3669_v48 = vld [vmem:[#allocation13 + $0x190] sm:$0xff] }
 0x323   :  { %v3630_v39 = vld [vmem:[#allocation13 + $0x58] sm:$0xff]  ;;  %4770 = vmatprep.subr.mxu1 %v3678_v29 }
 0x324   :  { %3402 = vperm.xlu1 %4952, %v3367_v20   ;;  %3397 = vperm.xlu0 %4951, %v3366_v13   ;;  %v1675_v22 = vadd.f32 %v1674_v25, %v1673_v16  ;;  %v3654_v21 = vld [vmem:[#allocation13 + $0x118] sm:$0xff]  ;;  %v3636_v20 = vld [vmem:[#allocation13 + $0x88] sm:$0xff] }
 0x325   :  { %4736 = vmatpush3.msra.mxu0 %v3630_v39  ;;  %4771 = vmatpush3.msra.mxu1 %v3662_v33  ;;  %v3668_v13 = vld [vmem:[#allocation13 + $0x188] sm:$0xff] }
 0x326   :  { %5431 = vrcp.f32 %v1675_v22  ;;  %4737 = vmatprep.subr.mxu0 %v3645_v34  ;;  %4772 = vmatprep.subr.mxu1 %v3677_v38  ;;  %v3620_v25 = vld [vmem:[#allocation13 + $0x8] sm:$0xff]  ;;  %v6082_v22 = vld [vmem:[#allocation4 + $0x18] sm:$0xff]  ;;  %v6090_v38 = vld [vmem:[#allocation4 + $0x20] sm:$0xff] }
 0x327   :  { %4738 = vmatpush3.msra.mxu0 %v3629_v18  ;;  %4773 = vmatpush3.msra.mxu1 %v3661_v57  ;;  %v1688_v55 = vunpack.c.l.bf16 %v6082_v22  ;;  %v1689_v29 = vunpack.c.h.bf16 %v6082_v22  ;;  %v6086_v39 = vld [vmem:[#allocation4 + $0x8] sm:$0xff]  ;;  %v1691_v18 = vunpack.c.h.bf16 %v6090_v38  ;;  %v6094_v57 = vld [vmem:[#allocation4 + $0x30] sm:$0xff] }
 0x328   :  { %4212 = vperm.xlu0 %4951, %v4210_v37   ;;  %4739 = vmatprep.subr.mxu0 %v3644_v47  ;;  %v3554_v37 = vld [vmem:[#allocation12 + $0xf8] sm:$0xff]  ;;  %v1684_v33 = vunpack.c.l.bf16 %v6086_v39  ;;  %v1685_v34 = vunpack.c.h.bf16 %v6086_v39 }
 0x329   :  { %v5428_v11 = vpop.eup %5427  ;;  %4774 = vmatprep.subr.mxu1 %v3676_v23  ;;  %4740 = vmatpush3.msra.mxu0 %v3628_v61  ;;  %v6098_v23 = vld [vmem:[#allocation4 + $0x48] sm:$0xff] }
 0x32a   :  { %v3369_v4 = vmul.f32 %v5428_v11, %v6045_v54  ;;  %v3370_v17 = vmul.f32 %v5428_v11, %v6047_v41  ;;  %4775 = vmatpush3.msra.mxu1 %v3660_v51  ;;  %v3659_v54 = vld [vmem:[#allocation13 + $0x140] sm:$0xff]  ;;  %4741 = vmatprep.subr.mxu0 %v3643_v52  ;;  %v3625_v41 = vld [vmem:[#allocation13 + $0x30] sm:$0xff]  ;;  %v1690_v11 = vunpack.c.l.bf16 %v6090_v38  ;;  %v6102_v52 = vld [vmem:[#allocation4 + $0x38] sm:$0xff] }
 0x32b   :  { %4776 = vmatprep.subr.mxu1 %v3675_v58  ;;  %4742 = vmatpush3.msra.mxu0 %v3627_v63  ;;  %v5457_v51 = vld [vmem:[#allocation7 + $0x38] sm:$0xff] }
 0x32c   :  { %3407 = vperm.xlu1 %4952, %v3369_v4   ;;  %4777 = vmatpush3.msra.mxu1 %v3659_v54  ;;  %v3385_v61 = vunpack.c.l.bf16 %v5457_v51 }
 0x32d   :  { %v5430_v36 = vpop.eup %5429  ;;  %4743 = vmatprep.subr.mxu0 %v3642_v46  ;;  %4778 = vmatprep.subr.mxu1 %v3674_v1 }
 0x32e   :  { %v1677_v7 = vmul.f32 %v5430_v36, %v6053_v24  ;;  %4744 = vmatpush3.msra.mxu0 %v3626_v49  ;;  %4779 = vmatpush3.msra.mxu1 %v3658_v2  ;;  %v1678_v45 = vmul.f32 %v5430_v36, %v6055_v44  ;;  %v3671_v24 = vld [vmem:[#allocation13 + $0x1a0] sm:$0xff]  ;;  %v3637_v44 = vld [vmem:[#allocation13 + $0x90] sm:$0xff]  ;;  %v6114_v2 = vld [vmem:[#allocation4 + $0x28] sm:$0xff] }
 0x32f   :  { %4745 = vmatprep.subr.mxu0 %v3641_v6  ;;  %4780 = vmatprep.subr.mxu1 %v3673_v35  ;;  %v6110_v36 = vld [vmem:[#allocation4 + $0x10] sm:$0xff]  ;;  %v1692_v6 = vunpack.c.l.bf16 %v6114_v2 }
 0x330   :  { %3412 = vperm.xlu1 %4952, %v3370_v17   ;;  %4746 = vmatpush3.msra.mxu0 %v3625_v41  ;;  %v6106_v17 = vld [vmem:[#allocation4 + $0x50] sm:$0xff]  ;;  %v1686_v1 = vunpack.c.l.bf16 %v6110_v36  ;;  %v1687_v49 = vunpack.c.h.bf16 %v6110_v36 }
 0x331   :  { %4781 = vmatpush3.msra.mxu1 %v3657_v5  ;;  %4747 = vmatprep.subr.mxu0 %v3640_v10  ;;  %v6122_v10 = vld [vmem:[#allocation4 + $0x58] sm:$0xff] }
 0x332   :  { %4782 = vmatprep.subr.mxu1 %v3672_v9  ;;  %4748 = vmatpush3.msra.mxu0 %v3624_v32 }
 0x333   :  { %v5432_v0 = vpop.eup %5431  ;;  %4783 = vmatpush3.msra.mxu1 %v3656_v40  ;;  %4749 = vmatprep.subr.mxu0 %v3639_v15  ;;  %v5449_v40 = vld [vmem:[#allocation7 + $0x18] sm:$0xff] }
 0x334   :  { %1708 = vperm.xlu1 %4952, %v1677_v7   ;;  %4784 = vmatprep.subr.mxu1 %v3671_v24  ;;  %v1680_v16 = vmul.f32 %v5432_v0, %v6061_v14  ;;  %v1681_v26 = vmul.f32 %v5432_v0, %v6063_v59  ;;  %v3652_v14 = vld [vmem:[#allocation13 + $0x108] sm:$0xff]  ;;  %v6078_v59 = vld [vmem:[#allocation4] sm:$0xff]  ;;  %v3377_v15 = vunpack.c.l.bf16 %v5449_v40 }
 0x335   :  { %4750 = vmatpush3.msra.mxu0 %v3623_v50  ;;  %4785 = vmatpush3.msra.mxu1 %v3655_v62  ;;  %v1682_v31 = vunpack.c.l.bf16 %v6078_v59  ;;  %v1683_v53 = vunpack.c.h.bf16 %v6078_v59  ;;  %v6118_v7 = vld [vmem:[#allocation4 + $0x40] sm:$0xff] }
 0x336   :  { %4751 = vmatprep.subr.mxu0 %v3638_v27  ;;  %4786 = vmatprep.subr.mxu1 %v3670_v43  ;;  %v5450_v24 = vld [vmem:[#allocation7 + $0x20] sm:$0xff] }
 0x337   :  { %4752 = vmatpush3.msra.mxu0 %v3622_v8  ;;  %4787 = vmatpush3.msra.mxu1 %v3654_v21  ;;  %v3379_v50 = vunpack.c.l.bf16 %v5450_v24  ;;  %v3380_v0 = vunpack.c.h.bf16 %v5450_v24  ;;  %v5451_v62 = vld [vmem:[#allocation7] sm:$0xff]  ;;  %v5452_v8 = vld [vmem:[#allocation7 + $0x28] sm:$0xff] }
 0x338   :  { %1713 = vperm.xlu1 %4952, %v1678_v45   ;;  %4753 = vmatprep.subr.mxu0 %v3637_v44  ;;  %v3378_v45 = vunpack.c.h.bf16 %v5449_v40  ;;  %v3371_v27 = vunpack.c.l.bf16 %v5451_v62  ;;  %v3372_v43 = vunpack.c.h.bf16 %v5451_v62  ;;  %v3381_v21 = vunpack.c.l.bf16 %v5452_v8  ;;  %v5453_v44 = vld [vmem:[#allocation7 + $0x8] sm:$0xff] }
 0x339   :  { %4788 = vmatprep.subr.mxu1 %v3669_v48  ;;  %4754 = vmatpush3.msra.mxu0 %v3621_v3  ;;  %v3373_v48 = vunpack.c.l.bf16 %v5453_v44  ;;  %v3374_v3 = vunpack.c.h.bf16 %v5453_v44 }
 0x33a   :  { %4789 = vmatpush3.msra.mxu1 %v3653_v19  ;;  %4755 = vmatprep.subr.mxu0 %v3636_v20  ;;  %v5454_v19 = vld [vmem:[#allocation7 + $0x10] sm:$0xff] }
 0x33b   :  { %4790 = vmatprep.subr.mxu1 %v3668_v13  ;;  %4756 = vmatpush3.msra.mxu0 %v3620_v25  ;;  %v3375_v20 = vunpack.c.l.bf16 %v5454_v19  ;;  %v3376_v13 = vunpack.c.h.bf16 %v5454_v19  ;;  %v5455_v25 = vld [vmem:[#allocation7 + $0x30] sm:$0xff] }
 0x33c   :  { %1718 = vperm.xlu1 %4952, %v1680_v16   ;;  %4791 = vmatpush3.msra.mxu1 %v3652_v14  ;;  %v3382_v16 = vunpack.c.h.bf16 %v5452_v8  ;;  %v3384_v14 = vunpack.c.h.bf16 %v5455_v25 }
 0x33d   :  { %4757 = vmatprep.subr.mxu0 %v3635_v60  ;;  %4792 = vmatprep.subr.mxu1 %v3667_v12  ;;  %v5456_v60 = vld [vmem:[#allocation7 + $0x48] sm:$0xff] }
 0x33e   :  { %4758 = vmatpush3.msra.mxu0 %v3619_v56  ;;  %4793 = vmatpush3.msra.mxu1 %v3651_v28  ;;  %v3389_v12 = vunpack.c.l.bf16 %v5456_v60  ;;  %v3390_v56 = vunpack.c.h.bf16 %v5456_v60  ;;  %v5458_v60 = vld [vmem:[#allocation7 + $0x50] sm:$0xff] }
 0x33f   :  { %4797 = vmatprep.subr.mxu0 %v3714_v30  ;;  %4832 = vmatprep.subr.mxu1 %v3554_v37  ;;  %v3391_v63 = vunpack.c.l.bf16 %v5458_v60 }
 0x340   :  { %1723 = vperm.xlu1 %4952, %v1681_v26   ;;  %v3383_v26 = vunpack.c.l.bf16 %v5455_v25  ;;  %v3386_v25 = vunpack.c.h.bf16 %v5457_v51 }
 0x39f   :  { %v3403_v28 = vpop.permute.xlu1 %3402  ;;  %v3398_v30 = vpop.permute.xlu0 %3397 }
 0x3a0   :  { %v3421_v37 = vmul.f32 %v3403_v28, %v3377_v15  ;;  %v3422_v40 = vmul.f32 %v3403_v28, %v3378_v45  ;;  %v3423_v24 = vmul.f32 %v3403_v28, %v3379_v50  ;;  %v3424_v62 = vmul.f32 %v3403_v28, %v3380_v0 }
 0x3a1   :  { %v3425_v42 = vmul.f32 %v3403_v28, %v3381_v21  ;;  %v3426_v8 = vmul.f32 %v3403_v28, %v3382_v16  ;;  %v3415_v32 = vmul.f32 %v3398_v30, %v3371_v27  ;;  %v3416_v9 = vmul.f32 %v3398_v30, %v3372_v43  ;;  %v5459_v27 = vld [vmem:[#allocation7 + $0x40] sm:$0xff] }
 0x3a2   :  { %v3417_v44 = vmul.f32 %v3398_v30, %v3373_v48  ;;  %v3418_v46 = vmul.f32 %v3398_v30, %v3374_v3  ;;  %v3419_v54 = vmul.f32 %v3398_v30, %v3375_v20  ;;  %v3420_v19 = vmul.f32 %v3398_v30, %v3376_v13 }
 0x3a3   :  { %v3439_v5 = vadd.f32 %v3421_v37, %v3415_v32  ;;  %v3446_v41 = vadd.f32 %v3422_v40, %v3416_v9  ;;  %v3392_v50 = vunpack.c.h.bf16 %v5458_v60  ;;  %v3387_v43 = vunpack.c.l.bf16 %v5459_v27  ;;  %v5460_v9 = vld [vmem:[#allocation7 + $0x58] sm:$0xff] }
 0x3a4   :  { %v3453_v58 = vadd.f32 %v3423_v24, %v3417_v44  ;;  %v3467_v15 = vadd.f32 %v3425_v42, %v3419_v54  ;;  %v3460_v45 = vadd.f32 %v3424_v62, %v3418_v46  ;;  %v3474_v16 = vadd.f32 %v3426_v8, %v3420_v19 }
 0x3a5   :  { %v3440_v0 = vrot.slane %v3439_v5, 4  ;;  %v3447_v21 = vrot.slane %v3446_v41, 4  ;;  %v3388_v48 = vunpack.c.h.bf16 %v5459_v27  ;;  %v3393_v37 = vunpack.c.l.bf16 %v5460_v9 }
 0x3a6   :  { %v3454_v3 = vrot.slane %v3453_v58, 4  ;;  %v3461_v20 = vrot.slane %v3460_v45, 4  ;;  %v3475_v51 = vrot.slane %v3474_v16, 4  ;;  %v3468_v32 = vrot.slane %v3467_v15, 4 }
 0x3a7   :  { %v3408_v13 = vpop.permute.xlu1 %3407  ;;  %v3448_v28 = vadd.f32 %v3447_v21, %v3446_v41  ;;  %v3441_v30 = vadd.f32 %v3440_v0, %v3439_v5  ;;  %v3394_v40 = vunpack.c.h.bf16 %v5460_v9 }
 0x3a8   :  { %v3427_v24 = vmul.f32 %v3408_v13, %v3383_v26  ;;  %v3428_v42 = vmul.f32 %v3408_v13, %v3384_v14  ;;  %v3429_v54 = vmul.f32 %v3408_v13, %v3385_v61  ;;  %v3430_v46 = vmul.f32 %v3408_v13, %v3386_v25 }
 0x3a9   :  { %v3449_v62 = vrot.slane %v3448_v28, 2  ;;  %v3462_v44 = vadd.f32 %v3461_v20, %v3460_v45  ;;  %v3431_v8 = vmul.f32 %v3408_v13, %v3387_v43  ;;  %v6126_v19 = vmul.f32 %v3408_v13, %v3388_v48 }
 0x3aa   :  { %v3442_v60 = vrot.slane %v3441_v30, 2  ;;  %v3455_v27 = vadd.f32 %v3454_v3, %v3453_v58  ;;  %v6128_v5 = vadd.f32 %v3475_v51, %v3474_v16  ;;  %v6130_v0 = vadd.f32 %v3468_v32, %v3467_v15 }
 0x3ab   :  { %v3413_v47 = vpop.permute.xlu1 %3412  ;;  %v3450_v4 = vadd.f32 %v3449_v62, %v3448_v28  ;;  %v3463_v41 = vrot.slane %v3462_v44, 2 }
 0x3ac   :  { %v3433_v21 = vmul.f32 %v3413_v47, %v3389_v12  ;;  %v3434_v9 = vmul.f32 %v3413_v47, %v3390_v56  ;;  %v3435_v26 = vmul.f32 %v3413_v47, %v3391_v63  ;;  %v3436_v14 = vmul.f32 %v3413_v47, %v3392_v50 }
 0x3ad   :  { %v3437_v61 = vmul.f32 %v3413_v47, %v3393_v37  ;;  %v3438_v25 = vmul.f32 %v3413_v47, %v3394_v40  ;;  %v3451_v35 = vrot.slane %v3450_v4, 1  ;;  %v3464_v45 = vadd.f32 %v3463_v41, %v3462_v44 }
 0x3ae   :  { %v3481_v43 = vadd.f32 %v3433_v21, %v3427_v24  ;;  %v3495_v48 = vadd.f32 %v3435_v26, %v3429_v54  ;;  %v3488_v20 = vadd.f32 %v3434_v9, %v3428_v42  ;;  %v3502_v13 = vadd.f32 %v3436_v14, %v3430_v46 }
 0x3af   :  { %v6132_v58 = vadd.f32 %v3437_v61, %v3431_v8  ;;  %v1709_v3 = vpop.permute.xlu1 %1708  ;;  %v6134_v28 = vadd.f32 %v3451_v35, %v3450_v4  ;;  %v3465_v16 = vrot.slane %v3464_v45, 1  ;;  %v3443_v15 = vadd.f32 %v3442_v60, %v3441_v30 }
 0x3b0   :  { %v3482_v51 = vrot.slane %v3481_v43, 4  ;;  %v3496_v12 = vrot.slane %v3495_v48, 4  ;;  %v1726_v63 = vmul.f32 %v1709_v3, %v1682_v31  ;;  %v1727_v47 = vmul.f32 %v1709_v3, %v1683_v53 }
 0x3b1   :  { %v1728_v56 = vmul.f32 %v1709_v3, %v1684_v33  ;;  %v6144_v50 = vmul.f32 %v1709_v3, %v1685_v34  ;;  %v1730_v4 = vmul.f32 %v1709_v3, %v1686_v1  ;;  %v6150_v35 = vmul.f32 %v1709_v3, %v1687_v49 }
 0x3b2   :  { %v3489_v30 = vrot.slane %v3488_v20, 4  ;;  %v3466_v32 = vadd.f32 %v3465_v16, %v3464_v45  ;;  %v3503_v31 = vrot.slane %v3502_v13, 4  ;;  %v3444_v37 = vrot.slane %v3443_v15, 1 }
 0x3b3   :  { %v1714_v59 = vpop.permute.xlu1 %1713  ;;  %v3483_v53 = vadd.f32 %v3482_v51, %v3481_v43  ;;  %v3456_v40 = vrot.slane %v3455_v27, 2  ;;  %v3497_v24 = vadd.f32 %v3496_v12, %v3495_v48  ;;  %v3477_v33 = vrot.slane %v6128_v5, 2 }
 0x3b4   :  { %v1732_v39 = vmul.f32 %v1714_v59, %v1688_v55  ;;  %v1733_v34 = vmul.f32 %v1714_v59, %v1689_v29  ;;  %v1734_v36 = vmul.f32 %v1714_v59, %v1690_v11  ;;  %v6161_v1 = vmul.f32 %v1714_v59, %v1691_v18 }
 0x3b5   :  { %v1736_v49 = vmul.f32 %v1714_v59, %v1692_v6  ;;  %v6301_v42 = vunpack.c.h.bf16 %v6114_v2  ;;  %v3490_v46 = vadd.f32 %v3489_v30, %v3488_v20  ;;  %v3504_v55 = vadd.f32 %v3503_v31, %v3502_v13 }
 0x3b6   :  { %v6169_v62 = vadd.f32 %v1732_v39, %v1726_v63  ;;  %v6171_v22 = vadd.f32 %v1734_v36, %v1728_v56  ;;  %v3445_v29 = vadd.f32 %v3444_v37, %v3443_v15  ;;  %v3484_v11 = vrot.slane %v3483_v53, 2 }
 0x3b7   :  { %v6167_v54 = vmul.f32 %v1714_v59, %v6301_v42  ;;  %v6173_v44 = vadd.f32 %v1736_v49, %v1730_v4  ;;  %v1719_v38 = vpop.permute.xlu1 %1718  ;;  %v3491_v18 = vrot.slane %v3490_v46, 2  ;;  %v3505_v8 = vrot.slane %v3504_v55, 2 }
 0x3b8   :  { %v3457_v60 = vadd.f32 %v3456_v40, %v3455_v27  ;;  %v6302_v6 = vunpack.c.l.bf16 %v6094_v57  ;;  %v6303_v2 = vunpack.c.h.bf16 %v6094_v57  ;;  %v6304_v9 = vunpack.c.l.bf16 %v6102_v52 }
 0x3b9   :  { %v6305_v14 = vunpack.c.h.bf16 %v6102_v52  ;;  %v6306_v45 = vunpack.c.l.bf16 %v6118_v7  ;;  %v6307_v48 = vunpack.c.h.bf16 %v6118_v7  ;;  %v3492_v27 = vadd.f32 %v3491_v18, %v3490_v46 }
 0x3ba   :  { %v1738_v41 = vmul.f32 %v1719_v38, %v6302_v6  ;;  %v1739_v21 = vmul.f32 %v1719_v38, %v6303_v2  ;;  %v1740_v26 = vmul.f32 %v1719_v38, %v6304_v9  ;;  %v3506_v13 = vadd.f32 %v3505_v8, %v3504_v55  ;;  %v3698_v6 = vld [vmem:[#allocation13 + $0x278] sm:$0xff] }
 0x3bb   :  { %v6183_v61 = vmul.f32 %v1719_v38, %v6305_v14  ;;  %v1742_v43 = vmul.f32 %v1719_v38, %v6306_v45  ;;  %v6189_v20 = vmul.f32 %v1719_v38, %v6307_v48  ;;  %v3485_v3 = vadd.f32 %v3484_v11, %v3483_v53  ;;  %v1724_v51 = vpop.permute.xlu1 %1723  ;;  %v3697_v45 = vld [vmem:[#allocation13 + $0x270] sm:$0xff] }
 0x3bc   :  { %v3458_v16 = vrot.slane %v3457_v60, 1  ;;  %v3498_v57 = vrot.slane %v3497_v24, 2  ;;  %v3478_v15 = vadd.f32 %v3477_v33, %v6128_v5  ;;  %v3493_v12 = vrot.slane %v3492_v27, 1 }
 0x3bd   :  { %v3507_v63 = vrot.slane %v3506_v13, 1  ;;  %v3516_v52 = vadd.f32 %v3438_v25, %v6126_v19  ;;  %v1757_v56 = vadd.f32 %v1733_v34, %v1727_v47  ;;  %v6308_v4 = vunpack.c.l.bf16 %v6098_v23 }
 0x3be   :  { %v6309_v7 = vunpack.c.h.bf16 %v6098_v23  ;;  %v6310_v37 = vunpack.c.l.bf16 %v6106_v17  ;;  %v6311_v53 = vunpack.c.h.bf16 %v6106_v17  ;;  %v6312_v5 = vunpack.c.l.bf16 %v6122_v10 }
 0x3bf   :  { %v1744_v30 = vmul.f32 %v1724_v51, %v6308_v4  ;;  %v6313_v39 = vunpack.c.h.bf16 %v6122_v10  ;;  %v3494_v25 = vadd.f32 %v3493_v12, %v3492_v27  ;;  %v3508_v47 = vadd.f32 %v3507_v63, %v3506_v13  ;;  %v3696_v12 = vld [vmem:[#allocation13 + $0x268] sm:$0xff]  ;;  %v3711_v4 = vld [vmem:[#allocation13 + $0x2e0] sm:$0xff] }
 0x3c0   :  { %v1745_v31 = vmul.f32 %v1724_v51, %v6309_v7  ;;  %v1746_v59 = vmul.f32 %v1724_v51, %v6310_v37  ;;  %v6201_v40 = vmul.f32 %v1724_v51, %v6311_v53  ;;  %v1748_v33 = vmul.f32 %v1724_v51, %v6312_v5  ;;  %v3552_v37 = vld [vmem:[#allocation12 + $0xe8] sm:$0xff] }
 0x3c1   :  { %v6207_v19 = vmul.f32 %v1724_v51, %v6313_v39  ;;  %v1792_v34 = vadd.f32 %v1744_v30, %v1738_v41  ;;  %v3486_v23 = vrot.slane %v3485_v3, 1  ;;  %v3459_v49 = vadd.f32 %v3458_v16, %v3457_v60  ;;  %v3553_v51 = vld [vmem:[#allocation12 + $0xf0] sm:$0xff] }
 0x3c2   :  { %v6209_v36 = vadd.f32 %v1746_v59, %v1740_v26  ;;  %v6211_v42 = vadd.f32 %v1748_v33, %v1742_v43  ;;  %v3729_v17 = vsel %vm3727_vm9, %v3494_v25, %v6134_v28  ;;  %v3731_v46 = vsel %vm3727_vm9, %v3508_v47, %v3466_v32  ;;  %v3713_v26 = vld [vmem:[#allocation13 + $0x2f0] sm:$0xff]  ;;  %v3695_v59 = vld [vmem:[#allocation13 + $0x260] sm:$0xff]  ;;  %v3536_v47 = vld [vmem:[#allocation12 + $0x68] sm:$0xff] }
 0x3c3   :  { %v3499_v55 = vadd.f32 %v3498_v57, %v3497_v24  ;;  %3804 = vmatprep.mubr.f32.mxu0 %v3729_v17  ;;  %3874 = vmatprep.mubr.f32.mxu1 %v3731_v46  ;;  %v3487_v10 = vadd.f32 %v3486_v23, %v3485_v3  ;;  %v3479_v11 = vrot.slane %v3478_v15, 1  ;;  %v3517_v38 = vrot.slane %v3516_v52, 4  ;;  %v3712_v3 = vld [vmem:[#allocation13 + $0x2e8] sm:$0xff]  ;;  %v3710_v23 = vld [vmem:[#allocation13 + $0x2d8] sm:$0xff]  ;;  %v3551_v46 = vld [vmem:[#allocation12 + $0xe0] sm:$0xff] }
 0x3c4   :  { %v1758_v18 = vrot.slane %v1757_v56, 4  ;;  %v1799_v41 = vadd.f32 %v1745_v31, %v1739_v21  ;;  %v3470_v2 = vrot.slane %v6130_v0, 2  ;;  %v3510_v60 = vrot.slane %v6132_v58, 4  ;;  %v3538_v21 = vld [vmem:[#allocation12 + $0x78] sm:$0xff] }
 0x3c5   :  { %v3500_v8 = vrot.slane %v3499_v55, 1  ;;  %v3728_v9 = vsel %vm3727_vm9, %v3487_v10, %v3445_v29  ;;  %v6219_v28 = vadd.f32 %v3479_v11, %v3478_v15  ;;  %v3518_v32 = vadd.f32 %v3517_v38, %v3516_v52 }
 0x3c6   :  { %v1759_v24 = vadd.f32 %v1758_v18, %v1757_v56  ;;  %3805 = vmatmul.mubr.f32.vlgmr.msra.gmra.mxu0 %v3728_v9  ;;  %v1800_v43 = vrot.slane %v1799_v41, 4  ;;  %v3471_v48 = vadd.f32 %v3470_v2, %v6130_v0  ;;  %v3511_v27 = vadd.f32 %v3510_v60, %v6132_v58  ;;  %v3537_v58 = vld [vmem:[#allocation12 + $0x70] sm:$0xff] }
 0x3c7   :  { %v3501_v14 = vadd.f32 %v3500_v8, %v3499_v55  ;;  %4798 = vmatpush3.msra.mxu0 %v3698_v6  ;;  %v3519_v13 = vrot.slane %v3518_v32, 2  ;;  %v1751_v29 = vrot.slane %v6169_v62, 4  ;;  %v1793_v57 = vrot.slane %v1792_v34, 4  ;;  %v3694_v55 = vld [vmem:[#allocation13 + $0x258] sm:$0xff]  ;;  %v3535_v8 = vld [vmem:[#allocation12 + $0x60] sm:$0xff] }
 0x3c8   :  { %v1760_v16 = vrot.slane %v1759_v24, 2  ;;  %4799 = vmatprep.subr.mxu0 %v3713_v26  ;;  %v1801_v63 = vadd.f32 %v1800_v43, %v1799_v41  ;;  %v3472_v52 = vrot.slane %v3471_v48, 1  ;;  %v3512_v56 = vrot.slane %v3511_v27, 2 }
 0x3c9   :  { %v3730_v15 = vsel %vm3727_vm9, %v3501_v14, %v3459_v49  ;;  %v3520_v0 = vadd.f32 %v3519_v13, %v3518_v32  ;;  %4800 = vmatpush3.msra.mxu0 %v3697_v45  ;;  %v1752_v7 = vadd.f32 %v1751_v29, %v6169_v62  ;;  %v1765_v31 = vrot.slane %v6171_v22, 4  ;;  %v3692_v29 = vld [vmem:[#allocation13 + $0x248] sm:$0xff] }
 0x3ca   :  { %3875 = vmatmul.mubr.f32.vlgmr.msra.gmra.mxu1 %v3730_v15  ;;  %v1761_v30 = vadd.f32 %v1760_v16, %v1759_v24  ;;  %4801 = vmatprep.subr.mxu0 %v3712_v3  ;;  %v1802_v53 = vrot.slane %v1801_v63, 2  ;;  %v3473_v5 = vadd.f32 %v3472_v52, %v3471_v48  ;;  %v3513_v33 = vadd.f32 %v3512_v56, %v3511_v27  ;;  %v3549_v48 = vld [vmem:[#allocation12 + $0xd0] sm:$0xff]  ;;  %v3708_v27 = vld [vmem:[#allocation13 + $0x2c8] sm:$0xff] }
 0x3cb   :  { %4833 = vmatpush3.msra.mxu1 %v3538_v21  ;;  %v1794_v39 = vadd.f32 %v1793_v57, %v1792_v34  ;;  %v3521_v25 = vrot.slane %v3520_v0, 1  ;;  %4802 = vmatpush3.msra.mxu0 %v3696_v12  ;;  %v1753_v17 = vrot.slane %v1752_v7, 2  ;;  %v1771_v62 = vadd.f32 %v6161_v1, %v6144_v50  ;;  %v3550_v50 = vld [vmem:[#allocation12 + $0xd8] sm:$0xff]  ;;  %v3709_v1 = vld [vmem:[#allocation13 + $0x2d0] sm:$0xff]  ;;  %v3707_v12 = vld [vmem:[#allocation13 + $0x2c0] sm:$0xff] }
 0x3cc   :  { %4834 = vmatprep.subr.mxu1 %v3553_v51  ;;  %v1762_v49 = vrot.slane %v1761_v30, 1  ;;  %4803 = vmatprep.subr.mxu0 %v3711_v4  ;;  %v1803_v10 = vadd.f32 %v1802_v53, %v1801_v63  ;;  %v3514_v11 = vrot.slane %v3513_v33, 1  ;;  %v1813_v34 = vadd.f32 %v6201_v40, %v6183_v61  ;;  %v3534_v61 = vld [vmem:[#allocation12 + $0x58] sm:$0xff]  ;;  %v3693_v40 = vld [vmem:[#allocation13 + $0x250] sm:$0xff]  ;;  %v3691_v4 = vld [vmem:[#allocation13 + $0x240] sm:$0xff] }
 0x3cd   :  { %4835 = vmatpush3.msra.mxu1 %v3537_v58  ;;  %v1795_v38 = vrot.slane %v1794_v39, 2  ;;  %v3522_v18 = vadd.f32 %v3521_v25, %v3520_v0  ;;  %4804 = vmatpush3.msra.mxu0 %v3695_v59  ;;  %v1754_v41 = vadd.f32 %v1753_v17, %v1752_v7  ;;  %v1772_v2 = vrot.slane %v1771_v62, 4  ;;  %v3532_v58 = vld [vmem:[#allocation12 + $0x48] sm:$0xff]  ;;  %v3706_v59 = vld [vmem:[#allocation13 + $0x2b8] sm:$0xff] }
 0x3ce   :  { %4836 = vmatprep.subr.mxu1 %v3552_v37  ;;  %v1763_v6 = vadd.f32 %v1762_v49, %v1761_v30  ;;  %4805 = vmatprep.subr.mxu0 %v3710_v23  ;;  %v1804_v60 = vrot.slane %v1803_v10, 1  ;;  %v3515_v9 = vadd.f32 %v3514_v11, %v3513_v33  ;;  %v1814_v32 = vrot.slane %v1813_v34, 4  ;;  %v3546_v49 = vld [vmem:[#allocation12 + $0xb8] sm:$0xff] }
 0x3cf   :  { %4837 = vmatpush3.msra.mxu1 %v3536_v47  ;;  %v1796_v26 = vadd.f32 %v1795_v38, %v1794_v39  ;;  %v3733_v24 = vsel %vm3727_vm9, %v3522_v18, %v6219_v28  ;;  %4806 = vmatpush3.msra.mxu0 %v3694_v55  ;;  %v1755_v14 = vrot.slane %v1754_v41, 1  ;;  %v1773_v45 = vadd.f32 %v1772_v2, %v1771_v62  ;;  %v3533_v28 = vld [vmem:[#allocation12 + $0x50] sm:$0xff]  ;;  %v3690_v17 = vld [vmem:[#allocation13 + $0x238] sm:$0xff] }
 0x3d0   :  { %4838 = vmatprep.subr.mxu1 %v3551_v46  ;;  %v1785_v43 = vadd.f32 %v6167_v54, %v6150_v35  ;;  %3944 = vmatprep.mubr.f32.mxu0 %v3733_v24  ;;  %v1805_v21 = vadd.f32 %v1804_v60, %v1803_v10  ;;  %v6236_v13 = vsel %vm3727_vm9, %v3515_v9, %v3473_v5  ;;  %v3548_v54 = vld [vmem:[#allocation12 + $0xc8] sm:$0xff]  ;;  %v1821_v10 = vrot.slane %v6211_v42, 4  ;;  %v3530_v11 = vld [vmem:[#allocation12 + $0x38] sm:$0xff]  ;;  %v3705_v38 = vld [vmem:[#allocation13 + $0x2b0] sm:$0xff] }
 0x3d1   :  { %4839 = vmatpush3.msra.mxu1 %v3535_v8  ;;  %v1797_v3 = vrot.slane %v1796_v26, 1  ;;  %v1815_v16 = vadd.f32 %v1814_v32, %v1813_v34  ;;  %4807 = vmatprep.subr.mxu0 %v3709_v1  ;;  %v1756_v57 = vadd.f32 %v1755_v14, %v1754_v41  ;;  %v1774_v15 = vrot.slane %v1773_v45, 2  ;;  %v3689_v41 = vld [vmem:[#allocation13 + $0x230] sm:$0xff]  ;;  %v3704_v9 = vld [vmem:[#allocation13 + $0x2a8] sm:$0xff] }
 0x3d2   :  { %4840 = vmatprep.subr.mxu1 %v3550_v50  ;;  %v1786_v51 = vrot.slane %v1785_v43, 4  ;;  %v1827_v35 = vadd.f32 %v6207_v19, %v6189_v20  ;;  %4808 = vmatpush3.msra.mxu0 %v3693_v40  ;;  %v3963_v63 = vsel %vm3727_vm9, %v1805_v21, %v1763_v6  ;;  %v1766_v0 = vadd.f32 %v1765_v31, %v6171_v22  ;;  %v3547_v19 = vld [vmem:[#allocation12 + $0xc0] sm:$0xff]  ;;  %v3688_v40 = vld [vmem:[#allocation13 + $0x228] sm:$0xff] }
 0x3d3   :  { %4841 = vmatpush3.msra.mxu1 %v3534_v61  ;;  %v1798_v52 = vadd.f32 %v1797_v3, %v1796_v26  ;;  %v1816_v56 = vrot.slane %v1815_v16, 2  ;;  %4809 = vmatprep.subr.mxu0 %v3708_v27  ;;  %v1775_v30 = vadd.f32 %v1774_v15, %v1773_v45  ;;  %v1807_v20 = vrot.slane %v6209_v36, 4  ;;  %v3531_v31 = vld [vmem:[#allocation12 + $0x40] sm:$0xff]  ;;  %v3544_v61 = vld [vmem:[#allocation12 + $0xa8] sm:$0xff] }
 0x3d4   :  { %4842 = vmatprep.subr.mxu1 %v3549_v48  ;;  %v1787_v7 = vadd.f32 %v1786_v51, %v1785_v43  ;;  %v1828_v37 = vrot.slane %v1827_v35, 4  ;;  %4810 = vmatpush3.msra.mxu0 %v3692_v29  ;;  %v1767_v33 = vrot.slane %v1766_v0, 2  ;;  %v1779_v22 = vrot.slane %v6173_v44, 4  ;;  %v3528_v48 = vld [vmem:[#allocation12 + $0x28] sm:$0xff]  ;;  %v3543_v3 = vld [vmem:[#allocation12 + $0xa0] sm:$0xff]  ;;  %v3702_v51 = vld [vmem:[#allocation13 + $0x298] sm:$0xff] }
 0x3d5   :  { %4843 = vmatpush3.msra.mxu1 %v3533_v28  ;;  %v6246_v53 = vsel %vm3727_vm9, %v1798_v52, %v1756_v57  ;;  %v1817_v5 = vadd.f32 %v1816_v56, %v1815_v16  ;;  %4811 = vmatprep.subr.mxu0 %v3707_v12  ;;  %v1776_v39 = vrot.slane %v1775_v30, 1  ;;  %v1808_v23 = vadd.f32 %v1807_v20, %v6209_v36  ;;  %v3545_v36 = vld [vmem:[#allocation12 + $0xb0] sm:$0xff]  ;;  %v3687_v16 = vld [vmem:[#allocation13 + $0x220] sm:$0xff]  ;;  %v3686_v52 = vld [vmem:[#allocation13 + $0x218] sm:$0xff] }
 0x3d6   :  { %4844 = vmatprep.subr.mxu1 %v3548_v54  ;;  %v1788_v25 = vrot.slane %v1787_v7, 2  ;;  %v1829_v47 = vadd.f32 %v1828_v37, %v1827_v35  ;;  %4812 = vmatpush3.msra.mxu0 %v3691_v4  ;;  %v1768_v46 = vadd.f32 %v1767_v33, %v1766_v0  ;;  %v1780_v55 = vadd.f32 %v1779_v22, %v6173_v44  ;;  %v3529_v44 = vld [vmem:[#allocation12 + $0x30] sm:$0xff]  ;;  %v3527_v15 = vld [vmem:[#allocation12 + $0x20] sm:$0xff]  ;;  %v3526_v0 = vld [vmem:[#allocation12 + $0x18] sm:$0xff] }
 0x3d7   :  { %4845 = vmatpush3.msra.mxu1 %v3532_v58  ;;  %v1818_v62 = vrot.slane %v1817_v5, 1  ;;  %4813 = vmatprep.subr.mxu0 %v3706_v59  ;;  %v1777_v34 = vadd.f32 %v1776_v39, %v1775_v30  ;;  %v1809_v6 = vrot.slane %v1808_v23, 2  ;;  %v1822_v60 = vadd.f32 %v1821_v10, %v6211_v42  ;;  %v3703_v42 = vld [vmem:[#allocation13 + $0x2a0] sm:$0xff]  ;;  %v3701_v58 = vld [vmem:[#allocation13 + $0x290] sm:$0xff]  ;;  %v3540_v33 = vld [vmem:[#allocation12 + $0x88] sm:$0xff] }
 0x3d8   :  { %4846 = vmatprep.subr.mxu1 %v3547_v19  ;;  %v1789_v18 = vadd.f32 %v1788_v25, %v1787_v7  ;;  %v1830_v8 = vrot.slane %v1829_v47, 2  ;;  %4038 = vmatprep.mubr.f32.mxu1 %v3963_v63  ;;  %v1769_v50 = vrot.slane %v1768_v46, 1  ;;  %v1781_v1 = vrot.slane %v1780_v55, 2  ;;  %v3542_v63 = vld [vmem:[#allocation12 + $0x98] sm:$0xff]  ;;  %v3541_v7 = vld [vmem:[#allocation12 + $0x90] sm:$0xff]  ;;  %v3684_v22 = vld [vmem:[#allocation13 + $0x208] sm:$0xff] }
 0x3d9   :  { %4847 = vmatpush3.msra.mxu1 %v3531_v31  ;;  %v1819_v2 = vadd.f32 %v1818_v62, %v1817_v5  ;;  %4814 = vmatpush3.msra.mxu0 %v3690_v17  ;;  %v1810_v24 = vadd.f32 %v1809_v6, %v1808_v23  ;;  %v1823_v43 = vrot.slane %v1822_v60, 2  ;;  %v3685_v37 = vld [vmem:[#allocation13 + $0x210] sm:$0xff]  ;;  %v3700_v5 = vld [vmem:[#allocation13 + $0x288] sm:$0xff]  ;;  %v3699_v25 = vld [vmem:[#allocation13 + $0x280] sm:$0xff] }
 0x3da   :  { %4848 = vmatprep.subr.mxu1 %v3546_v49  ;;  %v1790_v26 = vrot.slane %v1789_v18, 1  ;;  %v1831_v32 = vadd.f32 %v1830_v8, %v1829_v47  ;;  %4815 = vmatprep.subr.mxu0 %v3705_v38  ;;  %v1782_v45 = vadd.f32 %v1781_v1, %v1780_v55  ;;  %v1770_v28 = vadd.f32 %v1769_v50, %v1768_v46  ;;  %v3525_v59 = vld [vmem:[#allocation12 + $0x10] sm:$0xff]  ;;  %v3524_v39 = vld [vmem:[#allocation12 + $0x8] sm:$0xff]  ;;  %v3539_v47 = vld [vmem:[#allocation12 + $0x80] sm:$0xff] }
 0x3db   :  { %4849 = vmatpush3.msra.mxu1 %v3530_v11  ;;  %v6254_v14 = vsel %vm3727_vm9, %v1819_v2, %v1777_v34  ;;  %4816 = vmatpush3.msra.mxu0 %v3689_v41  ;;  %v1811_v21 = vrot.slane %v1810_v24, 1  ;;  %v1824_v57 = vadd.f32 %v1823_v43, %v1822_v60  ;;  %v3683_v23 = vld [vmem:[#allocation13 + $0x200] sm:$0xff]  ;;  %v3586_v17 = vld [vmem:[#allocation12 + $0x1f8] sm:$0xff]  ;;  %v3585_v10 = vld [vmem:[#allocation12 + $0x1f0] sm:$0xff] }
 0x3dc   :  { %4850 = vmatprep.subr.mxu1 %v3545_v36  ;;  %v1832_v27 = vrot.slane %v1831_v32, 1  ;;  %4817 = vmatprep.subr.mxu0 %v3704_v9  ;;  %v1783_v29 = vrot.slane %v1782_v45, 1  ;;  %v1791_v35 = vadd.f32 %v1790_v26, %v1789_v18  ;;  %v3523_v49 = vld [vmem:[#allocation12] sm:$0xff]  ;;  %v3618_v62 = vld [vmem:[#allocation12 + $0x2f8] sm:$0xff]  ;;  %v3617_v11 = vld [vmem:[#allocation12 + $0x2f0] sm:$0xff] }
 0x3dd   :  { %4851 = vmatpush3.msra.mxu1 %v3529_v44  ;;  %4818 = vmatpush3.msra.mxu0 %v3688_v40  ;;  %v1812_v12 = vadd.f32 %v1811_v21, %v1810_v24  ;;  %v1825_v56 = vrot.slane %v1824_v57, 1  ;;  %v3570_v46 = vld [vmem:[#allocation12 + $0x178] sm:$0xff]  ;;  %v3569_v38 = vld [vmem:[#allocation12 + $0x170] sm:$0xff]  ;;  %v3584_v18 = vld [vmem:[#allocation12 + $0x1e8] sm:$0xff] }
 0x3de   :  { %4852 = vmatprep.subr.mxu1 %v3544_v61  ;;  %v1833_v54 = vadd.f32 %v1832_v27, %v1831_v32  ;;  %4819 = vmatprep.subr.mxu0 %v3703_v42  ;;  %v1784_v20 = vadd.f32 %v1783_v29, %v1782_v45  ;;  %v3602_v55 = vld [vmem:[#allocation12 + $0x278] sm:$0xff]  ;;  %v3601_v34 = vld [vmem:[#allocation12 + $0x270] sm:$0xff]  ;;  %v3616_v8 = vld [vmem:[#allocation12 + $0x2e8] sm:$0xff] }
 0x3df   :  { %4853 = vmatpush3.msra.mxu1 %v3528_v48  ;;  %4820 = vmatpush3.msra.mxu0 %v3687_v16  ;;  %v6258_v30 = vsel %vm3727_vm9, %v1812_v12, %v1770_v28  ;;  %v1826_v19 = vadd.f32 %v1825_v56, %v1824_v57  ;;  %v3568_v6 = vld [vmem:[#allocation12 + $0x168] sm:$0xff]  ;;  %v3583_v36 = vld [vmem:[#allocation12 + $0x1e0] sm:$0xff]  ;;  %v3582_v50 = vld [vmem:[#allocation12 + $0x1d8] sm:$0xff] }
 0x3e0   :  { %4854 = vmatprep.subr.mxu1 %v3543_v3  ;;  %v3967_v4 = vsel %vm3727_vm9, %v1833_v54, %v1791_v35  ;;  %4821 = vmatprep.subr.mxu0 %v3702_v51  ;;  %v3567_v41 = vld [vmem:[#allocation12 + $0x160] sm:$0xff]  ;;  %v3614_v1 = vld [vmem:[#allocation12 + $0x2d8] sm:$0xff]  ;;  %v3581_v9 = vld [vmem:[#allocation12 + $0x1d0] sm:$0xff] }
 0x3e1   :  { %4855 = vmatpush3.msra.mxu1 %v3527_v15  ;;  %4822 = vmatpush3.msra.mxu0 %v3686_v52  ;;  %v6261_v31 = vsel %vm3727_vm9, %v1826_v19, %v1784_v20  ;;  %v3599_v2 = vld [vmem:[#allocation12 + $0x260] sm:$0xff]  ;;  %v3566_v60 = vld [vmem:[#allocation12 + $0x158] sm:$0xff]  ;;  %v3613_v26 = vld [vmem:[#allocation12 + $0x2d0] sm:$0xff] }
 0x3e2   :  { %4856 = vmatprep.subr.mxu1 %v3542_v63  ;;  %4823 = vmatprep.subr.mxu0 %v3701_v58  ;;  %v3598_v44 = vld [vmem:[#allocation12 + $0x258] sm:$0xff]  ;;  %v3565_v32 = vld [vmem:[#allocation12 + $0x150] sm:$0xff]  ;;  %v3580_v61 = vld [vmem:[#allocation12 + $0x1c8] sm:$0xff] }
 0x3e3   :  { %4857 = vmatpush3.msra.mxu1 %v3526_v0  ;;  %4824 = vmatpush3.msra.mxu0 %v3685_v37  ;;  %v3597_v24 = vld [vmem:[#allocation12 + $0x250] sm:$0xff]  ;;  %v3612_v40 = vld [vmem:[#allocation12 + $0x2c8] sm:$0xff]  ;;  %v3579_v43 = vld [vmem:[#allocation12 + $0x1c0] sm:$0xff] }
 0x3e4   :  { %4858 = vmatprep.subr.mxu1 %v3541_v7  ;;  %4825 = vmatprep.subr.mxu0 %v3700_v5  ;;  %v3596_v45 = vld [vmem:[#allocation12 + $0x248] sm:$0xff]  ;;  %v3611_v48 = vld [vmem:[#allocation12 + $0x2c0] sm:$0xff]  ;;  %v3578_v21 = vld [vmem:[#allocation12 + $0x1b8] sm:$0xff] }
 0x3e5   :  { %4859 = vmatpush3.msra.mxu1 %v3525_v59  ;;  %4826 = vmatpush3.msra.mxu0 %v3684_v22  ;;  %v3563_v42 = vld [vmem:[#allocation12 + $0x140] sm:$0xff]  ;;  %v3610_v3 = vld [vmem:[#allocation12 + $0x2b8] sm:$0xff]  ;;  %v3577_v29 = vld [vmem:[#allocation12 + $0x1b0] sm:$0xff] }
 0x3e6   :  { %4860 = vmatprep.subr.mxu1 %v3540_v33  ;;  %4827 = vmatprep.subr.mxu0 %v3699_v25  ;;  %v3595_v27 = vld [vmem:[#allocation12 + $0x240] sm:$0xff]  ;;  %v3562_v16 = vld [vmem:[#allocation12 + $0x138] sm:$0xff]  ;;  %v3609_v57 = vld [vmem:[#allocation12 + $0x2b0] sm:$0xff] }
 0x3e7   :  { %4861 = vmatpush3.msra.mxu1 %v3524_v39  ;;  %4828 = vmatpush3.msra.mxu0 %v3683_v23  ;;  %v3594_v28 = vld [vmem:[#allocation12 + $0x238] sm:$0xff]  ;;  %v3561_v15 = vld [vmem:[#allocation12 + $0x130] sm:$0xff]  ;;  %v3576_v35 = vld [vmem:[#allocation12 + $0x1a8] sm:$0xff] }
 0x3e8   :  { %4862 = vmatprep.subr.mxu1 %v3539_v47  ;;  %3945 = vmatmul.mubr.f32.vlgmr.msra.gmra.mxu0 %v6236_v13  ;;  %v3600_v13 = vld [vmem:[#allocation12 + $0x268] sm:$0xff]  ;;  %v3593_v51 = vld [vmem:[#allocation12 + $0x230] sm:$0xff]  ;;  %v3575_v52 = vld [vmem:[#allocation12 + $0x1a0] sm:$0xff] }
 0x3e9   :  { %4863 = vmatpush3.msra.mxu1 %v3523_v49  ;;  %4867 = vmatprep.subr.mxu0 %v3586_v17  ;;  %v3608_v54 = vld [vmem:[#allocation12 + $0x2a8] sm:$0xff]  ;;  %v3607_v56 = vld [vmem:[#allocation12 + $0x2a0] sm:$0xff]  ;;  %v3606_v7 = vld [vmem:[#allocation12 + $0x298] sm:$0xff] }
 0x3ea   :  { %4039 = vmatmul.mubr.f32.vlgmr.msra.gmra.mxu1 %v6246_v53  ;;  %4902 = vmatprep.subr.mxu1 %v3618_v62  ;;  %v3615_v53 = vld [vmem:[#allocation12 + $0x2e0] sm:$0xff]  ;;  %v3560_v12 = vld [vmem:[#allocation12 + $0x128] sm:$0xff]  ;;  %v3558_v37 = vld [vmem:[#allocation12 + $0x118] sm:$0xff] }
 0x3eb   :  { %4868 = vmatpush3.msra.mxu0 %v3570_v46  ;;  %4108 = vmatprep.mubr.f32.mxu0 %v6254_v14  ;;  %v3564_v14 = vld [vmem:[#allocation12 + $0x148] sm:$0xff]  ;;  %v3559_v0 = vld [vmem:[#allocation12 + $0x120] sm:$0xff]  ;;  %v3590_v20 = vld [vmem:[#allocation12 + $0x218] sm:$0xff] }
 0x3ec   :  { %4903 = vmatpush3.msra.mxu1 %v3602_v55  ;;  %4178 = vmatprep.mubr.f32.mxu1 %v3967_v4  ;;  %v3592_v63 = vld [vmem:[#allocation12 + $0x228] sm:$0xff]  ;;  %v3591_v58 = vld [vmem:[#allocation12 + $0x220] sm:$0xff]  ;;  %v3574_v4 = vld [vmem:[#allocation12 + $0x198] sm:$0xff] }
 0x3ed   :  { %4869 = vmatprep.subr.mxu0 %v3585_v10  ;;  %4904 = vmatprep.subr.mxu1 %v3617_v11  ;;  %v3573_v19 = vld [vmem:[#allocation12 + $0x190] sm:$0xff]  ;;  %v3572_v22 = vld [vmem:[#allocation12 + $0x188] sm:$0xff]  ;;  %v3571_v23 = vld [vmem:[#allocation12 + $0x180] sm:$0xff] }
 0x3ee   :  { %4870 = vmatpush3.msra.mxu0 %v3569_v38  ;;  %4905 = vmatpush3.msra.mxu1 %v3601_v34  ;;  %v3605_v59 = vld [vmem:[#allocation12 + $0x290] sm:$0xff]  ;;  %v3604_v39 = vld [vmem:[#allocation12 + $0x288] sm:$0xff]  ;;  %v3603_v49 = vld [vmem:[#allocation12 + $0x280] sm:$0xff] }
 0x3ef   :  { %4871 = vmatprep.subr.mxu0 %v3584_v18  ;;  %4906 = vmatprep.subr.mxu1 %v3616_v8  ;;  %v3557_v5 = vld [vmem:[#allocation12 + $0x110] sm:$0xff]  ;;  %v3556_v25 = vld [vmem:[#allocation12 + $0x108] sm:$0xff]  ;;  %v3555_v17 = vld [vmem:[#allocation12 + $0x100] sm:$0xff] }
 0x3f0   :  { %4872 = vmatpush3.msra.mxu0 %v3568_v6  ;;  %4907 = vmatpush3.msra.mxu1 %v3600_v13  ;;  %v3589_v33 = vld [vmem:[#allocation12 + $0x210] sm:$0xff]  ;;  %v3588_v47 = vld [vmem:[#allocation12 + $0x208] sm:$0xff]  ;;  %v3587_v62 = vld [vmem:[#allocation12 + $0x200] sm:$0xff] }
 0x3f1   :  { %4873 = vmatprep.subr.mxu0 %v3583_v36  ;;  %4908 = vmatprep.subr.mxu1 %v3615_v53 }
 0x3f2   :  { %4874 = vmatpush3.msra.mxu0 %v3567_v41  ;;  %4909 = vmatpush3.msra.mxu1 %v3599_v2 }
 0x3f3   :  { %4875 = vmatprep.subr.mxu0 %v3582_v50  ;;  %4910 = vmatprep.subr.mxu1 %v3614_v1 }
 0x3f4   :  { %4876 = vmatpush3.msra.mxu0 %v3566_v60  ;;  %4911 = vmatpush3.msra.mxu1 %v3598_v44 }
 0x3f5   :  { %4877 = vmatprep.subr.mxu0 %v3581_v9  ;;  %4912 = vmatprep.subr.mxu1 %v3613_v26 }
 0x3f6   :  { %4878 = vmatpush3.msra.mxu0 %v3565_v32  ;;  %4913 = vmatpush3.msra.mxu1 %v3597_v24  ;;  %v6314_v32 = vlaneseq }
 0x3f7   :  { %4879 = vmatprep.subr.mxu0 %v3580_v61  ;;  %4914 = vmatprep.subr.mxu1 %v3612_v40  ;;  %v4558_v61 = vld [vmem:[%s6292_s15] ss:$0 sm:$0xff]  ;;  %s5624_s15 = smov [#allocation15]  }
 0x3f8   :  { %4880 = vmatpush3.msra.mxu0 %v3564_v14  ;;  %4915 = vmatpush3.msra.mxu1 %v3596_v45  ;;  %v4193_v24 = vand.u32 127, %v6314_v32  ;;  %v4213_v14 = vpop.permute.xlu0 %4212  ;;  %s4228_s14 = sshll.u32 %s5624_s15, 4  ;;  %s4229_s14 = int_to_ptr.vmem [resolvable:$true] %s4228_s14 }
 0x3f9   :  { %4881 = vmatprep.subr.mxu0 %v3579_v43  ;;  %4916 = vmatprep.subr.mxu1 %v3611_v48  ;;  %s5581_s6 = scalar_lea.vmem %s4229_s14, 32  ;;  %p5586_p3 = scmp.lt.s32.totalorder %s4229_s14, %s4229_s14 }
 0x3fa   :  { %4882 = vmatpush3.msra.mxu0 %v3563_v42  ;;  %4917 = vmatpush3.msra.mxu1 %v3595_v27  ;;  %vm4194_vm10 = vcmp.lt.s32.totalorder %v4193_v24, 4  ;;  %vm4214_vm12 = vcmp.eq.s32.totalorder %v4193_v24, %v4213_v14  ;;  %p5582_p2 = scmp.ne.s32.totalorder %s4229_s14, %s5581_s6  ;;  %p5587_p4 = scmp.lt.s32.totalorder %s5581_s6, %s5581_s6 }
 0x3fb   :  { %4883 = vmatprep.subr.mxu0 %v3578_v21  ;;  %4918 = vmatprep.subr.mxu1 %v3610_v3 }
 0x3fc   :  { %4884 = vmatpush3.msra.mxu0 %v3562_v16  ;;  %4919 = vmatpush3.msra.mxu1 %v3594_v28  ;;  %p5588_p5 = por %p5587_p4, %p5586_p3 }
 0x3fd   :  { %4885 = vmatprep.subr.mxu0 %v3577_v29  ;;  %4920 = vmatprep.subr.mxu1 %v3609_v57 }
 0x3fe   :  { %4886 = vmatpush3.msra.mxu0 %v3561_v15  ;;  %4921 = vmatpush3.msra.mxu1 %v3593_v51  ;;  %p5589_p6 = pnand %p5588_p5, %p5582_p2 }
 0x3ff   :  { %4887 = vmatprep.subr.mxu0 %v3576_v35  ;;  %4922 = vmatprep.subr.mxu1 %v3608_v54 }
 0x400   :  { %4888 = vmatpush3.msra.mxu0 %v3560_v12  ;;  %4923 = vmatpush3.msra.mxu1 %v3592_v63 }
 0x401   :  { %4889 = vmatprep.subr.mxu0 %v3575_v52  ;;  %4924 = vmatprep.subr.mxu1 %v3607_v56 }
 0x402   :  { %4890 = vmatpush3.msra.mxu0 %v3559_v0  ;;  %4925 = vmatpush3.msra.mxu1 %v3591_v58 }
 0x403   :  { %4891 = vmatprep.subr.mxu0 %v3574_v4  ;;  %4926 = vmatprep.subr.mxu1 %v3606_v7 }
 0x404   :  { %4892 = vmatpush3.msra.mxu0 %v3558_v37  ;;  %4927 = vmatpush3.msra.mxu1 %v3590_v20 }
 0x405   :  { %4893 = vmatprep.subr.mxu0 %v3573_v19  ;;  %4928 = vmatprep.subr.mxu1 %v3605_v59 }
 0x406   :  { %4894 = vmatpush3.msra.mxu0 %v3557_v5  ;;  %4929 = vmatpush3.msra.mxu1 %v3589_v33 }
 0x407   :  { %4895 = vmatprep.subr.mxu0 %v3572_v22  ;;  %4930 = vmatprep.subr.mxu1 %v3604_v39 }
 0x408   :  { %4896 = vmatpush3.msra.mxu0 %v3556_v25  ;;  %4931 = vmatpush3.msra.mxu1 %v3588_v47 }
 0x409   :  { %4897 = vmatprep.subr.mxu0 %v3571_v23  ;;  %4932 = vmatprep.subr.mxu1 %v3603_v49 }
 0x40a   :  { %4898 = vmatpush3.msra.mxu0 %v3555_v17  ;;  %4933 = vmatpush3.msra.mxu1 %v3587_v62 }
 0x40b   :  { %4109 = vmatmul.mubr.f32.vlgmr.msra.gmra.mxu0 %v6258_v30  ;;  %4179 = vmatmul.mubr.f32.vlgmr.msra.gmra.mxu1 %v6261_v31 }
 0x486   :  { %v4759_v46 = vpop.f32.mrf.mxu0 }
 0x488   :  { %v4760_v10 = vpop.f32.mrf.mxu0 }
 0x489   :  { %v4761_v18 = vadd.f32 %v4760_v10, %v4759_v46 }
 0x48a   :  { %v4794_v55 = vpop.f32.mrf.mxu1 }
 0x48c   :  { %v4795_v38 = vpop.f32.mrf.mxu1 }
 0x48d   :  { %v4796_v8 = vadd.f32 %v4795_v38, %v4794_v55 }
 0x48f   :  { %v3877_v36 = vadd.f32 %v4796_v8, %v4761_v18 }
 0x4a8   :  { %v4829_v11 = vpop.f32.mrf.mxu0 }
 0x4aa   :  { %v4830_v34 = vpop.f32.mrf.mxu0  ;;  %v4864_v6 = vpop.f32.mrf.mxu1 }
 0x4ab   :  { %v4831_v13 = vadd.f32 %v4830_v34, %v4829_v11 }
 0x4ac   :  { %v4865_v53 = vpop.f32.mrf.mxu1 }
 0x4ad   :  { %v3947_v41 = vadd.f32 %v4831_v13, %v3877_v36  ;;  %v4866_v50 = vadd.f32 %v4865_v53, %v4864_v6 }
 0x4af   :  { %v4041_v30 = vadd.f32 %v4866_v50, %v3947_v41 }
 0x4cb   :  { %v4899_v2 = vpop.f32.mrf.mxu0  ;;  %v4934_v1 = vpop.f32.mrf.mxu1 }
 0x4cd   :  { %v4900_v60 = vpop.f32.mrf.mxu0  ;;  %v4935_v31 = vpop.f32.mrf.mxu1 }
 0x4ce   :  { %v4901_v44 = vadd.f32 %v4900_v60, %v4899_v2  ;;  %v4936_v26 = vadd.f32 %v4935_v31, %v4934_v1 }
 0x4d0   :  { %v4111_v9 = vadd.f32 %v4901_v44, %v4041_v30 }
 0x4d2   :  { %v4181_v40 = vadd.f32 %v4936_v26, %v4111_v9 }
 0x4d4   :  { %v4191_v45 = vadd.f32 %v4558_v61, %v4181_v40 }
 0x4d6   :  { %v4195_v43 = vsel %vm4194_vm10, %v4191_v45, -1e+09 }
 0x4d7   :  { %v4198_v48 = vsel %vm4197_vm11, %v4195_v43, -inf  ;;  %4196 = vst [vmem:[#allocation15] sm:$0x3] %v4195_v43  ;;  %v4215_v42 = vsel %vm4214_vm12, %v4195_v43, 0.0 }
 0x4d8   :  { %4199 = vmax.xlane.f32.xlu1 %v4198_v48  ;;  %v4216_v27 = vsel %vm4197_vm11, %v4215_v42, 0.0 }
 0x4dc   :  { %4217 = vadd.xlane.f32.xlu1 %v4216_v27 }
 0x561   :  { %v4200_v21 = vpop.xlane.xlu1 %4199 }
 0x562   :  { %v4201_v3 = vsub.f32 %v4195_v43, %v4200_v21 }
 0x564   :  { %v4202_v16 = vmul.f32 1.442695, %v4201_v3 }
 0x566   :  { %5433 = vpow2.f32 %v4202_v16 }
 0x573   :  { %v5434_v28 = vpop.eup %5433 }
 0x574   :  { %v4204_v29 = vsel %vm4197_vm11, %v5434_v28, 0.0 }
 0x575   :  { %4205 = vadd.xlane.f32.xlu0 %v4204_v29 }
 0x576   :  { %5592 = shalt.err (!%p5589_p6)
}
 0x577   :  { %4231 = dma.vmem_to_hbm [thread:$0]  %s4229_s14, 32, %s6293_s16, [#allocation6]   ;;  %v4218_v54 = vpop.xlane.xlu1 %4217  ;;  %vm4220_vm13 = vcmask 1024  }
 0x5fe   :  { %v4206_v57 = vpop.xlane.xlu0 %4205 }
 0x5ff   :  { %5435 = vlog2.f32 %v4206_v57 }
 0x60c   :  { %v5436_v15 = vpop.eup %5435 }
 0x60d   :  { %v4208_v51 = vmul.f32 0.6931472, %v5436_v15 }
 0x60f   :  { %v4209_v35 = vadd.f32 %v4208_v51, %v4200_v21 }
 0x611   :  { %v4219_v12 = vsub.f32 %v4209_v35, %v4218_v54 }
 0x613   :  { %4221 = vst.msk [vmem:[%s6294_s17] sm:$0x3] %vm4220_vm13, %v4219_v12 }
 0x614   :  { %5609 = dma.done.wait [#allocation6], 32  }
 0x615   :  { %5610 = vsyncadd [#allocation6], 4294967264 }
 0x616   :  { %4239 = vsyncpa [#allocation5], 1 }
 0x617   :  { %4240 = vsyncpa [#allocation8], 1 }
 0x618   :  { %4241 = vsyncpa [#allocation11], 1 }
 0x619   :  { %4242 = vsyncpa [#allocation14], 1 }
 0x61a   :  { %4243 = vsyncpa [#allocation6], 1 }

</bundles_post_ra>
